<compile_context>
chip_gen: v7x
topology: tpu7x:2x2x1
jax: 0.10.0
libtpu: 0.0.40
codegen_flags: <defaults>
</compile_context>

<pallas_src>
import numpy as np
import jax
import jax.numpy as jnp
from jax.experimental import pallas as pl
from jax.experimental.pallas import tpu as pltpu


def make_pe_2d(d_model: int, max_height: int = 8, max_len: int = 600,
               dtype=jnp.float32) -> jnp.ndarray:
    """Build the 2D positional-encoding buffer exactly like PositionalEncoder2D.__init__."""
    # The PyTorch reference implicitly requires d_model // 2 to be even.
    assert d_model % 4 == 0, "PositionalEncoder2D requires d_model % 4 == 0"
    d2 = d_model // 2
    a = jnp.arange(0, d2, 2, dtype=jnp.float32) * (-np.log(10000.0) / d2)
    div_term = jnp.exp(a)                                        # (d2//2,)
    pos_w = jnp.arange(max_len, dtype=jnp.float32)[:, None]      # (L, 1)
    pos_h = jnp.arange(max_height, dtype=jnp.float32)[:, None]   # (H, 1)

    # (d2//2, max_height, max_len) each
    x1 = jnp.broadcast_to(jnp.sin(pos_w * div_term).T[:, None, :],
                          (div_term.shape[0], max_height, max_len))
    x2 = jnp.broadcast_to(jnp.cos(pos_w * div_term).T[:, None, :],
                          (div_term.shape[0], max_height, max_len))
    x3 = jnp.broadcast_to(jnp.sin(pos_h * div_term).T[:, :, None],
                          (div_term.shape[0], max_height, max_len))
    x4 = jnp.broadcast_to(jnp.cos(pos_h * div_term).T[:, :, None],
                          (div_term.shape[0], max_height, max_len))

    pe = jnp.zeros((1, d_model, max_height, max_len), dtype=jnp.float32)
    pe = pe.at[0, 0:d2:2, :, :].set(x1)
    pe = pe.at[0, 1:d2:2, :, :].set(x2)
    pe = pe.at[0, d2::2, :, :].set(x3)
    pe = pe.at[0, d2 + 1::2, :, :].set(x4)
    return pe.astype(dtype)


def prepare_pe(pe: jnp.ndarray, height: int, width: int, dtype) -> jnp.ndarray:
    """One-time setup: slice to (H, W), cast to the activation dtype and flatten to (1, F).

    H and W are static per model, so this non-contiguous slice + copy is paid once at
    setup instead of on every forward call.
    """
    _, C, _, _ = pe.shape
    return pe[:, :, :height, :width].astype(dtype).reshape(1, C * height * width)


def _add_pe_kernel(x_ref, pe_ref, o_ref):
    # x_ref: (tile_n, tile_f); pe_ref: (1, tile_f) broadcast over the batch (sublane) axis.
    o_ref[...] = (x_ref[...] + pe_ref[...]).astype(o_ref.dtype)


_MIN_PALLAS_BYTES = 256 * 1024     # below this, XLA's fused broadcast-add wins on launch cost
_BLOCK_BYTE_BUDGET = 4 << 20       # ~4 MiB of x per block -> ~16-20 MiB double-buffered
                                   # working set, under 32 MiB scoped VMEM on v5e/v6e/v7x


def _round_down(a: int, b: int) -> int:
    return (a // b) * b


def _choose_tiles(N: int, F: int, itemsize: int):
    """Byte-budget-driven tiles: lane dim multiple of 128, batch dim full-N or multiple of 8."""
    tile_f_max = _round_down(F, 128)                 # caller guarantees F >= 128
    lanes_budget = _round_down(_BLOCK_BYTE_BUDGET // (N * itemsize), 128)
    if lanes_budget >= 128:
        # Common case: whole batch per block, grow the lane tile up to the byte budget.
        tile_n = N
        tile_f = min(tile_f_max, lanes_budget)
    else:
        # Very large batch: bound VMEM by tiling the batch too (multiple of 8).
        tile_f = min(tile_f_max, 512)
        tile_n = min(N, max(8, _round_down(_BLOCK_BYTE_BUDGET // (tile_f * itemsize), 8)))
    # v7x has 2 TensorCores: make sure the parallel grid has >= 2 tiles when possible.
    while pl.cdiv(N, tile_n) * pl.cdiv(F, tile_f) < 2 and tile_f > 128:
        tile_f = max(128, _round_down(tile_f // 2, 128))
    return tile_n, tile_f


def positional_encoder_2d(x: jnp.ndarray, pe_flat: jnp.ndarray) -> jnp.ndarray:
    """Forward pass: x + pe[:, :, :H, :W].

    x: (N, C, H, W); pe_flat: (1, C*H*W), the pre-sliced/flattened PE from prepare_pe().
    """
    N, C, H, W = x.shape
    F = C * H * W
    assert pe_flat.shape == (1, F), "pe_flat must be prepare_pe(pe, H, W, dtype)"
    itemsize = jnp.dtype(x.dtype).itemsize

    # Tiny inputs: pallas_call launch + pipeline setup dwarfs the work -> plain fused add.
    if F < 128 or N * F * itemsize < _MIN_PALLAS_BYTES:
        return x + pe_flat.astype(x.dtype).reshape(1, C, H, W)

    x2 = x.reshape(N, F)                   # metadata-only, row-major -> lane-dense 2D view
    pe2 = pe_flat.astype(x.dtype)          # no-op when prepare_pe used the right dtype

    tile_n, tile_f = _choose_tiles(N, F, itemsize)
    grid = (pl.cdiv(N, tile_n), pl.cdiv(F, tile_f))   # ragged last blocks masked by Pallas

    out2 = pl.pallas_call(
        _add_pe_kernel,
        out_shape=jax.ShapeDtypeStruct((N, F), x.dtype),
        grid_spec=pl.GridSpec(
            grid=grid,
            in_specs=[
                pl.BlockSpec((tile_n, tile_f), lambda b, t: (b, t)),   # x tile
                pl.BlockSpec((1, tile_f), lambda b, t: (0, t)),        # pe tile (batch-shared)
            ],
            out_specs=pl.BlockSpec((tile_n, tile_f), lambda b, t: (b, t)),
        ),
        compiler_params=pltpu.CompilerParams(
            dimension_semantics=("parallel", "parallel"),   # shard tiles across v7x's 2 TCs
            vmem_limit_bytes=32 * 1024 * 1024,              # explicit (v5e default is 16 MiB)
        ),
        # In-place add on the x buffer when the caller donates x; otherwise XLA inserts a
        # copy, so callers that still need x afterwards are unaffected (just not in-place).
        input_output_aliases={0: 0},
    )(x2, pe2)

    return out2.reshape(N, C, H, W)


if __name__ == "__main__":
    # Shapes consistent with the module: channels = d_model = 32, H = max_height = 8,
    # W = max_len = 600. Flattened size F = 32*8*600 = 153600 lanes (multiple of 128);
    # total 1.2 MiB, above the tiny-input short-circuit so the Pallas kernel runs.
    d_model, max_height, max_len = 32, 8, 600
    N, C, H, W = 2, d_model, 8, 600

    key = jax.random.PRNGKey(0)
    x = jax.random.normal(key, (N, C, H, W), dtype=jnp.float32)

    pe = make_pe_2d(d_model, max_height, max_len, dtype=jnp.float32)
    pe_flat = prepare_pe(pe, H, W, x.dtype)          # one-time setup (H, W static per model)

    fwd = jax.jit(positional_encoder_2d)
    out = jax.block_until_ready(fwd(x, pe_flat))

    # Reference check in plain JAX (same broadcast semantics as the PyTorch forward).
    ref = x + pe[:, :, :H, :W]
    np.testing.assert_allclose(np.asarray(out), np.asarray(ref), rtol=1e-6, atol=1e-6)

    print("KERNEL_OK")
</pallas_src>

<mosaic_0001>
module attributes {stable_mosaic.version = 11 : i64} {
  func.func @_add_pe_kernel(%arg0: i32, %arg1: i32, %arg2: memref<2x76800xf32, #tpu.memory_space<vmem>>, %arg3: memref<1x76800xf32, #tpu.memory_space<vmem>>, %arg4: memref<2x76800xf32, #tpu.memory_space<vmem>>) attributes {dimension_semantics = [#tpu.dimension_semantics<parallel>, #tpu.dimension_semantics<parallel>], iteration_bounds = array<i64: 1, 2>, scalar_prefetch = 0 : i64, scratch_operands = 0 : i64, tpu.core_type = #tpu.core_type<tc>, window_params = [{transform_indices = @transform_0, window_bounds = array<i64: 2, 76800>}, {transform_indices = @transform_1, window_bounds = array<i64: 1, 76800>}, {transform_indices = @transform_2, window_bounds = array<i64: 2, 76800>}]} {
    %c0 = arith.constant 0 : index
    %c0_0 = arith.constant 0 : index
    %0 = vector.load %arg2[%c0, %c0_0] : memref<2x76800xf32, #tpu.memory_space<vmem>>, vector<2x76800xf32>
    %c0_1 = arith.constant 0 : index
    %c0_2 = arith.constant 0 : index
    %1 = vector.load %arg3[%c0_1, %c0_2] : memref<1x76800xf32, #tpu.memory_space<vmem>>, vector<1x76800xf32>
    %2 = vector.broadcast %1 : vector<1x76800xf32> to vector<2x76800xf32>
    %3 = arith.addf %0, %2 : vector<2x76800xf32>
    %c0_3 = arith.constant 0 : index
    %c0_4 = arith.constant 0 : index
    %4 = vector.load %arg4[%c0_3, %c0_4] : memref<2x76800xf32, #tpu.memory_space<vmem>>, vector<2x76800xf32>
    tpu.vector_store %arg4[%c0_3, %c0_4], %3 {strides = array<i32>} : memref<2x76800xf32, #tpu.memory_space<vmem>>, vector<2x76800xf32>,
    return
  }
  func.func @transform_0(%arg0: i32, %arg1: i32) -> (i32, i32) {
    %c0_i32 = arith.constant 0 : i32
    return %arg0, %arg1 : i32, i32
  }
  func.func @transform_1(%arg0: i32, %arg1: i32) -> (i32, i32) {
    %c0_i32 = arith.constant 0 : i32
    %c0_i32_0 = arith.constant 0 : i32
    return %c0_i32, %arg1 : i32, i32
  }
  func.func @transform_2(%arg0: i32, %arg1: i32) -> (i32, i32) {
    %c0_i32 = arith.constant 0 : i32
    return %arg0, %arg1 : i32, i32
  }
}

</mosaic_0001>

<bundles_post_ra>
// kernel: positional_encoder_2d.1
= control target key start
LH: loop header
LB: loop body
LE: loop exit
PB: predicated region body
PF: predicated region fallthrough
CT: control target
= control target key end

     0   :  { %s6072_s9 = smov 0   ;;  %s6074_s10 = smov 0   ;;  %s7865_s0 = inlined_call_operand.vmem [shape: f32[2,153600], index: 0, kind: input, shape index: {}, may-alias: {0,2}]   ;;  %s7866_s1 = inlined_call_operand.vmem [shape: f32[1,153600], index: 1, kind: input, shape index: {}]   ;;  %s7867_s2 = inlined_call_operand.vmem [shape: f32[2,153600], index: 2, kind: output, shape index: {}, may-alias: {0,2}]  }
   0x1   :  { %s6076_s11 = smov 0  }
   0x2 LB: > { %s21_s12 = sadd.s32 1, %s6050_s10  ;;  %p6002_p0 = scmp.ge.s32.totalorder %s6054_s11, 1  ;;  %s6054_s11 = sphi %s6076_s11, %s12_s11   ;;  %s6050_s10 = sphi %s6074_s10, %s8091_s10   ;;  %s6046_s9 = sphi %s6072_s9, %s8090_s9  }
   0x3   : > { %p22_p1 = scmp.ge.s32.totalorder %s21_s12, 2  ;;  %p143_p2 = scmp.lt.s32.totalorder %s6054_s11, 3 }
   0x5   : > { %s8093_s12 = smov (%p22_p1, %s21_s12), 0  ;;  %p144_p3 = pnand %p6002_p0, %p143_p2 }
   0x7   : > { %147 = sbr.rel (%p144_p3) target bundleno = 463 (0x1cf), region = 28 }
   0xe   : > { %s177_s13 = smul.u32 600, %s6046_s9  ;;  %v502_v0 = vlaneseq  ;;  %v6056_v2 = vmov 1983009808  }
   0xf   : > { %v2905_v3 = vunpack.c.l.s4 %v6056_v2 }
  0x10   : > { %p180_p4 = scmp.lt.s32.totalorder %s177_s13, 1199  ;;  %v503_v1 = vshrl.u32 %v502_v0, 7 }
  0x11   : > { %v2906_v13 = vunpack.c.0.s8 %v2905_v3 }
  0x12   : > { %s8095_s13 = smov (!%p180_p4, %s177_s13), 1199  ;;  %v6098_v4 = vsub.s32 0, %v503_v1  ;;  %v6100_v5 = vsub.s32 1, %v503_v1  ;;  %v6102_v6 = vsub.s32 2, %v503_v1  ;;  %v6104_v7 = vsub.s32 3, %v503_v1 }
  0x13   : > { %s6096_s16 = scalar_lea.vmem %s7866_s1, %s8095_s13  ;;  %v6107_v9 = vsub.s32 4, %v503_v1  ;;  %v6109_v10 = vsub.s32 5, %v503_v1  ;;  %v6111_v11 = vsub.s32 6, %v503_v1  ;;  %v6113_v12 = vsub.s32 7, %v503_v1  ;;  %s6003_s17 = sshll.u32 %s8095_s13, 1 }
  0x14   : > { %v352_v8 = vld [vmem:[%s6096_s16] sm:$0xff]  ;;  %v353_v14 = vld [vmem:[%s6096_s16 + $0x8] sm:$0xff]  ;;  %v354_v23 = vld [vmem:[%s6096_s16 + $0x10] sm:$0xff]  ;;  %v6141_v40 = vsub.s32 %v2906_v13, %v503_v1  ;;  %s6161_s20 = scalar_lea.vmem %s7865_s0, %s6003_s17  ;;  %s6186_s23 = scalar_lea.vmem %s7867_s2, %s6003_s17 }
  0x15   : > { %v505_v15 = vrot.slane %v352_v8, %v6098_v4  ;;  %v509_v16 = vrot.slane %v352_v8, %v6100_v5  ;;  %v513_v17 = vrot.slane %v352_v8, %v6102_v6  ;;  %v517_v18 = vrot.slane %v352_v8, %v6104_v7  ;;  %v202_v3 = vld [vmem:[%s6161_s20] sm:$0xff]  ;;  %v204_v13 = vld [vmem:[%s6161_s20 + $0x10] sm:$0xff] }
  0x16   : > { %v521_v19 = vrot.slane %v352_v8, %v6107_v9  ;;  %v525_v20 = vrot.slane %v352_v8, %v6109_v10  ;;  %v529_v21 = vrot.slane %v352_v8, %v6111_v11  ;;  %v533_v22 = vrot.slane %v352_v8, %v6113_v12  ;;  %v203_v8 = vld [vmem:[%s6161_s20 + $0x8] sm:$0xff] }
  0x17   : > { %v537_v24 = vrot.slane %v353_v14, %v6098_v4  ;;  %v541_v25 = vrot.slane %v353_v14, %v6100_v5  ;;  %v545_v26 = vrot.slane %v353_v14, %v6102_v6  ;;  %v549_v27 = vrot.slane %v353_v14, %v6104_v7 }
  0x18   : > { %v553_v28 = vrot.slane %v353_v14, %v6107_v9  ;;  %v557_v29 = vrot.slane %v353_v14, %v6109_v10  ;;  %v561_v30 = vrot.slane %v353_v14, %v6111_v11  ;;  %v565_v31 = vrot.slane %v353_v14, %v6113_v12 }
  0x19   : > { %v569_v32 = vrot.slane %v354_v23, %v6098_v4  ;;  %v573_v33 = vrot.slane %v354_v23, %v6100_v5  ;;  %v577_v34 = vrot.slane %v354_v23, %v6102_v6  ;;  %v581_v35 = vrot.slane %v354_v23, %v6104_v7 }
  0x1a   : > { %v585_v36 = vrot.slane %v354_v23, %v6107_v9  ;;  %v589_v37 = vrot.slane %v354_v23, %v6109_v10  ;;  %v593_v38 = vrot.slane %v354_v23, %v6111_v11  ;;  %v597_v39 = vrot.slane %v354_v23, %v6113_v12 }
  0x1b   : > { %v2902_v41 = vcombine.low %v505_v15, %v509_v16  ;;  %v2903_v42 = vcombine.low %v513_v17, %v517_v18  ;;  %v2919_v43 = vcombine.low %v521_v19, %v525_v20  ;;  %v2920_v44 = vcombine.low %v529_v21, %v533_v22  ;;  %v205_v18 = vld [vmem:[%s6161_s20 + $0x18] sm:$0xff]  ;;  %v206_v19 = vld [vmem:[%s6161_s20 + $0x20] sm:$0xff]  ;;  %v207_v20 = vld [vmem:[%s6161_s20 + $0x28] sm:$0xff] }
  0x1c   : > { %v2936_v45 = vcombine.low %v537_v24, %v541_v25  ;;  %v2937_v46 = vcombine.low %v545_v26, %v549_v27  ;;  %v2953_v47 = vcombine.low %v553_v28, %v557_v29  ;;  %v2954_v48 = vcombine.low %v561_v30, %v565_v31  ;;  %v6189_v27 = vld [vmem:[%s6161_s20 + $0x30] sm:$0xff]  ;;  %v6192_v28 = vld [vmem:[%s6161_s20 + $0x38] sm:$0xff]  ;;  %v6195_v29 = vld [vmem:[%s6161_s20 + $0x40] sm:$0xff] }
  0x1d   : > { %v2970_v49 = vcombine.low %v569_v32, %v573_v33  ;;  %v2971_v50 = vcombine.low %v577_v34, %v581_v35  ;;  %v2987_v51 = vcombine.low %v585_v36, %v589_v37  ;;  %v2988_v52 = vcombine.low %v593_v38, %v597_v39  ;;  %v6198_v30 = vld [vmem:[%s6161_s20 + $0x48] sm:$0xff]  ;;  %v6201_v31 = vld [vmem:[%s6161_s20 + $0x50] sm:$0xff]  ;;  %v6204_v32 = vld [vmem:[%s6161_s20 + $0x58] sm:$0xff] }
  0x1e   : > { %v2910_v53 = vrot.slane %v2902_v41, %v6141_v40  ;;  %v2917_v54 = vrot.slane %v2903_v42, %v6141_v40  ;;  %v2927_v55 = vrot.slane %v2919_v43, %v6141_v40  ;;  %v2934_v56 = vrot.slane %v2920_v44, %v6141_v40  ;;  %v6207_v33 = vld [vmem:[%s6161_s20 + $0x60] sm:$0xff]  ;;  %v6210_v34 = vld [vmem:[%s6161_s20 + $0x68] sm:$0xff]  ;;  %v6213_v35 = vld [vmem:[%s6161_s20 + $0x70] sm:$0xff] }
  0x1f   : > { %v2944_v57 = vrot.slane %v2936_v45, %v6141_v40  ;;  %v2951_v58 = vrot.slane %v2937_v46, %v6141_v40  ;;  %v2961_v59 = vrot.slane %v2953_v47, %v6141_v40  ;;  %v2968_v60 = vrot.slane %v2954_v48, %v6141_v40  ;;  %v6216_v36 = vld [vmem:[%s6161_s20 + $0x78] sm:$0xff]  ;;  %v6219_v37 = vld [vmem:[%s6161_s20 + $0x80] sm:$0xff]  ;;  %v6222_v38 = vld [vmem:[%s6161_s20 + $0x88] sm:$0xff] }
  0x20   : > { %v2978_v61 = vrot.slane %v2970_v49, %v6141_v40  ;;  %v2985_v62 = vrot.slane %v2971_v50, %v6141_v40  ;;  %v2995_v63 = vrot.slane %v2987_v51, %v6141_v40  ;;  %v3002_v0 = vrot.slane %v2988_v52, %v6141_v40  ;;  %v6225_v39 = vld [vmem:[%s6161_s20 + $0x90] sm:$0xff]  ;;  %v6228_v41 = vld [vmem:[%s6161_s20 + $0x98] sm:$0xff]  ;;  %v6231_v42 = vld [vmem:[%s6161_s20 + $0xa0] sm:$0xff] }
  0x21   : > { %v2918_v1 = vcombine.low %v2910_v53, %v2917_v54  ;;  %v2935_v2 = vcombine.low %v2927_v55, %v2934_v56  ;;  %v2952_v14 = vcombine.low %v2944_v57, %v2951_v58  ;;  %v2969_v15 = vcombine.low %v2961_v59, %v2968_v60  ;;  %v6234_v43 = vld [vmem:[%s6161_s20 + $0xa8] sm:$0xff]  ;;  %v6237_v44 = vld [vmem:[%s6161_s20 + $0xb0] sm:$0xff]  ;;  %v6240_v45 = vld [vmem:[%s6161_s20 + $0xb8] sm:$0xff] }
  0x22   : > { %v2986_v16 = vcombine.low %v2978_v61, %v2985_v62  ;;  %v3003_v17 = vcombine.low %v2995_v63, %v3002_v0  ;;  %v6243_v46 = vld [vmem:[%s6161_s20 + $0xc0] sm:$0xff]  ;;  %v6246_v47 = vld [vmem:[%s6161_s20 + $0xc8] sm:$0xff]  ;;  %v6249_v48 = vld [vmem:[%s6161_s20 + $0xd0] sm:$0xff] }
  0x23   : > { %v6169_v21 = vadd.f32 %v2918_v1, %v202_v3  ;;  %v6171_v22 = vadd.f32 %v2935_v2, %v203_v8  ;;  %v6173_v23 = vadd.f32 %v2952_v14, %v204_v13  ;;  %v6175_v24 = vadd.f32 %v2969_v15, %v205_v18  ;;  %v6252_v49 = vld [vmem:[%s6161_s20 + $0xd8] sm:$0xff]  ;;  %v6255_v50 = vld [vmem:[%s6161_s20 + $0xe0] sm:$0xff]  ;;  %v6258_v51 = vld [vmem:[%s6161_s20 + $0xe8] sm:$0xff] }
  0x24   : > { %v6177_v25 = vadd.f32 %v2986_v16, %v206_v19  ;;  %v6179_v26 = vadd.f32 %v3003_v17, %v207_v20  ;;  %v6261_v52 = vld [vmem:[%s6161_s20 + $0xf0] sm:$0xff]  ;;  %v6264_v53 = vld [vmem:[%s6161_s20 + $0xf8] sm:$0xff]  ;;  %v6267_v54 = vld [vmem:[%s6161_s20 + $0x100] sm:$0xff] }
  0x25   : > { %v6270_v55 = vld [vmem:[%s6161_s20 + $0x108] sm:$0xff]  ;;  %v6273_v56 = vld [vmem:[%s6161_s20 + $0x110] sm:$0xff]  ;;  %v6276_v57 = vld [vmem:[%s6161_s20 + $0x118] sm:$0xff] }
  0x26   : > { %v6279_v58 = vld [vmem:[%s6161_s20 + $0x120] sm:$0xff]  ;;  %v6282_v59 = vld [vmem:[%s6161_s20 + $0x128] sm:$0xff]  ;;  %v6285_v60 = vld [vmem:[%s6161_s20 + $0x130] sm:$0xff] }
  0x27   : > { %v6288_v61 = vld [vmem:[%s6161_s20 + $0x138] sm:$0xff]  ;;  %v6291_v62 = vld [vmem:[%s6161_s20 + $0x140] sm:$0xff]  ;;  %v6294_v63 = vld [vmem:[%s6161_s20 + $0x148] sm:$0xff] }
  0x28   : > { %7868 = vst [vmem:[#allocation2_spill] sm:$0xff] %v6288_v61  ;;  %7869 = vst [vmem:[#allocation3_spill] sm:$0xff] %v6291_v62  ;;  %v6297_v0 = vld [vmem:[%s6161_s20 + $0x150] sm:$0xff]  ;;  %v6300_v1 = vld [vmem:[%s6161_s20 + $0x158] sm:$0xff] }
  0x29   : > { %7870 = vst [vmem:[#allocation4_spill] sm:$0xff] %v6294_v63  ;;  %7871 = vst [vmem:[#allocation5_spill] sm:$0xff] %v6297_v0  ;;  %v6303_v2 = vld [vmem:[%s6161_s20 + $0x160] sm:$0xff]  ;;  %v6306_v3 = vld [vmem:[%s6161_s20 + $0x168] sm:$0xff] }
  0x2a   : > { %7872 = vst [vmem:[#allocation6_spill] sm:$0xff] %v6300_v1  ;;  %7873 = vst [vmem:[#allocation7_spill] sm:$0xff] %v6303_v2  ;;  %v6309_v8 = vld [vmem:[%s6161_s20 + $0x170] sm:$0xff]  ;;  %v6312_v13 = vld [vmem:[%s6161_s20 + $0x178] sm:$0xff] }
  0x2b   : > { %7874 = vst [vmem:[#allocation8_spill] sm:$0xff] %v6306_v3  ;;  %7875 = vst [vmem:[#allocation9_spill] sm:$0xff] %v6309_v8  ;;  %v6315_v14 = vld [vmem:[%s6161_s20 + $0x180] sm:$0xff]  ;;  %v6318_v15 = vld [vmem:[%s6161_s20 + $0x188] sm:$0xff] }
  0x2c   : > { %7876 = vst [vmem:[#allocation10_spill] sm:$0xff] %v6312_v13  ;;  %7877 = vst [vmem:[#allocation11_spill] sm:$0xff] %v6315_v14  ;;  %v6321_v16 = vld [vmem:[%s6161_s20 + $0x190] sm:$0xff]  ;;  %v6324_v17 = vld [vmem:[%s6161_s20 + $0x198] sm:$0xff] }
  0x2d   : > { %7878 = vst [vmem:[#allocation12_spill] sm:$0xff] %v6318_v15  ;;  %7879 = vst [vmem:[#allocation13_spill] sm:$0xff] %v6321_v16  ;;  %v6327_v18 = vld [vmem:[%s6161_s20 + $0x1a0] sm:$0xff]  ;;  %v6330_v19 = vld [vmem:[%s6161_s20 + $0x1a8] sm:$0xff] }
  0x2e   : > { %7880 = vst [vmem:[#allocation14_spill] sm:$0xff] %v6324_v17  ;;  %7881 = vst [vmem:[#allocation15_spill] sm:$0xff] %v6327_v18  ;;  %v6333_v20 = vld [vmem:[%s6161_s20 + $0x1b0] sm:$0xff]  ;;  %v6336_v14 = vld [vmem:[%s6161_s20 + $0x1b8] sm:$0xff] }
  0x2f   : > { %7882 = vst [vmem:[#allocation16_spill] sm:$0xff] %v6330_v19  ;;  %7883 = vst [vmem:[#allocation17_spill] sm:$0xff] %v6333_v20  ;;  %v6339_v15 = vld [vmem:[%s6161_s20 + $0x1c0] sm:$0xff]  ;;  %v6342_v16 = vld [vmem:[%s6161_s20 + $0x1c8] sm:$0xff] }
  0x30   : > { %7884 = vst [vmem:[#allocation18_spill] sm:$0xff] %v6336_v14  ;;  %7885 = vst [vmem:[#allocation19_spill] sm:$0xff] %v6339_v15  ;;  %v6345_v17 = vld [vmem:[%s6161_s20 + $0x1d0] sm:$0xff]  ;;  %v6348_v18 = vld [vmem:[%s6161_s20 + $0x1d8] sm:$0xff] }
  0x31   : > { %7886 = vst [vmem:[#allocation20_spill] sm:$0xff] %v6342_v16  ;;  %7887 = vst [vmem:[#allocation21_spill] sm:$0xff] %v6345_v17  ;;  %v6351_v19 = vld [vmem:[%s6161_s20 + $0x1e0] sm:$0xff]  ;;  %v6354_v20 = vld [vmem:[%s6161_s20 + $0x1e8] sm:$0xff] }
  0x32   : > { %7888 = vst [vmem:[#allocation22_spill] sm:$0xff] %v6348_v18  ;;  %7889 = vst [vmem:[#allocation23_spill] sm:$0xff] %v6351_v19  ;;  %v6357_v14 = vld [vmem:[%s6161_s20 + $0x1f0] sm:$0xff]  ;;  %v6360_v15 = vld [vmem:[%s6161_s20 + $0x1f8] sm:$0xff] }
  0x33   : > { %7890 = vst [vmem:[#allocation24_spill] sm:$0xff] %v6354_v20  ;;  %7891 = vst [vmem:[#allocation25_spill] sm:$0xff] %v6357_v14  ;;  %v6363_v16 = vld [vmem:[%s6161_s20 + $0x200] sm:$0xff]  ;;  %v6366_v17 = vld [vmem:[%s6161_s20 + $0x208] sm:$0xff] }
  0x34   : > { %7892 = vst [vmem:[#allocation26_spill] sm:$0xff] %v6360_v15  ;;  %7893 = vst [vmem:[#allocation27_spill] sm:$0xff] %v6363_v16  ;;  %v6369_v18 = vld [vmem:[%s6161_s20 + $0x210] sm:$0xff]  ;;  %v6372_v19 = vld [vmem:[%s6161_s20 + $0x218] sm:$0xff] }
  0x35   : > { %7894 = vst [vmem:[#allocation28_spill] sm:$0xff] %v6366_v17  ;;  %7895 = vst [vmem:[#allocation29_spill] sm:$0xff] %v6369_v18  ;;  %v6375_v20 = vld [vmem:[%s6161_s20 + $0x220] sm:$0xff]  ;;  %v6378_v14 = vld [vmem:[%s6161_s20 + $0x228] sm:$0xff] }
  0x36   : > { %7896 = vst [vmem:[#allocation30_spill] sm:$0xff] %v6372_v19  ;;  %7897 = vst [vmem:[#allocation31_spill] sm:$0xff] %v6375_v20  ;;  %v6381_v15 = vld [vmem:[%s6161_s20 + $0x230] sm:$0xff]  ;;  %v6384_v16 = vld [vmem:[%s6161_s20 + $0x238] sm:$0xff] }
  0x37   : > { %7898 = vst [vmem:[#allocation32_spill] sm:$0xff] %v6378_v14  ;;  %7899 = vst [vmem:[#allocation33_spill] sm:$0xff] %v6381_v15  ;;  %v6387_v17 = vld [vmem:[%s6161_s20 + $0x240] sm:$0xff]  ;;  %v6390_v18 = vld [vmem:[%s6161_s20 + $0x248] sm:$0xff] }
  0x38   : > { %7900 = vst [vmem:[#allocation34_spill] sm:$0xff] %v6384_v16  ;;  %7901 = vst [vmem:[#allocation35_spill] sm:$0xff] %v6387_v17  ;;  %v6393_v19 = vld [vmem:[%s6161_s20 + $0x250] sm:$0xff]  ;;  %v6396_v20 = vld [vmem:[%s6161_s20 + $0x258] sm:$0xff] }
  0x39   : > { %7902 = vst [vmem:[#allocation36_spill] sm:$0xff] %v6390_v18  ;;  %7903 = vst [vmem:[#allocation37_spill] sm:$0xff] %v6393_v19  ;;  %v6399_v14 = vld [vmem:[%s6161_s20 + $0x260] sm:$0xff]  ;;  %v6402_v15 = vld [vmem:[%s6161_s20 + $0x268] sm:$0xff] }
  0x3a   : > { %7904 = vst [vmem:[#allocation38_spill] sm:$0xff] %v6396_v20  ;;  %7905 = vst [vmem:[#allocation39_spill] sm:$0xff] %v6399_v14  ;;  %v6405_v16 = vld [vmem:[%s6161_s20 + $0x270] sm:$0xff]  ;;  %v6408_v17 = vld [vmem:[%s6161_s20 + $0x278] sm:$0xff] }
  0x3b   : > { %7906 = vst [vmem:[#allocation40_spill] sm:$0xff] %v6402_v15  ;;  %7907 = vst [vmem:[#allocation41_spill] sm:$0xff] %v6405_v16  ;;  %v6411_v18 = vld [vmem:[%s6161_s20 + $0x280] sm:$0xff]  ;;  %v6414_v19 = vld [vmem:[%s6161_s20 + $0x288] sm:$0xff] }
  0x3c   : > { %7908 = vst [vmem:[#allocation42_spill] sm:$0xff] %v6408_v17  ;;  %7909 = vst [vmem:[#allocation43_spill] sm:$0xff] %v6411_v18  ;;  %v6417_v20 = vld [vmem:[%s6161_s20 + $0x290] sm:$0xff]  ;;  %v6420_v14 = vld [vmem:[%s6161_s20 + $0x298] sm:$0xff] }
  0x3d   : > { %7910 = vst [vmem:[#allocation44_spill] sm:$0xff] %v6414_v19  ;;  %7911 = vst [vmem:[#allocation45_spill] sm:$0xff] %v6417_v20  ;;  %v6423_v15 = vld [vmem:[%s6161_s20 + $0x2a0] sm:$0xff]  ;;  %v6426_v16 = vld [vmem:[%s6161_s20 + $0x2a8] sm:$0xff] }
  0x3e   : > { %7912 = vst [vmem:[#allocation46_spill] sm:$0xff] %v6420_v14  ;;  %7913 = vst [vmem:[#allocation47_spill] sm:$0xff] %v6423_v15  ;;  %v6429_v17 = vld [vmem:[%s6161_s20 + $0x2b0] sm:$0xff]  ;;  %v6432_v18 = vld [vmem:[%s6161_s20 + $0x2b8] sm:$0xff] }
  0x3f   : > { %7914 = vst [vmem:[#allocation48_spill] sm:$0xff] %v6426_v16  ;;  %7915 = vst [vmem:[#allocation49_spill] sm:$0xff] %v6429_v17  ;;  %v6435_v19 = vld [vmem:[%s6161_s20 + $0x2c0] sm:$0xff]  ;;  %v6438_v20 = vld [vmem:[%s6161_s20 + $0x2c8] sm:$0xff] }
  0x40   : > { %7916 = vst [vmem:[#allocation50_spill] sm:$0xff] %v6432_v18  ;;  %7917 = vst [vmem:[#allocation51_spill] sm:$0xff] %v6435_v19  ;;  %v6441_v14 = vld [vmem:[%s6161_s20 + $0x2d0] sm:$0xff]  ;;  %v6444_v15 = vld [vmem:[%s6161_s20 + $0x2d8] sm:$0xff] }
  0x41   : > { %7918 = vst [vmem:[#allocation52_spill] sm:$0xff] %v6438_v20  ;;  %7919 = vst [vmem:[#allocation53_spill] sm:$0xff] %v6441_v14  ;;  %v6447_v16 = vld [vmem:[%s6161_s20 + $0x2e0] sm:$0xff]  ;;  %v6450_v17 = vld [vmem:[%s6161_s20 + $0x2e8] sm:$0xff] }
  0x42   : > { %7920 = vst [vmem:[#allocation54_spill] sm:$0xff] %v6444_v15  ;;  %7921 = vst [vmem:[#allocation55_spill] sm:$0xff] %v6447_v16  ;;  %v6453_v18 = vld [vmem:[%s6161_s20 + $0x2f0] sm:$0xff]  ;;  %v6456_v19 = vld [vmem:[%s6161_s20 + $0x2f8] sm:$0xff] }
  0x43   : > { %7922 = vst [vmem:[#allocation56_spill] sm:$0xff] %v6450_v17  ;;  %7923 = vst [vmem:[#allocation57_spill] sm:$0xff] %v6453_v18  ;;  %v6459_v20 = vld [vmem:[%s6161_s20 + $0x300] sm:$0xff]  ;;  %v6462_v14 = vld [vmem:[%s6161_s20 + $0x308] sm:$0xff] }
  0x44   : > { %7924 = vst [vmem:[#allocation58_spill] sm:$0xff] %v6456_v19  ;;  %7925 = vst [vmem:[#allocation59_spill] sm:$0xff] %v6459_v20  ;;  %v6465_v15 = vld [vmem:[%s6161_s20 + $0x310] sm:$0xff]  ;;  %v6468_v16 = vld [vmem:[%s6161_s20 + $0x318] sm:$0xff] }
  0x45   : > { %7926 = vst [vmem:[#allocation60_spill] sm:$0xff] %v6462_v14  ;;  %7927 = vst [vmem:[#allocation61_spill] sm:$0xff] %v6465_v15  ;;  %v6471_v17 = vld [vmem:[%s6161_s20 + $0x320] sm:$0xff]  ;;  %v6474_v18 = vld [vmem:[%s6161_s20 + $0x328] sm:$0xff] }
  0x46   : > { %7928 = vst [vmem:[#allocation62_spill] sm:$0xff] %v6468_v16  ;;  %7929 = vst [vmem:[#allocation63_spill] sm:$0xff] %v6471_v17  ;;  %v6477_v19 = vld [vmem:[%s6161_s20 + $0x330] sm:$0xff]  ;;  %v6480_v20 = vld [vmem:[%s6161_s20 + $0x338] sm:$0xff] }
  0x47   : > { %7930 = vst [vmem:[#allocation64_spill] sm:$0xff] %v6474_v18  ;;  %7931 = vst [vmem:[#allocation65_spill] sm:$0xff] %v6477_v19  ;;  %v6483_v14 = vld [vmem:[%s6161_s20 + $0x340] sm:$0xff]  ;;  %v6486_v15 = vld [vmem:[%s6161_s20 + $0x348] sm:$0xff] }
  0x48   : > { %7932 = vst [vmem:[#allocation66_spill] sm:$0xff] %v6480_v20  ;;  %7933 = vst [vmem:[#allocation67_spill] sm:$0xff] %v6483_v14  ;;  %v6489_v16 = vld [vmem:[%s6161_s20 + $0x350] sm:$0xff]  ;;  %v6492_v17 = vld [vmem:[%s6161_s20 + $0x358] sm:$0xff] }
  0x49   : > { %7934 = vst [vmem:[#allocation68_spill] sm:$0xff] %v6486_v15  ;;  %7935 = vst [vmem:[#allocation69_spill] sm:$0xff] %v6489_v16  ;;  %v6495_v18 = vld [vmem:[%s6161_s20 + $0x360] sm:$0xff]  ;;  %v6498_v19 = vld [vmem:[%s6161_s20 + $0x368] sm:$0xff] }
  0x4a   : > { %7936 = vst [vmem:[#allocation70_spill] sm:$0xff] %v6492_v17  ;;  %7937 = vst [vmem:[#allocation71_spill] sm:$0xff] %v6495_v18  ;;  %v6501_v20 = vld [vmem:[%s6161_s20 + $0x370] sm:$0xff]  ;;  %v6504_v14 = vld [vmem:[%s6161_s20 + $0x378] sm:$0xff] }
  0x4b   : > { %7938 = vst [vmem:[#allocation72_spill] sm:$0xff] %v6498_v19  ;;  %7939 = vst [vmem:[#allocation73_spill] sm:$0xff] %v6501_v20  ;;  %v6507_v15 = vld [vmem:[%s6161_s20 + $0x380] sm:$0xff]  ;;  %v6510_v16 = vld [vmem:[%s6161_s20 + $0x388] sm:$0xff] }
  0x4c   : > { %7940 = vst [vmem:[#allocation74_spill] sm:$0xff] %v6504_v14  ;;  %7941 = vst [vmem:[#allocation75_spill] sm:$0xff] %v6507_v15  ;;  %v6513_v17 = vld [vmem:[%s6161_s20 + $0x390] sm:$0xff]  ;;  %v6516_v18 = vld [vmem:[%s6161_s20 + $0x398] sm:$0xff] }
  0x4d   : > { %7942 = vst [vmem:[#allocation76_spill] sm:$0xff] %v6510_v16  ;;  %7943 = vst [vmem:[#allocation77_spill] sm:$0xff] %v6513_v17  ;;  %v6519_v19 = vld [vmem:[%s6161_s20 + $0x3a0] sm:$0xff]  ;;  %v6522_v20 = vld [vmem:[%s6161_s20 + $0x3a8] sm:$0xff] }
  0x4e   : > { %7944 = vst [vmem:[#allocation78_spill] sm:$0xff] %v6516_v18  ;;  %7945 = vst [vmem:[#allocation79_spill] sm:$0xff] %v6519_v19  ;;  %v6525_v14 = vld [vmem:[%s6161_s20 + $0x3b0] sm:$0xff]  ;;  %v6528_v15 = vld [vmem:[%s6161_s20 + $0x3b8] sm:$0xff] }
  0x4f   : > { %7946 = vst [vmem:[#allocation80_spill] sm:$0xff] %v6522_v20  ;;  %7947 = vst [vmem:[#allocation81_spill] sm:$0xff] %v6525_v14  ;;  %v6531_v16 = vld [vmem:[%s6161_s20 + $0x3c0] sm:$0xff]  ;;  %v6534_v17 = vld [vmem:[%s6161_s20 + $0x3c8] sm:$0xff] }
  0x50   : > { %7948 = vst [vmem:[#allocation82_spill] sm:$0xff] %v6528_v15  ;;  %7949 = vst [vmem:[#allocation83_spill] sm:$0xff] %v6531_v16  ;;  %v6537_v18 = vld [vmem:[%s6161_s20 + $0x3d0] sm:$0xff]  ;;  %v6540_v19 = vld [vmem:[%s6161_s20 + $0x3d8] sm:$0xff] }
  0x51   : > { %7950 = vst [vmem:[#allocation84_spill] sm:$0xff] %v6534_v17  ;;  %7951 = vst [vmem:[#allocation85_spill] sm:$0xff] %v6537_v18  ;;  %v6543_v20 = vld [vmem:[%s6161_s20 + $0x3e0] sm:$0xff]  ;;  %v6546_v14 = vld [vmem:[%s6161_s20 + $0x3e8] sm:$0xff] }
  0x52   : > { %7952 = vst [vmem:[#allocation86_spill] sm:$0xff] %v6540_v19  ;;  %7953 = vst [vmem:[#allocation87_spill] sm:$0xff] %v6543_v20  ;;  %v6549_v15 = vld [vmem:[%s6161_s20 + $0x3f0] sm:$0xff]  ;;  %v6552_v16 = vld [vmem:[%s6161_s20 + $0x3f8] sm:$0xff] }
  0x53   : > { %7954 = vst [vmem:[#allocation88_spill] sm:$0xff] %v6546_v14  ;;  %7955 = vst [vmem:[#allocation89_spill] sm:$0xff] %v6549_v15  ;;  %v6555_v17 = vld [vmem:[%s6161_s20 + $0x400] sm:$0xff]  ;;  %v6558_v18 = vld [vmem:[%s6161_s20 + $0x408] sm:$0xff] }
  0x54   : > { %7956 = vst [vmem:[#allocation90_spill] sm:$0xff] %v6552_v16  ;;  %7957 = vst [vmem:[#allocation91_spill] sm:$0xff] %v6555_v17  ;;  %v6561_v19 = vld [vmem:[%s6161_s20 + $0x410] sm:$0xff]  ;;  %v6564_v20 = vld [vmem:[%s6161_s20 + $0x418] sm:$0xff] }
  0x55   : > { %7958 = vst [vmem:[#allocation92_spill] sm:$0xff] %v6558_v18  ;;  %7959 = vst [vmem:[#allocation93_spill] sm:$0xff] %v6561_v19  ;;  %v6567_v14 = vld [vmem:[%s6161_s20 + $0x420] sm:$0xff]  ;;  %v6570_v15 = vld [vmem:[%s6161_s20 + $0x428] sm:$0xff] }
  0x56   : > { %7960 = vst [vmem:[#allocation94_spill] sm:$0xff] %v6564_v20  ;;  %7961 = vst [vmem:[#allocation95_spill] sm:$0xff] %v6567_v14  ;;  %v6573_v16 = vld [vmem:[%s6161_s20 + $0x430] sm:$0xff]  ;;  %v6576_v17 = vld [vmem:[%s6161_s20 + $0x438] sm:$0xff] }
  0x57   : > { %7962 = vst [vmem:[#allocation96_spill] sm:$0xff] %v6570_v15  ;;  %7963 = vst [vmem:[#allocation97_spill] sm:$0xff] %v6573_v16  ;;  %v6579_v18 = vld [vmem:[%s6161_s20 + $0x440] sm:$0xff]  ;;  %v6582_v19 = vld [vmem:[%s6161_s20 + $0x448] sm:$0xff] }
  0x58   : > { %7964 = vst [vmem:[#allocation98_spill] sm:$0xff] %v6576_v17  ;;  %7965 = vst [vmem:[#allocation99_spill] sm:$0xff] %v6579_v18  ;;  %v6585_v20 = vld [vmem:[%s6161_s20 + $0x450] sm:$0xff]  ;;  %v6588_v14 = vld [vmem:[%s6161_s20 + $0x458] sm:$0xff] }
  0x59   : > { %7966 = vst [vmem:[#allocation100_spill] sm:$0xff] %v6582_v19  ;;  %7967 = vst [vmem:[#allocation101_spill] sm:$0xff] %v6585_v20  ;;  %v6591_v15 = vld [vmem:[%s6161_s20 + $0x460] sm:$0xff]  ;;  %v6594_v16 = vld [vmem:[%s6161_s20 + $0x468] sm:$0xff] }
  0x5a   : > { %7968 = vst [vmem:[#allocation102_spill] sm:$0xff] %v6588_v14  ;;  %7969 = vst [vmem:[#allocation103_spill] sm:$0xff] %v6591_v15  ;;  %v6597_v17 = vld [vmem:[%s6161_s20 + $0x470] sm:$0xff]  ;;  %v6600_v13 = vld [vmem:[%s6161_s20 + $0x478] sm:$0xff] }
  0x5b   : > { %7970 = vst [vmem:[#allocation104_spill] sm:$0xff] %v6594_v16  ;;  %7971 = vst [vmem:[#allocation105_spill] sm:$0xff] %v6597_v17  ;;  %v6603_v18 = vld [vmem:[%s6161_s20 + $0x480] sm:$0xff]  ;;  %v6606_v19 = vld [vmem:[%s6161_s20 + $0x488] sm:$0xff] }
  0x5c   : > { %7972 = vst [vmem:[#allocation106_spill] sm:$0xff] %v6600_v13  ;;  %7973 = vst [vmem:[#allocation107_spill] sm:$0xff] %v6603_v18  ;;  %v6609_v8 = vld [vmem:[%s6161_s20 + $0x490] sm:$0xff]  ;;  %v6612_v20 = vld [vmem:[%s6161_s20 + $0x498] sm:$0xff] }
  0x5d   : > { %7974 = vst [vmem:[#allocation108_spill] sm:$0xff] %v6606_v19  ;;  %7975 = vst [vmem:[#allocation109_spill] sm:$0xff] %v6609_v8  ;;  %v6615_v14 = vld [vmem:[%s6161_s20 + $0x4a0] sm:$0xff]  ;;  %v6618_v3 = vld [vmem:[%s6161_s20 + $0x4a8] sm:$0xff] }
  0x5e   : > { %7976 = vst [vmem:[#allocation110_spill] sm:$0xff] %v6612_v20  ;;  %7977 = vst [vmem:[#allocation111_spill] sm:$0xff] %v6615_v14  ;;  %v355_v19 = vld [vmem:[%s6096_s16 + $0x18] sm:$0xff]  ;;  %v356_v8 = vld [vmem:[%s6096_s16 + $0x20] sm:$0xff] }
  0x5f   : > { %7978 = vst [vmem:[#allocation112_spill] sm:$0xff] %v6618_v3  ;;  %5752 = vst [vmem:[%s6186_s23] sm:$0xff] %v6169_v21  ;;  %v601_v20 = vrot.slane %v355_v19, %v6098_v4  ;;  %v605_v14 = vrot.slane %v355_v19, %v6100_v5  ;;  %v609_v3 = vrot.slane %v355_v19, %v6102_v6 }
  0x60   : > { %5753 = vst [vmem:[%s6186_s23 + $0x8] sm:$0xff] %v6171_v22  ;;  %5754 = vst [vmem:[%s6186_s23 + $0x10] sm:$0xff] %v6173_v23  ;;  %v613_v21 = vrot.slane %v355_v19, %v6104_v7  ;;  %v617_v22 = vrot.slane %v355_v19, %v6107_v9  ;;  %v621_v23 = vrot.slane %v355_v19, %v6109_v10 }
  0x61   : > { %5755 = vst [vmem:[%s6186_s23 + $0x18] sm:$0xff] %v6175_v24  ;;  %5756 = vst [vmem:[%s6186_s23 + $0x20] sm:$0xff] %v6177_v25  ;;  %v625_v24 = vrot.slane %v355_v19, %v6111_v11  ;;  %v629_v25 = vrot.slane %v355_v19, %v6113_v12  ;;  %v633_v13 = vrot.slane %v356_v8, %v6098_v4  ;;  %v357_v19 = vld [vmem:[%s6096_s16 + $0x28] sm:$0xff] }
  0x62   : > { %5757 = vst [vmem:[%s6186_s23 + $0x28] sm:$0xff] %v6179_v26  ;;  %v3004_v26 = vcombine.low %v601_v20, %v605_v14  ;;  %v3005_v18 = vcombine.low %v609_v3, %v613_v21  ;;  %v637_v17 = vrot.slane %v356_v8, %v6100_v5  ;;  %v3021_v16 = vcombine.low %v617_v22, %v621_v23 }
  0x63   : > { %v3022_v15 = vcombine.low %v625_v24, %v629_v25  ;;  %v641_v2 = vrot.slane %v356_v8, %v6102_v6  ;;  %v645_v1 = vrot.slane %v356_v8, %v6104_v7  ;;  %v649_v61 = vrot.slane %v356_v8, %v6107_v9 }
  0x64   : > { %v3012_v0 = vrot.slane %v3004_v26, %v6141_v40  ;;  %v3019_v63 = vrot.slane %v3005_v18, %v6141_v40  ;;  %v3038_v62 = vcombine.low %v633_v13, %v637_v17  ;;  %v3029_v3 = vrot.slane %v3021_v16, %v6141_v40 }
  0x65   : > { %v3036_v14 = vrot.slane %v3022_v15, %v6141_v40  ;;  %v3039_v20 = vcombine.low %v641_v2, %v645_v1  ;;  %v653_v21 = vrot.slane %v356_v8, %v6109_v10  ;;  %v657_v24 = vrot.slane %v356_v8, %v6111_v11 }
  0x66   : > { %v3020_v22 = vcombine.low %v3012_v0, %v3019_v63  ;;  %v3046_v23 = vrot.slane %v3038_v62, %v6141_v40  ;;  %v661_v18 = vrot.slane %v356_v8, %v6113_v12  ;;  %v665_v16 = vrot.slane %v357_v19, %v6098_v4 }
  0x67   : > { %v3037_v13 = vcombine.low %v3029_v3, %v3036_v14  ;;  %v3053_v17 = vrot.slane %v3039_v20, %v6141_v40  ;;  %v3055_v25 = vcombine.low %v649_v61, %v653_v21  ;;  %v669_v63 = vrot.slane %v357_v19, %v6100_v5  ;;  %v358_v3 = vld [vmem:[%s6096_s16 + $0x30] sm:$0xff] }
  0x68   : > { %v5608_v1 = vadd.f32 %v3020_v22, %v6189_v27  ;;  %v3056_v2 = vcombine.low %v657_v24, %v661_v18  ;;  %v673_v0 = vrot.slane %v357_v19, %v6102_v6  ;;  %v677_v8 = vrot.slane %v357_v19, %v6104_v7 }
  0x69   : > { %v5609_v62 = vadd.f32 %v3037_v13, %v6192_v28  ;;  %v3054_v15 = vcombine.low %v3046_v23, %v3053_v17  ;;  %v3063_v26 = vrot.slane %v3055_v25, %v6141_v40  ;;  %v3072_v14 = vcombine.low %v665_v16, %v669_v63 }
  0x6a   : > { %5758 = vst [vmem:[%s6186_s23 + $0x30] sm:$0xff] %v5608_v1  ;;  %v3070_v61 = vrot.slane %v3056_v2, %v6141_v40  ;;  %v681_v27 = vrot.slane %v357_v19, %v6107_v9  ;;  %v685_v20 = vrot.slane %v357_v19, %v6109_v10  ;;  %v3073_v28 = vcombine.low %v673_v0, %v677_v8  ;;  %v359_v2 = vld [vmem:[%s6096_s16 + $0x38] sm:$0xff] }
  0x6b   : > { %5759 = vst [vmem:[%s6186_s23 + $0x38] sm:$0xff] %v5609_v62  ;;  %v5610_v21 = vadd.f32 %v3054_v15, %v6195_v29  ;;  %v689_v22 = vrot.slane %v357_v19, %v6111_v11  ;;  %v693_v23 = vrot.slane %v357_v19, %v6113_v12  ;;  %v3080_v18 = vrot.slane %v3072_v14, %v6141_v40 }
  0x6c   : > { %v3071_v24 = vcombine.low %v3063_v26, %v3070_v61  ;;  %v3089_v13 = vcombine.low %v681_v27, %v685_v20  ;;  %v697_v17 = vrot.slane %v358_v3, %v6098_v4  ;;  %v3087_v25 = vrot.slane %v3073_v28, %v6141_v40 }
  0x6d   : > { %5760 = vst [vmem:[%s6186_s23 + $0x40] sm:$0xff] %v5610_v21  ;;  %v3090_v16 = vcombine.low %v689_v22, %v693_v23  ;;  %v701_v1 = vrot.slane %v358_v3, %v6100_v5  ;;  %v705_v29 = vrot.slane %v358_v3, %v6102_v6  ;;  %v709_v0 = vrot.slane %v358_v3, %v6104_v7 }
  0x6e   : > { %v5611_v63 = vadd.f32 %v3071_v24, %v6198_v30  ;;  %v3097_v19 = vrot.slane %v3089_v13, %v6141_v40  ;;  %v713_v62 = vrot.slane %v358_v3, %v6107_v9  ;;  %v3088_v15 = vcombine.low %v3080_v18, %v3087_v25  ;;  %v360_v25 = vld [vmem:[%s6096_s16 + $0x40] sm:$0xff] }
  0x6f   : > { %v3104_v26 = vrot.slane %v3090_v16, %v6141_v40  ;;  %v3106_v8 = vcombine.low %v697_v17, %v701_v1  ;;  %v717_v61 = vrot.slane %v358_v3, %v6109_v10  ;;  %v3107_v14 = vcombine.low %v705_v29, %v709_v0 }
  0x70   : > { %5761 = vst [vmem:[%s6186_s23 + $0x48] sm:$0xff] %v5611_v63  ;;  %v721_v27 = vrot.slane %v358_v3, %v6111_v11  ;;  %v725_v30 = vrot.slane %v358_v3, %v6113_v12  ;;  %v729_v20 = vrot.slane %v359_v2, %v6098_v4  ;;  %v5612_v21 = vadd.f32 %v3088_v15, %v6201_v31 }
  0x71   : > { %v3105_v28 = vcombine.low %v3097_v19, %v3104_v26  ;;  %v3114_v22 = vrot.slane %v3106_v8, %v6141_v40  ;;  %v3123_v23 = vcombine.low %v713_v62, %v717_v61  ;;  %v3121_v24 = vrot.slane %v3107_v14, %v6141_v40 }
  0x72   : > { %v3124_v18 = vcombine.low %v721_v27, %v725_v30  ;;  %v733_v13 = vrot.slane %v359_v2, %v6100_v5  ;;  %v737_v17 = vrot.slane %v359_v2, %v6102_v6  ;;  %5762 = vst [vmem:[%s6186_s23 + $0x50] sm:$0xff] %v5612_v21  ;;  %v741_v31 = vrot.slane %v359_v2, %v6104_v7 }
  0x73   : > { %v5613_v3 = vadd.f32 %v3105_v28, %v6204_v32  ;;  %v3131_v16 = vrot.slane %v3123_v23, %v6141_v40  ;;  %v745_v1 = vrot.slane %v359_v2, %v6107_v9  ;;  %v3122_v29 = vcombine.low %v3114_v22, %v3121_v24  ;;  %v361_v22 = vld [vmem:[%s6096_s16 + $0x48] sm:$0xff] }
  0x74   : > { %v3138_v63 = vrot.slane %v3124_v18, %v6141_v40  ;;  %v3140_v19 = vcombine.low %v729_v20, %v733_v13  ;;  %v749_v0 = vrot.slane %v359_v2, %v6109_v10  ;;  %v3141_v62 = vcombine.low %v737_v17, %v741_v31 }
  0x75   : > { %5763 = vst [vmem:[%s6186_s23 + $0x58] sm:$0xff] %v5613_v3  ;;  %v753_v15 = vrot.slane %v359_v2, %v6111_v11  ;;  %v757_v32 = vrot.slane %v359_v2, %v6113_v12  ;;  %v761_v26 = vrot.slane %v360_v25, %v6098_v4  ;;  %v5614_v8 = vadd.f32 %v3122_v29, %v6207_v33 }
  0x76   : > { %v3139_v61 = vcombine.low %v3131_v16, %v3138_v63  ;;  %v3148_v14 = vrot.slane %v3140_v19, %v6141_v40  ;;  %v3157_v27 = vcombine.low %v745_v1, %v749_v0  ;;  %v3155_v30 = vrot.slane %v3141_v62, %v6141_v40 }
  0x77   : > { %v3158_v20 = vcombine.low %v753_v15, %v757_v32  ;;  %v765_v21 = vrot.slane %v360_v25, %v6100_v5  ;;  %v769_v28 = vrot.slane %v360_v25, %v6102_v6  ;;  %5764 = vst [vmem:[%s6186_s23 + $0x60] sm:$0xff] %v5614_v8  ;;  %v773_v33 = vrot.slane %v360_v25, %v6104_v7  ;;  %v362_v8 = vld [vmem:[%s6096_s16 + $0x50] sm:$0xff] }
  0x78   : > { %v5615_v2 = vadd.f32 %v3139_v61, %v6210_v34  ;;  %v3165_v23 = vrot.slane %v3157_v27, %v6141_v40  ;;  %v777_v24 = vrot.slane %v360_v25, %v6107_v9  ;;  %v3156_v18 = vcombine.low %v3148_v14, %v3155_v30 }
  0x79   : > { %v3172_v13 = vrot.slane %v3158_v20, %v6141_v40  ;;  %v3174_v17 = vcombine.low %v761_v26, %v765_v21  ;;  %v781_v3 = vrot.slane %v360_v25, %v6109_v10  ;;  %v3175_v16 = vcombine.low %v769_v28, %v773_v33 }
  0x7a   : > { %5765 = vst [vmem:[%s6186_s23 + $0x68] sm:$0xff] %v5615_v2  ;;  %v785_v31 = vrot.slane %v360_v25, %v6111_v11  ;;  %v789_v34 = vrot.slane %v360_v25, %v6113_v12  ;;  %v793_v1 = vrot.slane %v361_v22, %v6098_v4  ;;  %v5616_v29 = vadd.f32 %v3156_v18, %v6213_v35 }
  0x7b   : > { %v3173_v63 = vcombine.low %v3165_v23, %v3172_v13  ;;  %v3182_v19 = vrot.slane %v3174_v17, %v6141_v40  ;;  %v3191_v0 = vcombine.low %v777_v24, %v781_v3  ;;  %v3189_v62 = vrot.slane %v3175_v16, %v6141_v40 }
  0x7c   : > { %v3192_v15 = vcombine.low %v785_v31, %v789_v34  ;;  %v797_v32 = vrot.slane %v361_v22, %v6100_v5  ;;  %v801_v26 = vrot.slane %v361_v22, %v6102_v6  ;;  %5766 = vst [vmem:[%s6186_s23 + $0x70] sm:$0xff] %v5616_v29  ;;  %v805_v35 = vrot.slane %v361_v22, %v6104_v7  ;;  %v363_v34 = vld [vmem:[%s6096_s16 + $0x58] sm:$0xff] }
  0x7d   : > { %v5617_v25 = vadd.f32 %v3173_v63, %v6216_v36  ;;  %v3199_v61 = vrot.slane %v3191_v0, %v6141_v40  ;;  %v809_v14 = vrot.slane %v361_v22, %v6107_v9  ;;  %v3190_v27 = vcombine.low %v3182_v19, %v3189_v62 }
  0x7e   : > { %v3206_v30 = vrot.slane %v3192_v15, %v6141_v40  ;;  %v3208_v20 = vcombine.low %v793_v1, %v797_v32  ;;  %v813_v21 = vrot.slane %v361_v22, %v6109_v10  ;;  %v3209_v28 = vcombine.low %v801_v26, %v805_v35 }
  0x7f   : > { %5767 = vst [vmem:[%s6186_s23 + $0x78] sm:$0xff] %v5617_v25  ;;  %v817_v2 = vrot.slane %v361_v22, %v6111_v11  ;;  %v821_v36 = vrot.slane %v361_v22, %v6113_v12  ;;  %v825_v23 = vrot.slane %v362_v8, %v6098_v4  ;;  %v5618_v33 = vadd.f32 %v3190_v27, %v6219_v37 }
  0x80   : > { %v3207_v24 = vcombine.low %v3199_v61, %v3206_v30  ;;  %v3216_v18 = vrot.slane %v3208_v20, %v6141_v40  ;;  %v3225_v13 = vcombine.low %v809_v14, %v813_v21  ;;  %v3223_v17 = vrot.slane %v3209_v28, %v6141_v40  ;;  %v364_v28 = vld [vmem:[%s6096_s16 + $0x60] sm:$0xff] }
  0x81   : > { %v3226_v3 = vcombine.low %v817_v2, %v821_v36  ;;  %v829_v16 = vrot.slane %v362_v8, %v6100_v5  ;;  %v833_v31 = vrot.slane %v362_v8, %v6102_v6  ;;  %5768 = vst [vmem:[%s6186_s23 + $0x80] sm:$0xff] %v5618_v33  ;;  %v837_v37 = vrot.slane %v362_v8, %v6104_v7 }
  0x82   : > { %v5619_v22 = vadd.f32 %v3207_v24, %v6222_v38  ;;  %v3233_v1 = vrot.slane %v3225_v13, %v6141_v40  ;;  %v841_v29 = vrot.slane %v362_v8, %v6107_v9  ;;  %v3224_v63 = vcombine.low %v3216_v18, %v3223_v17 }
  0x83   : > { %v3240_v19 = vrot.slane %v3226_v3, %v6141_v40  ;;  %v3242_v0 = vcombine.low %v825_v23, %v829_v16  ;;  %v845_v62 = vrot.slane %v362_v8, %v6109_v10  ;;  %v3243_v15 = vcombine.low %v833_v31, %v837_v37 }
  0x84   : > { %5769 = vst [vmem:[%s6186_s23 + $0x88] sm:$0xff] %v5619_v22  ;;  %v849_v32 = vrot.slane %v362_v8, %v6111_v11  ;;  %v853_v38 = vrot.slane %v362_v8, %v6113_v12  ;;  %v857_v26 = vrot.slane %v363_v34, %v6098_v4  ;;  %v5620_v25 = vadd.f32 %v3224_v63, %v6225_v39 }
  0x85   : > { %v3241_v61 = vcombine.low %v3233_v1, %v3240_v19  ;;  %v3250_v35 = vrot.slane %v3242_v0, %v6141_v40  ;;  %v3259_v14 = vcombine.low %v841_v29, %v845_v62  ;;  %v3257_v27 = vrot.slane %v3243_v15, %v6141_v40  ;;  %v365_v0 = vld [vmem:[%s6096_s16 + $0x68] sm:$0xff] }
  0x86   : > { %v3260_v30 = vcombine.low %v849_v32, %v853_v38  ;;  %v861_v20 = vrot.slane %v363_v34, %v6100_v5  ;;  %v865_v21 = vrot.slane %v363_v34, %v6102_v6  ;;  %5770 = vst [vmem:[%s6186_s23 + $0x90] sm:$0xff] %v5620_v25  ;;  %v869_v39 = vrot.slane %v363_v34, %v6104_v7 }
  0x87   : > { %v5621_v8 = vadd.f32 %v3241_v61, %v6228_v41  ;;  %v3267_v2 = vrot.slane %v3259_v14, %v6141_v40  ;;  %v873_v36 = vrot.slane %v363_v34, %v6107_v9  ;;  %v3258_v23 = vcombine.low %v3250_v35, %v3257_v27 }
  0x88   : > { %v3274_v33 = vrot.slane %v3260_v30, %v6141_v40  ;;  %v3276_v24 = vcombine.low %v857_v26, %v861_v20  ;;  %v877_v18 = vrot.slane %v363_v34, %v6109_v10  ;;  %v3277_v13 = vcombine.low %v865_v21, %v869_v39 }
  0x89   : > { %5771 = vst [vmem:[%s6186_s23 + $0x98] sm:$0xff] %v5621_v8  ;;  %v881_v17 = vrot.slane %v363_v34, %v6111_v11  ;;  %v885_v41 = vrot.slane %v363_v34, %v6113_v12  ;;  %v889_v3 = vrot.slane %v364_v28, %v6098_v4  ;;  %v5622_v16 = vadd.f32 %v3258_v23, %v6231_v42  ;;  %v366_v23 = vld [vmem:[%s6096_s16 + $0x70] sm:$0xff] }
  0x8a   : > { %v3275_v31 = vcombine.low %v3267_v2, %v3274_v33  ;;  %v3284_v22 = vrot.slane %v3276_v24, %v6141_v40  ;;  %v3293_v1 = vcombine.low %v873_v36, %v877_v18  ;;  %v3291_v37 = vrot.slane %v3277_v13, %v6141_v40 }
  0x8b   : > { %v3294_v29 = vcombine.low %v881_v17, %v885_v41  ;;  %v893_v63 = vrot.slane %v364_v28, %v6100_v5  ;;  %v897_v19 = vrot.slane %v364_v28, %v6102_v6  ;;  %5772 = vst [vmem:[%s6186_s23 + $0xa0] sm:$0xff] %v5622_v16  ;;  %v901_v42 = vrot.slane %v364_v28, %v6104_v7 }
  0x8c   : > { %v5623_v34 = vadd.f32 %v3275_v31, %v6234_v43  ;;  %v3301_v62 = vrot.slane %v3293_v1, %v6141_v40  ;;  %v905_v15 = vrot.slane %v364_v28, %v6107_v9  ;;  %v3292_v32 = vcombine.low %v3284_v22, %v3291_v37 }
  0x8d   : > { %v3308_v38 = vrot.slane %v3294_v29, %v6141_v40  ;;  %v3310_v26 = vcombine.low %v889_v3, %v893_v63  ;;  %v909_v25 = vrot.slane %v364_v28, %v6109_v10  ;;  %v3311_v61 = vcombine.low %v897_v19, %v901_v42  ;;  %v367_v42 = vld [vmem:[%s6096_s16 + $0x78] sm:$0xff] }
  0x8e   : > { %5773 = vst [vmem:[%s6186_s23 + $0xa8] sm:$0xff] %v5623_v34  ;;  %v913_v35 = vrot.slane %v364_v28, %v6111_v11  ;;  %v917_v43 = vrot.slane %v364_v28, %v6113_v12  ;;  %v921_v14 = vrot.slane %v365_v0, %v6098_v4  ;;  %v5624_v27 = vadd.f32 %v3292_v32, %v6237_v44 }
  0x8f   : > { %v3309_v30 = vcombine.low %v3301_v62, %v3308_v38  ;;  %v3318_v20 = vrot.slane %v3310_v26, %v6141_v40  ;;  %v3327_v21 = vcombine.low %v905_v15, %v909_v25  ;;  %v3325_v8 = vrot.slane %v3311_v61, %v6141_v40 }
  0x90   : > { %v3328_v2 = vcombine.low %v913_v35, %v917_v43  ;;  %v925_v39 = vrot.slane %v365_v0, %v6100_v5  ;;  %v929_v36 = vrot.slane %v365_v0, %v6102_v6  ;;  %5774 = vst [vmem:[%s6186_s23 + $0xb0] sm:$0xff] %v5624_v27  ;;  %v933_v44 = vrot.slane %v365_v0, %v6104_v7 }
  0x91   : > { %v5625_v28 = vadd.f32 %v3309_v30, %v6240_v45  ;;  %v3335_v33 = vrot.slane %v3327_v21, %v6141_v40  ;;  %v937_v24 = vrot.slane %v365_v0, %v6107_v9  ;;  %v3326_v18 = vcombine.low %v3318_v20, %v3325_v8 }
  0x92   : > { %v3342_v13 = vrot.slane %v3328_v2, %v6141_v40  ;;  %v3344_v17 = vcombine.low %v921_v14, %v925_v39  ;;  %v941_v41 = vrot.slane %v365_v0, %v6109_v10  ;;  %v3345_v3 = vcombine.low %v929_v36, %v933_v44 }
  0x93   : > { %5775 = vst [vmem:[%s6186_s23 + $0xb8] sm:$0xff] %v5625_v28  ;;  %v945_v16 = vrot.slane %v365_v0, %v6111_v11  ;;  %v949_v45 = vrot.slane %v365_v0, %v6113_v12  ;;  %v953_v31 = vrot.slane %v366_v23, %v6098_v4  ;;  %v5626_v22 = vadd.f32 %v3326_v18, %v6243_v46  ;;  %v368_v28 = vld [vmem:[%s6096_s16 + $0x80] sm:$0xff] }
  0x94   : > { %v3343_v1 = vcombine.low %v3335_v33, %v3342_v13  ;;  %v3352_v37 = vrot.slane %v3344_v17, %v6141_v40  ;;  %v3361_v29 = vcombine.low %v937_v24, %v941_v41  ;;  %v3359_v63 = vrot.slane %v3345_v3, %v6141_v40 }
  0x95   : > { %v3362_v19 = vcombine.low %v945_v16, %v949_v45  ;;  %v957_v34 = vrot.slane %v366_v23, %v6100_v5  ;;  %v961_v62 = vrot.slane %v366_v23, %v6102_v6  ;;  %5776 = vst [vmem:[%s6186_s23 + $0xc0] sm:$0xff] %v5626_v22  ;;  %v965_v46 = vrot.slane %v366_v23, %v6104_v7 }
  0x96   : > { %v5627_v0 = vadd.f32 %v3343_v1, %v6246_v47  ;;  %v3369_v15 = vrot.slane %v3361_v29, %v6141_v40  ;;  %v969_v32 = vrot.slane %v366_v23, %v6107_v9  ;;  %v3360_v38 = vcombine.low %v3352_v37, %v3359_v63 }
  0x97   : > { %v3376_v26 = vrot.slane %v3362_v19, %v6141_v40  ;;  %v3378_v25 = vcombine.low %v953_v31, %v957_v34  ;;  %v973_v61 = vrot.slane %v366_v23, %v6109_v10  ;;  %v3379_v35 = vcombine.low %v961_v62, %v965_v46  ;;  %v369_v34 = vld [vmem:[%s6096_s16 + $0x88] sm:$0xff] }
  0x98   : > { %5777 = vst [vmem:[%s6186_s23 + $0xc8] sm:$0xff] %v5627_v0  ;;  %v977_v43 = vrot.slane %v366_v23, %v6111_v11  ;;  %v981_v47 = vrot.slane %v366_v23, %v6113_v12  ;;  %v985_v14 = vrot.slane %v367_v42, %v6098_v4  ;;  %v5628_v27 = vadd.f32 %v3360_v38, %v6249_v48 }
  0x99   : > { %v3377_v30 = vcombine.low %v3369_v15, %v3376_v26  ;;  %v3386_v20 = vrot.slane %v3378_v25, %v6141_v40  ;;  %v3395_v21 = vcombine.low %v969_v32, %v973_v61  ;;  %v3393_v8 = vrot.slane %v3379_v35, %v6141_v40 }
  0x9a   : > { %v3396_v2 = vcombine.low %v977_v43, %v981_v47  ;;  %v989_v39 = vrot.slane %v367_v42, %v6100_v5  ;;  %v993_v36 = vrot.slane %v367_v42, %v6102_v6  ;;  %5778 = vst [vmem:[%s6186_s23 + $0xd0] sm:$0xff] %v5628_v27  ;;  %v997_v48 = vrot.slane %v367_v42, %v6104_v7 }
  0x9b   : > { %v5629_v23 = vadd.f32 %v3377_v30, %v6252_v49  ;;  %v3403_v33 = vrot.slane %v3395_v21, %v6141_v40  ;;  %v1001_v44 = vrot.slane %v367_v42, %v6107_v9  ;;  %v3394_v24 = vcombine.low %v3386_v20, %v3393_v8  ;;  %v370_v8 = vld [vmem:[%s6096_s16 + $0x90] sm:$0xff] }
  0x9c   : > { %v3410_v18 = vrot.slane %v3396_v2, %v6141_v40  ;;  %v3412_v13 = vcombine.low %v985_v14, %v989_v39  ;;  %v1005_v17 = vrot.slane %v367_v42, %v6109_v10  ;;  %v3413_v41 = vcombine.low %v993_v36, %v997_v48 }
  0x9d   : > { %5779 = vst [vmem:[%s6186_s23 + $0xd8] sm:$0xff] %v5629_v23  ;;  %v1009_v3 = vrot.slane %v367_v42, %v6111_v11  ;;  %v1013_v49 = vrot.slane %v367_v42, %v6113_v12  ;;  %v1017_v16 = vrot.slane %v368_v28, %v6098_v4  ;;  %v5630_v45 = vadd.f32 %v3394_v24, %v6255_v50 }
  0x9e   : > { %v3411_v31 = vcombine.low %v3403_v33, %v3410_v18  ;;  %v3420_v22 = vrot.slane %v3412_v13, %v6141_v40  ;;  %v3429_v1 = vcombine.low %v1001_v44, %v1005_v17  ;;  %v3427_v37 = vrot.slane %v3413_v41, %v6141_v40 }
  0x9f   : > { %v3430_v29 = vcombine.low %v1009_v3, %v1013_v49  ;;  %v1021_v63 = vrot.slane %v368_v28, %v6100_v5  ;;  %v1025_v19 = vrot.slane %v368_v28, %v6102_v6  ;;  %5780 = vst [vmem:[%s6186_s23 + $0xe0] sm:$0xff] %v5630_v45  ;;  %v1029_v50 = vrot.slane %v368_v28, %v6104_v7 }
  0xa0   : > { %v5631_v62 = vadd.f32 %v3411_v31, %v6258_v51  ;;  %v3437_v42 = vrot.slane %v3429_v1, %v6141_v40  ;;  %v1033_v0 = vrot.slane %v368_v28, %v6107_v9  ;;  %v3428_v15 = vcombine.low %v3420_v22, %v3427_v37  ;;  %v371_v22 = vld [vmem:[%s6096_s16 + $0x98] sm:$0xff] }
  0xa1   : > { %v3444_v46 = vrot.slane %v3430_v29, %v6141_v40  ;;  %v3446_v32 = vcombine.low %v1017_v16, %v1021_v63  ;;  %v1037_v38 = vrot.slane %v368_v28, %v6109_v10  ;;  %v3447_v26 = vcombine.low %v1025_v19, %v1029_v50 }
  0xa2   : > { %5781 = vst [vmem:[%s6186_s23 + $0xe8] sm:$0xff] %v5631_v62  ;;  %v1041_v25 = vrot.slane %v368_v28, %v6111_v11  ;;  %v1045_v51 = vrot.slane %v368_v28, %v6113_v12  ;;  %v1049_v61 = vrot.slane %v369_v34, %v6098_v4  ;;  %v5632_v35 = vadd.f32 %v3428_v15, %v6261_v52 }
  0xa3   : > { %v3445_v43 = vcombine.low %v3437_v42, %v3444_v46  ;;  %v3454_v47 = vrot.slane %v3446_v32, %v6141_v40  ;;  %v3463_v14 = vcombine.low %v1033_v0, %v1037_v38  ;;  %v3461_v27 = vrot.slane %v3447_v26, %v6141_v40 }
  0xa4   : > { %v3464_v30 = vcombine.low %v1041_v25, %v1045_v51  ;;  %v1053_v20 = vrot.slane %v369_v34, %v6100_v5  ;;  %v1057_v21 = vrot.slane %v369_v34, %v6102_v6  ;;  %5782 = vst [vmem:[%s6186_s23 + $0xf0] sm:$0xff] %v5632_v35  ;;  %v1061_v52 = vrot.slane %v369_v34, %v6104_v7  ;;  %v372_v35 = vld [vmem:[%s6096_s16 + $0xa0] sm:$0xff] }
  0xa5   : > { %v5633_v2 = vadd.f32 %v3445_v43, %v6264_v53  ;;  %v3471_v39 = vrot.slane %v3463_v14, %v6141_v40  ;;  %v1065_v36 = vrot.slane %v369_v34, %v6107_v9  ;;  %v3462_v28 = vcombine.low %v3454_v47, %v3461_v27 }
  0xa6   : > { %v3478_v23 = vrot.slane %v3464_v30, %v6141_v40  ;;  %v3480_v33 = vcombine.low %v1049_v61, %v1053_v20  ;;  %v1069_v48 = vrot.slane %v369_v34, %v6109_v10  ;;  %v3481_v44 = vcombine.low %v1057_v21, %v1061_v52 }
  0xa7   : > { %5783 = vst [vmem:[%s6186_s23 + $0xf8] sm:$0xff] %v5633_v2  ;;  %v1073_v24 = vrot.slane %v369_v34, %v6111_v11  ;;  %v1077_v53 = vrot.slane %v369_v34, %v6113_v12  ;;  %v1081_v18 = vrot.slane %v370_v8, %v6098_v4  ;;  %v5634_v13 = vadd.f32 %v3462_v28, %v6267_v54 }
  0xa8   : > { %v3479_v17 = vcombine.low %v3471_v39, %v3478_v23  ;;  %v3488_v41 = vrot.slane %v3480_v33, %v6141_v40  ;;  %v3497_v3 = vcombine.low %v1065_v36, %v1069_v48  ;;  %v3495_v49 = vrot.slane %v3481_v44, %v6141_v40 }
  0xa9   : > { %v3498_v16 = vcombine.low %v1073_v24, %v1077_v53  ;;  %v1085_v45 = vrot.slane %v370_v8, %v6100_v5  ;;  %v1089_v31 = vrot.slane %v370_v8, %v6102_v6  ;;  %5784 = vst [vmem:[%s6186_s23 + $0x100] sm:$0xff] %v5634_v13  ;;  %v1093_v54 = vrot.slane %v370_v8, %v6104_v7  ;;  %v373_v53 = vld [vmem:[%s6096_s16 + $0xa8] sm:$0xff] }
  0xaa   : > { %v5635_v1 = vadd.f32 %v3479_v17, %v6270_v55  ;;  %v3505_v37 = vrot.slane %v3497_v3, %v6141_v40  ;;  %v1097_v29 = vrot.slane %v370_v8, %v6107_v9  ;;  %v3496_v63 = vcombine.low %v3488_v41, %v3495_v49 }
  0xab   : > { %v3512_v19 = vrot.slane %v3498_v16, %v6141_v40  ;;  %v3514_v34 = vcombine.low %v1081_v18, %v1085_v45  ;;  %v1101_v62 = vrot.slane %v370_v8, %v6109_v10  ;;  %v3515_v42 = vcombine.low %v1089_v31, %v1093_v54 }
  0xac   : > { %5785 = vst [vmem:[%s6186_s23 + $0x108] sm:$0xff] %v5635_v1  ;;  %v1105_v50 = vrot.slane %v370_v8, %v6111_v11  ;;  %v1109_v55 = vrot.slane %v370_v8, %v6113_v12  ;;  %v1113_v0 = vrot.slane %v371_v22, %v6098_v4  ;;  %v5636_v15 = vadd.f32 %v3496_v63, %v6273_v56 }
  0xad   : > { %v3513_v46 = vcombine.low %v3505_v37, %v3512_v19  ;;  %v3522_v32 = vrot.slane %v3514_v34, %v6141_v40  ;;  %v3531_v38 = vcombine.low %v1097_v29, %v1101_v62  ;;  %v3529_v26 = vrot.slane %v3515_v42, %v6141_v40  ;;  %v374_v42 = vld [vmem:[%s6096_s16 + $0xb0] sm:$0xff] }
  0xae   : > { %v3532_v25 = vcombine.low %v1105_v50, %v1109_v55  ;;  %v1117_v51 = vrot.slane %v371_v22, %v6100_v5  ;;  %v1121_v61 = vrot.slane %v371_v22, %v6102_v6  ;;  %5786 = vst [vmem:[%s6186_s23 + $0x110] sm:$0xff] %v5636_v15  ;;  %v1125_v56 = vrot.slane %v371_v22, %v6104_v7  ;;  %v7979_v50 = vld [vmem:[#allocation2_spill] sm:$0xff] }
  0xaf   : > { %v5637_v43 = vadd.f32 %v3513_v46, %v6276_v57  ;;  %v3539_v47 = vrot.slane %v3531_v38, %v6141_v40  ;;  %v1129_v14 = vrot.slane %v371_v22, %v6107_v9  ;;  %v3530_v27 = vcombine.low %v3522_v32, %v3529_v26 }
  0xb0   : > { %v3546_v30 = vrot.slane %v3532_v25, %v6141_v40  ;;  %v3548_v20 = vcombine.low %v1113_v0, %v1117_v51  ;;  %v1133_v21 = vrot.slane %v371_v22, %v6109_v10  ;;  %v3549_v8 = vcombine.low %v1121_v61, %v1125_v56 }
  0xb1   : > { %5787 = vst [vmem:[%s6186_s23 + $0x118] sm:$0xff] %v5637_v43  ;;  %v1137_v2 = vrot.slane %v371_v22, %v6111_v11  ;;  %v1141_v57 = vrot.slane %v371_v22, %v6113_v12  ;;  %v1145_v39 = vrot.slane %v372_v35, %v6098_v4  ;;  %v5638_v52 = vadd.f32 %v3530_v27, %v6279_v58  ;;  %v7980_v43 = vld [vmem:[#allocation3_spill] sm:$0xff] }
  0xb2   : > { %v3547_v36 = vcombine.low %v3539_v47, %v3546_v30  ;;  %v3556_v28 = vrot.slane %v3548_v20, %v6141_v40  ;;  %v3565_v23 = vcombine.low %v1129_v14, %v1133_v21  ;;  %v3563_v33 = vrot.slane %v3549_v8, %v6141_v40 }
  0xb3   : > { %v3566_v48 = vcombine.low %v1137_v2, %v1141_v57  ;;  %v1149_v44 = vrot.slane %v372_v35, %v6100_v5  ;;  %v1153_v24 = vrot.slane %v372_v35, %v6102_v6  ;;  %5788 = vst [vmem:[%s6186_s23 + $0x120] sm:$0xff] %v5638_v52  ;;  %v1157_v58 = vrot.slane %v372_v35, %v6104_v7  ;;  %v375_v2 = vld [vmem:[%s6096_s16 + $0xb8] sm:$0xff]  ;;  %v7981_v57 = vld [vmem:[#allocation4_spill] sm:$0xff] }
  0xb4   : > { %v5639_v18 = vadd.f32 %v3547_v36, %v6282_v59  ;;  %v3573_v13 = vrot.slane %v3565_v23, %v6141_v40  ;;  %v1161_v17 = vrot.slane %v372_v35, %v6107_v9  ;;  %v3564_v41 = vcombine.low %v3556_v28, %v3563_v33 }
  0xb5   : > { %v3580_v3 = vrot.slane %v3566_v48, %v6141_v40  ;;  %v3582_v49 = vcombine.low %v1145_v39, %v1149_v44  ;;  %v1165_v16 = vrot.slane %v372_v35, %v6109_v10  ;;  %v3583_v45 = vcombine.low %v1153_v24, %v1157_v58  ;;  %v7982_v58 = vld [vmem:[#allocation5_spill] sm:$0xff] }
  0xb6   : > { %5789 = vst [vmem:[%s6186_s23 + $0x128] sm:$0xff] %v5639_v18  ;;  %v1169_v31 = vrot.slane %v372_v35, %v6111_v11  ;;  %v1173_v59 = vrot.slane %v372_v35, %v6113_v12  ;;  %v1177_v22 = vrot.slane %v373_v53, %v6098_v4  ;;  %v5640_v1 = vadd.f32 %v3564_v41, %v6285_v60 }
  0xb7   : > { %v3581_v37 = vcombine.low %v3573_v13, %v3580_v3  ;;  %v3590_v54 = vrot.slane %v3582_v49, %v6141_v40  ;;  %v3599_v29 = vcombine.low %v1161_v17, %v1165_v16  ;;  %v3597_v63 = vrot.slane %v3583_v45, %v6141_v40 }
  0xb8   : > { %v3600_v19 = vcombine.low %v1169_v31, %v1173_v59  ;;  %v1181_v34 = vrot.slane %v373_v53, %v6100_v5  ;;  %v1185_v62 = vrot.slane %v373_v53, %v6102_v6  ;;  %5790 = vst [vmem:[%s6186_s23 + $0x130] sm:$0xff] %v5640_v1  ;;  %v1189_v60 = vrot.slane %v373_v53, %v6104_v7  ;;  %v7983_v1 = vld [vmem:[#allocation6_spill] sm:$0xff] }
  0xb9   : > { %v5641_v55 = vadd.f32 %v3581_v37, %v7979_v50  ;;  %v3607_v0 = vrot.slane %v3599_v29, %v6141_v40  ;;  %v1193_v15 = vrot.slane %v373_v53, %v6107_v9  ;;  %v3598_v46 = vcombine.low %v3590_v54, %v3597_v63 }
  0xba   : > { %v3614_v32 = vrot.slane %v3600_v19, %v6141_v40  ;;  %v3616_v38 = vcombine.low %v1177_v22, %v1181_v34  ;;  %v1197_v26 = vrot.slane %v373_v53, %v6109_v10  ;;  %v3617_v25 = vcombine.low %v1185_v62, %v1189_v60  ;;  %v376_v22 = vld [vmem:[%s6096_s16 + $0xc0] sm:$0xff] }
  0xbb   : > { %5791 = vst [vmem:[%s6186_s23 + $0x138] sm:$0xff] %v5641_v55  ;;  %v1201_v51 = vrot.slane %v373_v53, %v6111_v11  ;;  %v1205_v61 = vrot.slane %v373_v53, %v6113_v12  ;;  %v1209_v35 = vrot.slane %v374_v42, %v6098_v4  ;;  %v5642_v47 = vadd.f32 %v3598_v46, %v7980_v43  ;;  %v377_v43 = vld [vmem:[%s6096_s16 + $0xc8] sm:$0xff] }
  0xbc   : > { %v3615_v56 = vcombine.low %v3607_v0, %v3614_v32  ;;  %v3624_v14 = vrot.slane %v3616_v38, %v6141_v40  ;;  %v3633_v27 = vcombine.low %v1193_v15, %v1197_v26  ;;  %v3631_v30 = vrot.slane %v3617_v25, %v6141_v40  ;;  %v7984_v15 = vld [vmem:[#allocation7_spill] sm:$0xff] }
  0xbd   : > { %v3634_v20 = vcombine.low %v1201_v51, %v1205_v61  ;;  %v1213_v21 = vrot.slane %v374_v42, %v6100_v5  ;;  %v1217_v8 = vrot.slane %v374_v42, %v6102_v6  ;;  %5792 = vst [vmem:[%s6186_s23 + $0x140] sm:$0xff] %v5642_v47  ;;  %v1221_v36 = vrot.slane %v374_v42, %v6104_v7  ;;  %v7985_v47 = vld [vmem:[#allocation8_spill] sm:$0xff] }
  0xbe   : > { %v5643_v39 = vadd.f32 %v3615_v56, %v7981_v57  ;;  %v3641_v52 = vrot.slane %v3633_v27, %v6141_v40  ;;  %v1225_v28 = vrot.slane %v374_v42, %v6107_v9  ;;  %v3632_v23 = vcombine.low %v3624_v14, %v3631_v30 }
  0xbf   : > { %v3648_v33 = vrot.slane %v3634_v20, %v6141_v40  ;;  %v3650_v48 = vcombine.low %v1209_v35, %v1213_v21  ;;  %v1229_v44 = vrot.slane %v374_v42, %v6109_v10  ;;  %v3651_v24 = vcombine.low %v1217_v8, %v1221_v36 }
  0xc0   : > { %5793 = vst [vmem:[%s6186_s23 + $0x148] sm:$0xff] %v5643_v39  ;;  %v1233_v53 = vrot.slane %v374_v42, %v6111_v11  ;;  %v1237_v18 = vrot.slane %v374_v42, %v6113_v12  ;;  %v1241_v13 = vrot.slane %v375_v2, %v6098_v4  ;;  %v5644_v17 = vadd.f32 %v3632_v23, %v7982_v58  ;;  %v378_v58 = vld [vmem:[%s6096_s16 + $0xd0] sm:$0xff] }
  0xc1   : > { %v3649_v41 = vcombine.low %v3641_v52, %v3648_v33  ;;  %v3658_v3 = vrot.slane %v3650_v48, %v6141_v40  ;;  %v3667_v49 = vcombine.low %v1225_v28, %v1229_v44  ;;  %v3665_v16 = vrot.slane %v3651_v24, %v6141_v40  ;;  %v7986_v28 = vld [vmem:[#allocation9_spill] sm:$0xff] }
  0xc2   : > { %v3668_v45 = vcombine.low %v1233_v53, %v1237_v18  ;;  %v1245_v31 = vrot.slane %v375_v2, %v6100_v5  ;;  %v1249_v59 = vrot.slane %v375_v2, %v6102_v6  ;;  %5794 = vst [vmem:[%s6186_s23 + $0x150] sm:$0xff] %v5644_v17  ;;  %v1253_v29 = vrot.slane %v375_v2, %v6104_v7  ;;  %v7987_v17 = vld [vmem:[#allocation10_spill] sm:$0xff] }
  0xc3   : > { %v5645_v37 = vadd.f32 %v3649_v41, %v7983_v1  ;;  %v3675_v54 = vrot.slane %v3667_v49, %v6141_v40  ;;  %v1257_v63 = vrot.slane %v375_v2, %v6107_v9  ;;  %v3666_v19 = vcombine.low %v3658_v3, %v3665_v16 }
  0xc4   : > { %v3682_v34 = vrot.slane %v3668_v45, %v6141_v40  ;;  %v3684_v62 = vcombine.low %v1241_v13, %v1245_v31  ;;  %v1261_v42 = vrot.slane %v375_v2, %v6109_v10  ;;  %v3685_v50 = vcombine.low %v1249_v59, %v1253_v29 }
  0xc5   : > { %5795 = vst [vmem:[%s6186_s23 + $0x158] sm:$0xff] %v5645_v37  ;;  %v1265_v55 = vrot.slane %v375_v2, %v6111_v11  ;;  %v1269_v0 = vrot.slane %v375_v2, %v6113_v12  ;;  %v1273_v60 = vrot.slane %v376_v22, %v6098_v4  ;;  %v5646_v46 = vadd.f32 %v3666_v19, %v7984_v15  ;;  %v379_v15 = vld [vmem:[%s6096_s16 + $0xd8] sm:$0xff] }
  0xc6   : > { %v3683_v32 = vcombine.low %v3675_v54, %v3682_v34  ;;  %v3692_v38 = vrot.slane %v3684_v62, %v6141_v40  ;;  %v3701_v26 = vcombine.low %v1257_v63, %v1261_v42  ;;  %v3699_v25 = vrot.slane %v3685_v50, %v6141_v40  ;;  %v7988_v63 = vld [vmem:[#allocation11_spill] sm:$0xff] }
  0xc7   : > { %v3702_v51 = vcombine.low %v1265_v55, %v1269_v0  ;;  %v1277_v61 = vrot.slane %v376_v22, %v6100_v5  ;;  %v1281_v35 = vrot.slane %v376_v22, %v6102_v6  ;;  %5796 = vst [vmem:[%s6186_s23 + $0x160] sm:$0xff] %v5646_v46  ;;  %v1285_v27 = vrot.slane %v376_v22, %v6104_v7  ;;  %v7989_v46 = vld [vmem:[#allocation12_spill] sm:$0xff] }
  0xc8   : > { %v5647_v56 = vadd.f32 %v3683_v32, %v7985_v47  ;;  %v3709_v14 = vrot.slane %v3701_v26, %v6141_v40  ;;  %v1289_v30 = vrot.slane %v376_v22, %v6107_v9  ;;  %v3700_v20 = vcombine.low %v3692_v38, %v3699_v25 }
  0xc9   : > { %v3716_v21 = vrot.slane %v3702_v51, %v6141_v40  ;;  %v3718_v8 = vcombine.low %v1273_v60, %v1277_v61  ;;  %v1293_v2 = vrot.slane %v376_v22, %v6109_v10  ;;  %v3719_v57 = vcombine.low %v1281_v35, %v1285_v27 }
  0xca   : > { %5797 = vst [vmem:[%s6186_s23 + $0x168] sm:$0xff] %v5647_v56  ;;  %v1297_v39 = vrot.slane %v376_v22, %v6111_v11  ;;  %v1301_v52 = vrot.slane %v376_v22, %v6113_v12  ;;  %v1305_v36 = vrot.slane %v377_v43, %v6098_v4  ;;  %v5648_v23 = vadd.f32 %v3700_v20, %v7986_v28  ;;  %v380_v28 = vld [vmem:[%s6096_s16 + $0xe0] sm:$0xff] }
  0xcb   : > { %v3717_v33 = vcombine.low %v3709_v14, %v3716_v21  ;;  %v3726_v48 = vrot.slane %v3718_v8, %v6141_v40  ;;  %v3735_v44 = vcombine.low %v1289_v30, %v1293_v2  ;;  %v3733_v24 = vrot.slane %v3719_v57, %v6141_v40  ;;  %v7990_v30 = vld [vmem:[#allocation13_spill] sm:$0xff] }
  0xcc   : > { %v3736_v53 = vcombine.low %v1297_v39, %v1301_v52  ;;  %v1309_v18 = vrot.slane %v377_v43, %v6100_v5  ;;  %v1313_v13 = vrot.slane %v377_v43, %v6102_v6  ;;  %5798 = vst [vmem:[%s6186_s23 + $0x170] sm:$0xff] %v5648_v23  ;;  %v1317_v49 = vrot.slane %v377_v43, %v6104_v7  ;;  %v7991_v23 = vld [vmem:[#allocation14_spill] sm:$0xff] }
  0xcd   : > { %v5649_v41 = vadd.f32 %v3717_v33, %v7987_v17  ;;  %v3743_v3 = vrot.slane %v3735_v44, %v6141_v40  ;;  %v1321_v16 = vrot.slane %v377_v43, %v6107_v9  ;;  %v3734_v45 = vcombine.low %v3726_v48, %v3733_v24 }
  0xce   : > { %v3750_v31 = vrot.slane %v3736_v53, %v6141_v40  ;;  %v3752_v59 = vcombine.low %v1305_v36, %v1309_v18  ;;  %v1325_v22 = vrot.slane %v377_v43, %v6109_v10  ;;  %v3753_v1 = vcombine.low %v1313_v13, %v1317_v49 }
  0xcf   : > { %5799 = vst [vmem:[%s6186_s23 + $0x178] sm:$0xff] %v5649_v41  ;;  %v1329_v37 = vrot.slane %v377_v43, %v6111_v11  ;;  %v1333_v54 = vrot.slane %v377_v43, %v6113_v12  ;;  %v1337_v29 = vrot.slane %v378_v58, %v6098_v4  ;;  %v5650_v19 = vadd.f32 %v3734_v45, %v7988_v63  ;;  %v381_v63 = vld [vmem:[%s6096_s16 + $0xe8] sm:$0xff] }
  0xd0   : > { %v3751_v34 = vcombine.low %v3743_v3, %v3750_v31  ;;  %v3760_v62 = vrot.slane %v3752_v59, %v6141_v40  ;;  %v3769_v42 = vcombine.low %v1321_v16, %v1325_v22  ;;  %v3767_v50 = vrot.slane %v3753_v1, %v6141_v40  ;;  %v7992_v16 = vld [vmem:[#allocation15_spill] sm:$0xff] }
  0xd1   : > { %v3770_v55 = vcombine.low %v1329_v37, %v1333_v54  ;;  %v1341_v0 = vrot.slane %v378_v58, %v6100_v5  ;;  %v1345_v60 = vrot.slane %v378_v58, %v6102_v6  ;;  %5800 = vst [vmem:[%s6186_s23 + $0x180] sm:$0xff] %v5650_v19  ;;  %v1349_v26 = vrot.slane %v378_v58, %v6104_v7  ;;  %v7993_v19 = vld [vmem:[#allocation16_spill] sm:$0xff] }
  0xd2   : > { %v5651_v32 = vadd.f32 %v3751_v34, %v7989_v46  ;;  %v3777_v38 = vrot.slane %v3769_v42, %v6141_v40  ;;  %v1353_v25 = vrot.slane %v378_v58, %v6107_v9  ;;  %v3768_v51 = vcombine.low %v3760_v62, %v3767_v50 }
  0xd3   : > { %v3784_v61 = vrot.slane %v3770_v55, %v6141_v40  ;;  %v3786_v35 = vcombine.low %v1337_v29, %v1341_v0  ;;  %v1357_v43 = vrot.slane %v378_v58, %v6109_v10  ;;  %v3787_v47 = vcombine.low %v1345_v60, %v1349_v26 }
  0xd4   : > { %5801 = vst [vmem:[%s6186_s23 + $0x188] sm:$0xff] %v5651_v32  ;;  %v1361_v56 = vrot.slane %v378_v58, %v6111_v11  ;;  %v1365_v14 = vrot.slane %v378_v58, %v6113_v12  ;;  %v1369_v27 = vrot.slane %v379_v15, %v6098_v4  ;;  %v5652_v20 = vadd.f32 %v3768_v51, %v7990_v30  ;;  %v382_v30 = vld [vmem:[%s6096_s16 + $0xf0] sm:$0xff] }
  0xd5   : > { %v3785_v21 = vcombine.low %v3777_v38, %v3784_v61  ;;  %v3794_v8 = vrot.slane %v3786_v35, %v6141_v40  ;;  %v3803_v2 = vcombine.low %v1353_v25, %v1357_v43  ;;  %v3801_v57 = vrot.slane %v3787_v47, %v6141_v40  ;;  %v7994_v25 = vld [vmem:[#allocation17_spill] sm:$0xff] }
  0xd6   : > { %v3804_v39 = vcombine.low %v1361_v56, %v1365_v14  ;;  %v1373_v52 = vrot.slane %v379_v15, %v6100_v5  ;;  %v1377_v36 = vrot.slane %v379_v15, %v6102_v6  ;;  %5802 = vst [vmem:[%s6186_s23 + $0x190] sm:$0xff] %v5652_v20  ;;  %v1381_v44 = vrot.slane %v379_v15, %v6104_v7  ;;  %v7995_v20 = vld [vmem:[#allocation18_spill] sm:$0xff] }
  0xd7   : > { %v5653_v33 = vadd.f32 %v3785_v21, %v7991_v23  ;;  %v3811_v48 = vrot.slane %v3803_v2, %v6141_v40  ;;  %v1385_v24 = vrot.slane %v379_v15, %v6107_v9  ;;  %v3802_v53 = vcombine.low %v3794_v8, %v3801_v57 }
  0xd8   : > { %v3818_v18 = vrot.slane %v3804_v39, %v6141_v40  ;;  %v3820_v13 = vcombine.low %v1369_v27, %v1373_v52  ;;  %v1389_v58 = vrot.slane %v379_v15, %v6109_v10  ;;  %v3821_v17 = vcombine.low %v1377_v36, %v1381_v44 }
  0xd9   : > { %5803 = vst [vmem:[%s6186_s23 + $0x198] sm:$0xff] %v5653_v33  ;;  %v1393_v41 = vrot.slane %v379_v15, %v6111_v11  ;;  %v1397_v3 = vrot.slane %v379_v15, %v6113_v12  ;;  %v1401_v49 = vrot.slane %v380_v28, %v6098_v4  ;;  %v5654_v45 = vadd.f32 %v3802_v53, %v7992_v16  ;;  %v383_v16 = vld [vmem:[%s6096_s16 + $0xf8] sm:$0xff] }
  0xda   : > { %v3819_v31 = vcombine.low %v3811_v48, %v3818_v18  ;;  %v3828_v59 = vrot.slane %v3820_v13, %v6141_v40  ;;  %v3837_v22 = vcombine.low %v1385_v24, %v1389_v58  ;;  %v3835_v1 = vrot.slane %v3821_v17, %v6141_v40  ;;  %v7996_v24 = vld [vmem:[#allocation19_spill] sm:$0xff] }
  0xdb   : > { %v3838_v37 = vcombine.low %v1393_v41, %v1397_v3  ;;  %v1405_v54 = vrot.slane %v380_v28, %v6100_v5  ;;  %v1409_v29 = vrot.slane %v380_v28, %v6102_v6  ;;  %5804 = vst [vmem:[%s6186_s23 + $0x1a0] sm:$0xff] %v5654_v45  ;;  %v1413_v42 = vrot.slane %v380_v28, %v6104_v7  ;;  %v7997_v45 = vld [vmem:[#allocation20_spill] sm:$0xff] }
  0xdc   : > { %v5655_v34 = vadd.f32 %v3819_v31, %v7993_v19  ;;  %v3845_v62 = vrot.slane %v3837_v22, %v6141_v40  ;;  %v1417_v50 = vrot.slane %v380_v28, %v6107_v9  ;;  %v3836_v55 = vcombine.low %v3828_v59, %v3835_v1 }
  0xdd   : > { %v3852_v0 = vrot.slane %v3838_v37, %v6141_v40  ;;  %v3854_v60 = vcombine.low %v1401_v49, %v1405_v54  ;;  %v1421_v15 = vrot.slane %v380_v28, %v6109_v10  ;;  %v3855_v46 = vcombine.low %v1409_v29, %v1413_v42 }
  0xde   : > { %5805 = vst [vmem:[%s6186_s23 + $0x1a8] sm:$0xff] %v5655_v34  ;;  %v1425_v32 = vrot.slane %v380_v28, %v6111_v11  ;;  %v1429_v38 = vrot.slane %v380_v28, %v6113_v12  ;;  %v1433_v26 = vrot.slane %v381_v63, %v6098_v4  ;;  %v5656_v51 = vadd.f32 %v3836_v55, %v7994_v25  ;;  %v384_v25 = vld [vmem:[%s6096_s16 + $0x100] sm:$0xff] }
  0xdf   : > { %v3853_v61 = vcombine.low %v3845_v62, %v3852_v0  ;;  %v3862_v35 = vrot.slane %v3854_v60, %v6141_v40  ;;  %v3871_v43 = vcombine.low %v1417_v50, %v1421_v15  ;;  %v3869_v47 = vrot.slane %v3855_v46, %v6141_v40  ;;  %v7998_v50 = vld [vmem:[#allocation21_spill] sm:$0xff] }
  0xe0   : > { %v3872_v56 = vcombine.low %v1425_v32, %v1429_v38  ;;  %v1437_v14 = vrot.slane %v381_v63, %v6100_v5  ;;  %v1441_v27 = vrot.slane %v381_v63, %v6102_v6  ;;  %5806 = vst [vmem:[%s6186_s23 + $0x1b0] sm:$0xff] %v5656_v51  ;;  %v1445_v2 = vrot.slane %v381_v63, %v6104_v7  ;;  %v7999_v51 = vld [vmem:[#allocation22_spill] sm:$0xff] }
  0xe1   : > { %v5657_v21 = vadd.f32 %v3853_v61, %v7995_v20  ;;  %v3879_v8 = vrot.slane %v3871_v43, %v6141_v40  ;;  %v1449_v57 = vrot.slane %v381_v63, %v6107_v9  ;;  %v3870_v39 = vcombine.low %v3862_v35, %v3869_v47 }
  0xe2   : > { %v3886_v52 = vrot.slane %v3872_v56, %v6141_v40  ;;  %v3888_v36 = vcombine.low %v1433_v26, %v1437_v14  ;;  %v1453_v28 = vrot.slane %v381_v63, %v6109_v10  ;;  %v3889_v23 = vcombine.low %v1441_v27, %v1445_v2 }
  0xe3   : > { %5807 = vst [vmem:[%s6186_s23 + $0x1b8] sm:$0xff] %v5657_v21  ;;  %v1457_v33 = vrot.slane %v381_v63, %v6111_v11  ;;  %v1461_v48 = vrot.slane %v381_v63, %v6113_v12  ;;  %v1465_v44 = vrot.slane %v382_v30, %v6098_v4  ;;  %v5658_v53 = vadd.f32 %v3870_v39, %v7996_v24  ;;  %v385_v24 = vld [vmem:[%s6096_s16 + $0x108] sm:$0xff] }
  0xe4   : > { %v3887_v18 = vcombine.low %v3879_v8, %v3886_v52  ;;  %v3896_v13 = vrot.slane %v3888_v36, %v6141_v40  ;;  %v3905_v58 = vcombine.low %v1449_v57, %v1453_v28  ;;  %v3903_v17 = vrot.slane %v3889_v23, %v6141_v40  ;;  %v8000_v57 = vld [vmem:[#allocation23_spill] sm:$0xff] }
  0xe5   : > { %v3906_v41 = vcombine.low %v1457_v33, %v1461_v48  ;;  %v1469_v3 = vrot.slane %v382_v30, %v6100_v5  ;;  %v1473_v49 = vrot.slane %v382_v30, %v6102_v6  ;;  %5808 = vst [vmem:[%s6186_s23 + $0x1c0] sm:$0xff] %v5658_v53  ;;  %v1477_v22 = vrot.slane %v382_v30, %v6104_v7  ;;  %v8001_v53 = vld [vmem:[#allocation24_spill] sm:$0xff] }
  0xe6   : > { %v5659_v31 = vadd.f32 %v3887_v18, %v7997_v45  ;;  %v3913_v59 = vrot.slane %v3905_v58, %v6141_v40  ;;  %v1481_v1 = vrot.slane %v382_v30, %v6107_v9  ;;  %v3904_v37 = vcombine.low %v3896_v13, %v3903_v17 }
  0xe7   : > { %v3920_v54 = vrot.slane %v3906_v41, %v6141_v40  ;;  %v3922_v29 = vcombine.low %v1465_v44, %v1469_v3  ;;  %v1485_v63 = vrot.slane %v382_v30, %v6109_v10  ;;  %v3923_v19 = vcombine.low %v1473_v49, %v1477_v22 }
  0xe8   : > { %5809 = vst [vmem:[%s6186_s23 + $0x1c8] sm:$0xff] %v5659_v31  ;;  %v1489_v34 = vrot.slane %v382_v30, %v6111_v11  ;;  %v1493_v62 = vrot.slane %v382_v30, %v6113_v12  ;;  %v1497_v42 = vrot.slane %v383_v16, %v6098_v4  ;;  %v5660_v55 = vadd.f32 %v3904_v37, %v7998_v50  ;;  %v386_v50 = vld [vmem:[%s6096_s16 + $0x110] sm:$0xff] }
  0xe9   : > { %v3921_v0 = vcombine.low %v3913_v59, %v3920_v54  ;;  %v3930_v60 = vrot.slane %v3922_v29, %v6141_v40  ;;  %v3939_v15 = vcombine.low %v1481_v1, %v1485_v63  ;;  %v3937_v46 = vrot.slane %v3923_v19, %v6141_v40  ;;  %v8002_v1 = vld [vmem:[#allocation25_spill] sm:$0xff] }
  0xea   : > { %v3940_v32 = vcombine.low %v1489_v34, %v1493_v62  ;;  %v1501_v38 = vrot.slane %v383_v16, %v6100_v5  ;;  %v1505_v26 = vrot.slane %v383_v16, %v6102_v6  ;;  %5810 = vst [vmem:[%s6186_s23 + $0x1d0] sm:$0xff] %v5660_v55  ;;  %v1509_v43 = vrot.slane %v383_v16, %v6104_v7  ;;  %v8003_v55 = vld [vmem:[#allocation26_spill] sm:$0xff] }
  0xeb   : > { %v5661_v61 = vadd.f32 %v3921_v0, %v7999_v51  ;;  %v3947_v35 = vrot.slane %v3939_v15, %v6141_v40  ;;  %v1513_v47 = vrot.slane %v383_v16, %v6107_v9  ;;  %v3938_v56 = vcombine.low %v3930_v60, %v3937_v46 }
  0xec   : > { %v3954_v14 = vrot.slane %v3940_v32, %v6141_v40  ;;  %v3956_v27 = vcombine.low %v1497_v42, %v1501_v38  ;;  %v1517_v30 = vrot.slane %v383_v16, %v6109_v10  ;;  %v3957_v20 = vcombine.low %v1505_v26, %v1509_v43 }
  0xed   : > { %5811 = vst [vmem:[%s6186_s23 + $0x1d8] sm:$0xff] %v5661_v61  ;;  %v1521_v21 = vrot.slane %v383_v16, %v6111_v11  ;;  %v1525_v8 = vrot.slane %v383_v16, %v6113_v12  ;;  %v1529_v2 = vrot.slane %v384_v25, %v6098_v4  ;;  %v5662_v39 = vadd.f32 %v3938_v56, %v8000_v57  ;;  %v387_v57 = vld [vmem:[%s6096_s16 + $0x118] sm:$0xff] }
  0xee   : > { %v3955_v52 = vcombine.low %v3947_v35, %v3954_v14  ;;  %v3964_v36 = vrot.slane %v3956_v27, %v6141_v40  ;;  %v3973_v28 = vcombine.low %v1513_v47, %v1517_v30  ;;  %v3971_v23 = vrot.slane %v3957_v20, %v6141_v40  ;;  %v8004_v47 = vld [vmem:[#allocation27_spill] sm:$0xff] }
  0xef   : > { %v3974_v33 = vcombine.low %v1521_v21, %v1525_v8  ;;  %v1533_v48 = vrot.slane %v384_v25, %v6100_v5  ;;  %v1537_v44 = vrot.slane %v384_v25, %v6102_v6  ;;  %5812 = vst [vmem:[%s6186_s23 + $0x1e0] sm:$0xff] %v5662_v39  ;;  %v1541_v58 = vrot.slane %v384_v25, %v6104_v7  ;;  %v8005_v39 = vld [vmem:[#allocation28_spill] sm:$0xff] }
  0xf0   : > { %v5663_v18 = vadd.f32 %v3955_v52, %v8001_v53  ;;  %v3981_v13 = vrot.slane %v3973_v28, %v6141_v40  ;;  %v1545_v17 = vrot.slane %v384_v25, %v6107_v9  ;;  %v3972_v41 = vcombine.low %v3964_v36, %v3971_v23 }
  0xf1   : > { %v3988_v3 = vrot.slane %v3974_v33, %v6141_v40  ;;  %v3990_v49 = vcombine.low %v1529_v2, %v1533_v48  ;;  %v1549_v16 = vrot.slane %v384_v25, %v6109_v10  ;;  %v3991_v45 = vcombine.low %v1537_v44, %v1541_v58 }
  0xf2   : > { %5813 = vst [vmem:[%s6186_s23 + $0x1e8] sm:$0xff] %v5663_v18  ;;  %v1553_v31 = vrot.slane %v384_v25, %v6111_v11  ;;  %v1557_v59 = vrot.slane %v384_v25, %v6113_v12  ;;  %v1561_v22 = vrot.slane %v385_v24, %v6098_v4  ;;  %v5664_v37 = vadd.f32 %v3972_v41, %v8002_v1  ;;  %v388_v1 = vld [vmem:[%s6096_s16 + $0x120] sm:$0xff] }
  0xf3   : > { %v3989_v54 = vcombine.low %v3981_v13, %v3988_v3  ;;  %v3998_v29 = vrot.slane %v3990_v49, %v6141_v40  ;;  %v4007_v63 = vcombine.low %v1545_v17, %v1549_v16  ;;  %v4005_v19 = vrot.slane %v3991_v45, %v6141_v40  ;;  %v8006_v17 = vld [vmem:[#allocation29_spill] sm:$0xff] }
  0xf4   : > { %v4008_v34 = vcombine.low %v1553_v31, %v1557_v59  ;;  %v1565_v62 = vrot.slane %v385_v24, %v6100_v5  ;;  %v1569_v42 = vrot.slane %v385_v24, %v6102_v6  ;;  %5814 = vst [vmem:[%s6186_s23 + $0x1f0] sm:$0xff] %v5664_v37  ;;  %v1573_v15 = vrot.slane %v385_v24, %v6104_v7  ;;  %v8007_v37 = vld [vmem:[#allocation30_spill] sm:$0xff] }
  0xf5   : > { %v5665_v0 = vadd.f32 %v3989_v54, %v8003_v55  ;;  %v4015_v60 = vrot.slane %v4007_v63, %v6141_v40  ;;  %v1577_v46 = vrot.slane %v385_v24, %v6107_v9  ;;  %v4006_v32 = vcombine.low %v3998_v29, %v4005_v19 }
  0xf6   : > { %v4022_v38 = vrot.slane %v4008_v34, %v6141_v40  ;;  %v4024_v26 = vcombine.low %v1561_v22, %v1565_v62  ;;  %v1581_v25 = vrot.slane %v385_v24, %v6109_v10  ;;  %v4025_v51 = vcombine.low %v1569_v42, %v1573_v15 }
  0xf7   : > { %5815 = vst [vmem:[%s6186_s23 + $0x1f8] sm:$0xff] %v5665_v0  ;;  %v1585_v61 = vrot.slane %v385_v24, %v6111_v11  ;;  %v1589_v35 = vrot.slane %v385_v24, %v6113_v12  ;;  %v1593_v43 = vrot.slane %v386_v50, %v6098_v4  ;;  %v5666_v56 = vadd.f32 %v4006_v32, %v8004_v47  ;;  %v389_v47 = vld [vmem:[%s6096_s16 + $0x128] sm:$0xff] }
  0xf8   : > { %v4023_v14 = vcombine.low %v4015_v60, %v4022_v38  ;;  %v4032_v27 = vrot.slane %v4024_v26, %v6141_v40  ;;  %v4041_v30 = vcombine.low %v1577_v46, %v1581_v25  ;;  %v4039_v20 = vrot.slane %v4025_v51, %v6141_v40  ;;  %v8008_v46 = vld [vmem:[#allocation31_spill] sm:$0xff] }
  0xf9   : > { %v4042_v21 = vcombine.low %v1585_v61, %v1589_v35  ;;  %v1597_v8 = vrot.slane %v386_v50, %v6100_v5  ;;  %v1601_v2 = vrot.slane %v386_v50, %v6102_v6  ;;  %5816 = vst [vmem:[%s6186_s23 + $0x200] sm:$0xff] %v5666_v56  ;;  %v1605_v28 = vrot.slane %v386_v50, %v6104_v7  ;;  %v8009_v56 = vld [vmem:[#allocation32_spill] sm:$0xff] }
  0xfa   : > { %v5667_v52 = vadd.f32 %v4023_v14, %v8005_v39  ;;  %v4049_v36 = vrot.slane %v4041_v30, %v6141_v40  ;;  %v1609_v23 = vrot.slane %v386_v50, %v6107_v9  ;;  %v4040_v33 = vcombine.low %v4032_v27, %v4039_v20 }
  0xfb   : > { %v4056_v48 = vrot.slane %v4042_v21, %v6141_v40  ;;  %v4058_v44 = vcombine.low %v1593_v43, %v1597_v8  ;;  %v1613_v24 = vrot.slane %v386_v50, %v6109_v10  ;;  %v4059_v53 = vcombine.low %v1601_v2, %v1605_v28 }
  0xfc   : > { %5817 = vst [vmem:[%s6186_s23 + $0x208] sm:$0xff] %v5667_v52  ;;  %v1617_v18 = vrot.slane %v386_v50, %v6111_v11  ;;  %v1621_v13 = vrot.slane %v386_v50, %v6113_v12  ;;  %v1625_v58 = vrot.slane %v387_v57, %v6098_v4  ;;  %v5668_v41 = vadd.f32 %v4040_v33, %v8006_v17  ;;  %v390_v17 = vld [vmem:[%s6096_s16 + $0x130] sm:$0xff] }
  0xfd   : > { %v4057_v3 = vcombine.low %v4049_v36, %v4056_v48  ;;  %v4066_v49 = vrot.slane %v4058_v44, %v6141_v40  ;;  %v4075_v16 = vcombine.low %v1609_v23, %v1613_v24  ;;  %v4073_v45 = vrot.slane %v4059_v53, %v6141_v40  ;;  %v8010_v23 = vld [vmem:[#allocation33_spill] sm:$0xff] }
  0xfe   : > { %v4076_v31 = vcombine.low %v1617_v18, %v1621_v13  ;;  %v1629_v59 = vrot.slane %v387_v57, %v6100_v5  ;;  %v1633_v22 = vrot.slane %v387_v57, %v6102_v6  ;;  %5818 = vst [vmem:[%s6186_s23 + $0x210] sm:$0xff] %v5668_v41  ;;  %v1637_v63 = vrot.slane %v387_v57, %v6104_v7  ;;  %v8011_v41 = vld [vmem:[#allocation34_spill] sm:$0xff] }
  0xff   : > { %v5669_v54 = vadd.f32 %v4057_v3, %v8007_v37  ;;  %v4083_v29 = vrot.slane %v4075_v16, %v6141_v40  ;;  %v1641_v19 = vrot.slane %v387_v57, %v6107_v9  ;;  %v4074_v34 = vcombine.low %v4066_v49, %v4073_v45 }
 0x100   : > { %v4090_v62 = vrot.slane %v4076_v31, %v6141_v40  ;;  %v4092_v42 = vcombine.low %v1625_v58, %v1629_v59  ;;  %v1645_v50 = vrot.slane %v387_v57, %v6109_v10  ;;  %v4093_v55 = vcombine.low %v1633_v22, %v1637_v63 }
 0x101   : > { %5819 = vst [vmem:[%s6186_s23 + $0x218] sm:$0xff] %v5669_v54  ;;  %v1649_v0 = vrot.slane %v387_v57, %v6111_v11  ;;  %v1653_v60 = vrot.slane %v387_v57, %v6113_v12  ;;  %v1657_v15 = vrot.slane %v388_v1, %v6098_v4  ;;  %v5670_v32 = vadd.f32 %v4074_v34, %v8008_v46  ;;  %v391_v46 = vld [vmem:[%s6096_s16 + $0x138] sm:$0xff] }
 0x102   : > { %v4091_v38 = vcombine.low %v4083_v29, %v4090_v62  ;;  %v4100_v26 = vrot.slane %v4092_v42, %v6141_v40  ;;  %v4109_v25 = vcombine.low %v1641_v19, %v1645_v50  ;;  %v4107_v51 = vrot.slane %v4093_v55, %v6141_v40  ;;  %v8012_v19 = vld [vmem:[#allocation35_spill] sm:$0xff] }
 0x103   : > { %v4110_v61 = vcombine.low %v1649_v0, %v1653_v60  ;;  %v1661_v35 = vrot.slane %v388_v1, %v6100_v5  ;;  %v1665_v43 = vrot.slane %v388_v1, %v6102_v6  ;;  %5820 = vst [vmem:[%s6186_s23 + $0x220] sm:$0xff] %v5670_v32  ;;  %v1669_v30 = vrot.slane %v388_v1, %v6104_v7  ;;  %v8013_v32 = vld [vmem:[#allocation36_spill] sm:$0xff] }
 0x104   : > { %v5671_v14 = vadd.f32 %v4091_v38, %v8009_v56  ;;  %v4117_v27 = vrot.slane %v4109_v25, %v6141_v40  ;;  %v1673_v20 = vrot.slane %v388_v1, %v6107_v9  ;;  %v4108_v21 = vcombine.low %v4100_v26, %v4107_v51 }
 0x105   : > { %v4124_v8 = vrot.slane %v4110_v61, %v6141_v40  ;;  %v4126_v2 = vcombine.low %v1657_v15, %v1661_v35  ;;  %v1677_v57 = vrot.slane %v388_v1, %v6109_v10  ;;  %v4127_v39 = vcombine.low %v1665_v43, %v1669_v30 }
 0x106   : > { %5821 = vst [vmem:[%s6186_s23 + $0x228] sm:$0xff] %v5671_v14  ;;  %v1681_v52 = vrot.slane %v388_v1, %v6111_v11  ;;  %v1685_v36 = vrot.slane %v388_v1, %v6113_v12  ;;  %v1689_v28 = vrot.slane %v389_v47, %v6098_v4  ;;  %v5672_v33 = vadd.f32 %v4108_v21, %v8010_v23  ;;  %v392_v23 = vld [vmem:[%s6096_s16 + $0x140] sm:$0xff] }
 0x107   : > { %v4125_v48 = vcombine.low %v4117_v27, %v4124_v8  ;;  %v4134_v44 = vrot.slane %v4126_v2, %v6141_v40  ;;  %v4143_v24 = vcombine.low %v1673_v20, %v1677_v57  ;;  %v4141_v53 = vrot.slane %v4127_v39, %v6141_v40  ;;  %v8014_v20 = vld [vmem:[#allocation37_spill] sm:$0xff] }
 0x108   : > { %v4144_v18 = vcombine.low %v1681_v52, %v1685_v36  ;;  %v1693_v13 = vrot.slane %v389_v47, %v6100_v5  ;;  %v1697_v58 = vrot.slane %v389_v47, %v6102_v6  ;;  %5822 = vst [vmem:[%s6186_s23 + $0x230] sm:$0xff] %v5672_v33  ;;  %v1701_v16 = vrot.slane %v389_v47, %v6104_v7  ;;  %v8015_v33 = vld [vmem:[#allocation38_spill] sm:$0xff] }
 0x109   : > { %v5673_v3 = vadd.f32 %v4125_v48, %v8011_v41  ;;  %v4151_v49 = vrot.slane %v4143_v24, %v6141_v40  ;;  %v1705_v45 = vrot.slane %v389_v47, %v6107_v9  ;;  %v4142_v31 = vcombine.low %v4134_v44, %v4141_v53 }
 0x10a   : > { %v4158_v59 = vrot.slane %v4144_v18, %v6141_v40  ;;  %v4160_v22 = vcombine.low %v1689_v28, %v1693_v13  ;;  %v1709_v1 = vrot.slane %v389_v47, %v6109_v10  ;;  %v4161_v37 = vcombine.low %v1697_v58, %v1701_v16 }
 0x10b   : > { %5823 = vst [vmem:[%s6186_s23 + $0x238] sm:$0xff] %v5673_v3  ;;  %v1713_v54 = vrot.slane %v389_v47, %v6111_v11  ;;  %v1717_v29 = vrot.slane %v389_v47, %v6113_v12  ;;  %v1721_v63 = vrot.slane %v390_v17, %v6098_v4  ;;  %v5674_v34 = vadd.f32 %v4142_v31, %v8012_v19  ;;  %v393_v19 = vld [vmem:[%s6096_s16 + $0x148] sm:$0xff] }
 0x10c   : > { %v4159_v62 = vcombine.low %v4151_v49, %v4158_v59  ;;  %v4168_v42 = vrot.slane %v4160_v22, %v6141_v40  ;;  %v4177_v50 = vcombine.low %v1705_v45, %v1709_v1  ;;  %v4175_v55 = vrot.slane %v4161_v37, %v6141_v40  ;;  %v8016_v45 = vld [vmem:[#allocation39_spill] sm:$0xff] }
 0x10d   : > { %v4178_v0 = vcombine.low %v1713_v54, %v1717_v29  ;;  %v1725_v60 = vrot.slane %v390_v17, %v6100_v5  ;;  %v1729_v15 = vrot.slane %v390_v17, %v6102_v6  ;;  %5824 = vst [vmem:[%s6186_s23 + $0x240] sm:$0xff] %v5674_v34  ;;  %v1733_v25 = vrot.slane %v390_v17, %v6104_v7  ;;  %v8017_v34 = vld [vmem:[#allocation40_spill] sm:$0xff] }
 0x10e   : > { %v5675_v38 = vadd.f32 %v4159_v62, %v8013_v32  ;;  %v4185_v26 = vrot.slane %v4177_v50, %v6141_v40  ;;  %v1737_v51 = vrot.slane %v390_v17, %v6107_v9  ;;  %v4176_v61 = vcombine.low %v4168_v42, %v4175_v55 }
 0x10f   : > { %v4192_v35 = vrot.slane %v4178_v0, %v6141_v40  ;;  %v4194_v43 = vcombine.low %v1721_v63, %v1725_v60  ;;  %v1741_v47 = vrot.slane %v390_v17, %v6109_v10  ;;  %v4195_v56 = vcombine.low %v1729_v15, %v1733_v25 }
 0x110   : > { %5825 = vst [vmem:[%s6186_s23 + $0x248] sm:$0xff] %v5675_v38  ;;  %v1745_v14 = vrot.slane %v390_v17, %v6111_v11  ;;  %v1749_v27 = vrot.slane %v390_v17, %v6113_v12  ;;  %v1753_v30 = vrot.slane %v391_v46, %v6098_v4  ;;  %v5676_v21 = vadd.f32 %v4176_v61, %v8014_v20  ;;  %v394_v20 = vld [vmem:[%s6096_s16 + $0x150] sm:$0xff] }
 0x111   : > { %v4193_v8 = vcombine.low %v4185_v26, %v4192_v35  ;;  %v4202_v2 = vrot.slane %v4194_v43, %v6141_v40  ;;  %v4211_v57 = vcombine.low %v1737_v51, %v1741_v47  ;;  %v4209_v39 = vrot.slane %v4195_v56, %v6141_v40  ;;  %v8018_v51 = vld [vmem:[#allocation41_spill] sm:$0xff] }
 0x112   : > { %v4212_v52 = vcombine.low %v1745_v14, %v1749_v27  ;;  %v1757_v36 = vrot.slane %v391_v46, %v6100_v5  ;;  %v1761_v28 = vrot.slane %v391_v46, %v6102_v6  ;;  %5826 = vst [vmem:[%s6186_s23 + $0x250] sm:$0xff] %v5676_v21  ;;  %v1765_v24 = vrot.slane %v391_v46, %v6104_v7  ;;  %v8019_v21 = vld [vmem:[#allocation42_spill] sm:$0xff] }
 0x113   : > { %v5677_v48 = vadd.f32 %v4193_v8, %v8015_v33  ;;  %v4219_v44 = vrot.slane %v4211_v57, %v6141_v40  ;;  %v1769_v53 = vrot.slane %v391_v46, %v6107_v9  ;;  %v4210_v18 = vcombine.low %v4202_v2, %v4209_v39 }
 0x114   : > { %v4226_v13 = vrot.slane %v4212_v52, %v6141_v40  ;;  %v4228_v58 = vcombine.low %v1753_v30, %v1757_v36  ;;  %v1773_v17 = vrot.slane %v391_v46, %v6109_v10  ;;  %v4229_v41 = vcombine.low %v1761_v28, %v1765_v24 }
 0x115   : > { %5827 = vst [vmem:[%s6186_s23 + $0x258] sm:$0xff] %v5677_v48  ;;  %v1777_v3 = vrot.slane %v391_v46, %v6111_v11  ;;  %v1781_v49 = vrot.slane %v391_v46, %v6113_v12  ;;  %v1785_v16 = vrot.slane %v392_v23, %v6098_v4  ;;  %v5678_v31 = vadd.f32 %v4210_v18, %v8016_v45  ;;  %v395_v45 = vld [vmem:[%s6096_s16 + $0x158] sm:$0xff] }
 0x116   : > { %v4227_v59 = vcombine.low %v4219_v44, %v4226_v13  ;;  %v4236_v22 = vrot.slane %v4228_v58, %v6141_v40  ;;  %v4245_v1 = vcombine.low %v1769_v53, %v1773_v17  ;;  %v4243_v37 = vrot.slane %v4229_v41, %v6141_v40  ;;  %v8020_v53 = vld [vmem:[#allocation43_spill] sm:$0xff] }
 0x117   : > { %v4246_v54 = vcombine.low %v1777_v3, %v1781_v49  ;;  %v1789_v29 = vrot.slane %v392_v23, %v6100_v5  ;;  %v1793_v63 = vrot.slane %v392_v23, %v6102_v6  ;;  %5828 = vst [vmem:[%s6186_s23 + $0x260] sm:$0xff] %v5678_v31  ;;  %v1797_v50 = vrot.slane %v392_v23, %v6104_v7  ;;  %v8021_v31 = vld [vmem:[#allocation44_spill] sm:$0xff] }
 0x118   : > { %v5679_v62 = vadd.f32 %v4227_v59, %v8017_v34  ;;  %v4253_v42 = vrot.slane %v4245_v1, %v6141_v40  ;;  %v1801_v55 = vrot.slane %v392_v23, %v6107_v9  ;;  %v4244_v0 = vcombine.low %v4236_v22, %v4243_v37 }
 0x119   : > { %v4260_v60 = vrot.slane %v4246_v54, %v6141_v40  ;;  %v4262_v15 = vcombine.low %v1785_v16, %v1789_v29  ;;  %v1805_v46 = vrot.slane %v392_v23, %v6109_v10  ;;  %v4263_v32 = vcombine.low %v1793_v63, %v1797_v50 }
 0x11a   : > { %5829 = vst [vmem:[%s6186_s23 + $0x268] sm:$0xff] %v5679_v62  ;;  %v1809_v38 = vrot.slane %v392_v23, %v6111_v11  ;;  %v1813_v26 = vrot.slane %v392_v23, %v6113_v12  ;;  %v1817_v25 = vrot.slane %v393_v19, %v6098_v4  ;;  %v5680_v61 = vadd.f32 %v4244_v0, %v8018_v51  ;;  %v396_v51 = vld [vmem:[%s6096_s16 + $0x160] sm:$0xff] }
 0x11b   : > { %v4261_v35 = vcombine.low %v4253_v42, %v4260_v60  ;;  %v4270_v43 = vrot.slane %v4262_v15, %v6141_v40  ;;  %v4279_v47 = vcombine.low %v1801_v55, %v1805_v46  ;;  %v4277_v56 = vrot.slane %v4263_v32, %v6141_v40  ;;  %v8022_v55 = vld [vmem:[#allocation45_spill] sm:$0xff] }
 0x11c   : > { %v4280_v14 = vcombine.low %v1809_v38, %v1813_v26  ;;  %v1821_v27 = vrot.slane %v393_v19, %v6100_v5  ;;  %v1825_v30 = vrot.slane %v393_v19, %v6102_v6  ;;  %5830 = vst [vmem:[%s6186_s23 + $0x270] sm:$0xff] %v5680_v61  ;;  %v1829_v57 = vrot.slane %v393_v19, %v6104_v7  ;;  %v8023_v61 = vld [vmem:[#allocation46_spill] sm:$0xff] }
 0x11d   : > { %v5681_v8 = vadd.f32 %v4261_v35, %v8019_v21  ;;  %v4287_v2 = vrot.slane %v4279_v47, %v6141_v40  ;;  %v1833_v39 = vrot.slane %v393_v19, %v6107_v9  ;;  %v4278_v52 = vcombine.low %v4270_v43, %v4277_v56 }
 0x11e   : > { %v4294_v36 = vrot.slane %v4280_v14, %v6141_v40  ;;  %v4296_v28 = vcombine.low %v1817_v25, %v1821_v27  ;;  %v1837_v23 = vrot.slane %v393_v19, %v6109_v10  ;;  %v4297_v33 = vcombine.low %v1825_v30, %v1829_v57 }
 0x11f   : > { %5831 = vst [vmem:[%s6186_s23 + $0x278] sm:$0xff] %v5681_v8  ;;  %v1841_v48 = vrot.slane %v393_v19, %v6111_v11  ;;  %v1845_v44 = vrot.slane %v393_v19, %v6113_v12  ;;  %v1849_v24 = vrot.slane %v394_v20, %v6098_v4  ;;  %v5682_v18 = vadd.f32 %v4278_v52, %v8020_v53  ;;  %v397_v53 = vld [vmem:[%s6096_s16 + $0x168] sm:$0xff] }
 0x120   : > { %v4295_v13 = vcombine.low %v4287_v2, %v4294_v36  ;;  %v4304_v58 = vrot.slane %v4296_v28, %v6141_v40  ;;  %v4313_v17 = vcombine.low %v1833_v39, %v1837_v23  ;;  %v4311_v41 = vrot.slane %v4297_v33, %v6141_v40  ;;  %v8024_v39 = vld [vmem:[#allocation47_spill] sm:$0xff] }
 0x121   : > { %v4314_v3 = vcombine.low %v1841_v48, %v1845_v44  ;;  %v1853_v49 = vrot.slane %v394_v20, %v6100_v5  ;;  %v1857_v16 = vrot.slane %v394_v20, %v6102_v6  ;;  %5832 = vst [vmem:[%s6186_s23 + $0x280] sm:$0xff] %v5682_v18  ;;  %v1861_v1 = vrot.slane %v394_v20, %v6104_v7  ;;  %v8025_v18 = vld [vmem:[#allocation48_spill] sm:$0xff] }
 0x122   : > { %v5683_v59 = vadd.f32 %v4295_v13, %v8021_v31  ;;  %v4321_v22 = vrot.slane %v4313_v17, %v6141_v40  ;;  %v1865_v37 = vrot.slane %v394_v20, %v6107_v9  ;;  %v4312_v54 = vcombine.low %v4304_v58, %v4311_v41 }
 0x123   : > { %v4328_v29 = vrot.slane %v4314_v3, %v6141_v40  ;;  %v4330_v63 = vcombine.low %v1849_v24, %v1853_v49  ;;  %v1869_v19 = vrot.slane %v394_v20, %v6109_v10  ;;  %v4331_v34 = vcombine.low %v1857_v16, %v1861_v1 }
 0x124   : > { %5833 = vst [vmem:[%s6186_s23 + $0x288] sm:$0xff] %v5683_v59  ;;  %v1873_v62 = vrot.slane %v394_v20, %v6111_v11  ;;  %v1877_v42 = vrot.slane %v394_v20, %v6113_v12  ;;  %v1881_v50 = vrot.slane %v395_v45, %v6098_v4  ;;  %v5684_v0 = vadd.f32 %v4312_v54, %v8022_v55  ;;  %v398_v55 = vld [vmem:[%s6096_s16 + $0x170] sm:$0xff] }
 0x125   : > { %v4329_v60 = vcombine.low %v4321_v22, %v4328_v29  ;;  %v4338_v15 = vrot.slane %v4330_v63, %v6141_v40  ;;  %v4347_v46 = vcombine.low %v1865_v37, %v1869_v19  ;;  %v4345_v32 = vrot.slane %v4331_v34, %v6141_v40  ;;  %v8026_v37 = vld [vmem:[#allocation49_spill] sm:$0xff] }
 0x126   : > { %v4348_v38 = vcombine.low %v1873_v62, %v1877_v42  ;;  %v1885_v26 = vrot.slane %v395_v45, %v6100_v5  ;;  %v1889_v25 = vrot.slane %v395_v45, %v6102_v6  ;;  %5834 = vst [vmem:[%s6186_s23 + $0x290] sm:$0xff] %v5684_v0  ;;  %v1893_v47 = vrot.slane %v395_v45, %v6104_v7  ;;  %v8027_v0 = vld [vmem:[#allocation50_spill] sm:$0xff] }
 0x127   : > { %v5685_v35 = vadd.f32 %v4329_v60, %v8023_v61  ;;  %v4355_v43 = vrot.slane %v4347_v46, %v6141_v40  ;;  %v1897_v56 = vrot.slane %v395_v45, %v6107_v9  ;;  %v4346_v14 = vcombine.low %v4338_v15, %v4345_v32 }
 0x128   : > { %v4362_v27 = vrot.slane %v4348_v38, %v6141_v40  ;;  %v4364_v30 = vcombine.low %v1881_v50, %v1885_v26  ;;  %v1901_v20 = vrot.slane %v395_v45, %v6109_v10  ;;  %v4365_v21 = vcombine.low %v1889_v25, %v1893_v47 }
 0x129   : > { %5835 = vst [vmem:[%s6186_s23 + $0x298] sm:$0xff] %v5685_v35  ;;  %v1905_v8 = vrot.slane %v395_v45, %v6111_v11  ;;  %v1909_v2 = vrot.slane %v395_v45, %v6113_v12  ;;  %v1913_v57 = vrot.slane %v396_v51, %v6098_v4  ;;  %v5686_v52 = vadd.f32 %v4346_v14, %v8024_v39  ;;  %v399_v39 = vld [vmem:[%s6096_s16 + $0x178] sm:$0xff] }
 0x12a   : > { %v4363_v36 = vcombine.low %v4355_v43, %v4362_v27  ;;  %v4372_v28 = vrot.slane %v4364_v30, %v6141_v40  ;;  %v4381_v23 = vcombine.low %v1897_v56, %v1901_v20  ;;  %v4379_v33 = vrot.slane %v4365_v21, %v6141_v40  ;;  %v8028_v56 = vld [vmem:[#allocation51_spill] sm:$0xff] }
 0x12b   : > { %v4382_v48 = vcombine.low %v1905_v8, %v1909_v2  ;;  %v1917_v44 = vrot.slane %v396_v51, %v6100_v5  ;;  %v1921_v24 = vrot.slane %v396_v51, %v6102_v6  ;;  %5836 = vst [vmem:[%s6186_s23 + $0x2a0] sm:$0xff] %v5686_v52  ;;  %v1925_v17 = vrot.slane %v396_v51, %v6104_v7  ;;  %v8029_v52 = vld [vmem:[#allocation52_spill] sm:$0xff] }
 0x12c   : > { %v5687_v13 = vadd.f32 %v4363_v36, %v8025_v18  ;;  %v4389_v58 = vrot.slane %v4381_v23, %v6141_v40  ;;  %v1929_v41 = vrot.slane %v396_v51, %v6107_v9  ;;  %v4380_v3 = vcombine.low %v4372_v28, %v4379_v33 }
 0x12d   : > { %v4396_v49 = vrot.slane %v4382_v48, %v6141_v40  ;;  %v4398_v16 = vcombine.low %v1913_v57, %v1917_v44  ;;  %v1933_v45 = vrot.slane %v396_v51, %v6109_v10  ;;  %v4399_v31 = vcombine.low %v1921_v24, %v1925_v17 }
 0x12e   : > { %5837 = vst [vmem:[%s6186_s23 + $0x2a8] sm:$0xff] %v5687_v13  ;;  %v1937_v59 = vrot.slane %v396_v51, %v6111_v11  ;;  %v1941_v22 = vrot.slane %v396_v51, %v6113_v12  ;;  %v1945_v1 = vrot.slane %v397_v53, %v6098_v4  ;;  %v5688_v54 = vadd.f32 %v4380_v3, %v8026_v37  ;;  %v400_v37 = vld [vmem:[%s6096_s16 + $0x180] sm:$0xff] }
 0x12f   : > { %v4397_v29 = vcombine.low %v4389_v58, %v4396_v49  ;;  %v4406_v63 = vrot.slane %v4398_v16, %v6141_v40  ;;  %v4415_v19 = vcombine.low %v1929_v41, %v1933_v45  ;;  %v4413_v34 = vrot.slane %v4399_v31, %v6141_v40  ;;  %v8030_v41 = vld [vmem:[#allocation53_spill] sm:$0xff] }
 0x130   : > { %v4416_v62 = vcombine.low %v1937_v59, %v1941_v22  ;;  %v1949_v42 = vrot.slane %v397_v53, %v6100_v5  ;;  %v1953_v50 = vrot.slane %v397_v53, %v6102_v6  ;;  %5838 = vst [vmem:[%s6186_s23 + $0x2b0] sm:$0xff] %v5688_v54  ;;  %v1957_v46 = vrot.slane %v397_v53, %v6104_v7  ;;  %v8031_v54 = vld [vmem:[#allocation54_spill] sm:$0xff] }
 0x131   : > { %v5689_v60 = vadd.f32 %v4397_v29, %v8027_v0  ;;  %v4423_v15 = vrot.slane %v4415_v19, %v6141_v40  ;;  %v1961_v32 = vrot.slane %v397_v53, %v6107_v9  ;;  %v4414_v38 = vcombine.low %v4406_v63, %v4413_v34 }
 0x132   : > { %v4430_v26 = vrot.slane %v4416_v62, %v6141_v40  ;;  %v4432_v25 = vcombine.low %v1945_v1, %v1949_v42  ;;  %v1965_v51 = vrot.slane %v397_v53, %v6109_v10  ;;  %v4433_v61 = vcombine.low %v1953_v50, %v1957_v46 }
 0x133   : > { %5839 = vst [vmem:[%s6186_s23 + $0x2b8] sm:$0xff] %v5689_v60  ;;  %v1969_v35 = vrot.slane %v397_v53, %v6111_v11  ;;  %v1973_v43 = vrot.slane %v397_v53, %v6113_v12  ;;  %v1977_v47 = vrot.slane %v398_v55, %v6098_v4  ;;  %v5690_v14 = vadd.f32 %v4414_v38, %v8028_v56  ;;  %v401_v56 = vld [vmem:[%s6096_s16 + $0x188] sm:$0xff] }
 0x134   : > { %v4431_v27 = vcombine.low %v4423_v15, %v4430_v26  ;;  %v4440_v30 = vrot.slane %v4432_v25, %v6141_v40  ;;  %v4449_v20 = vcombine.low %v1961_v32, %v1965_v51  ;;  %v4447_v21 = vrot.slane %v4433_v61, %v6141_v40  ;;  %v8032_v32 = vld [vmem:[#allocation55_spill] sm:$0xff] }
 0x135   : > { %v4450_v8 = vcombine.low %v1969_v35, %v1973_v43  ;;  %v1981_v2 = vrot.slane %v398_v55, %v6100_v5  ;;  %v1985_v57 = vrot.slane %v398_v55, %v6102_v6  ;;  %5840 = vst [vmem:[%s6186_s23 + $0x2c0] sm:$0xff] %v5690_v14  ;;  %v1989_v23 = vrot.slane %v398_v55, %v6104_v7  ;;  %v8033_v14 = vld [vmem:[#allocation56_spill] sm:$0xff] }
 0x136   : > { %v5691_v36 = vadd.f32 %v4431_v27, %v8029_v52  ;;  %v4457_v28 = vrot.slane %v4449_v20, %v6141_v40  ;;  %v1993_v33 = vrot.slane %v398_v55, %v6107_v9  ;;  %v4448_v48 = vcombine.low %v4440_v30, %v4447_v21 }
 0x137   : > { %v4464_v44 = vrot.slane %v4450_v8, %v6141_v40  ;;  %v4466_v24 = vcombine.low %v1977_v47, %v1981_v2  ;;  %v1997_v53 = vrot.slane %v398_v55, %v6109_v10  ;;  %v4467_v18 = vcombine.low %v1985_v57, %v1989_v23 }
 0x138   : > { %5841 = vst [vmem:[%s6186_s23 + $0x2c8] sm:$0xff] %v5691_v36  ;;  %v2001_v13 = vrot.slane %v398_v55, %v6111_v11  ;;  %v2005_v58 = vrot.slane %v398_v55, %v6113_v12  ;;  %v2009_v17 = vrot.slane %v399_v39, %v6098_v4  ;;  %v5692_v3 = vadd.f32 %v4448_v48, %v8030_v41  ;;  %v402_v41 = vld [vmem:[%s6096_s16 + $0x190] sm:$0xff] }
 0x139   : > { %v4465_v49 = vcombine.low %v4457_v28, %v4464_v44  ;;  %v4474_v16 = vrot.slane %v4466_v24, %v6141_v40  ;;  %v4483_v45 = vcombine.low %v1993_v33, %v1997_v53  ;;  %v4481_v31 = vrot.slane %v4467_v18, %v6141_v40  ;;  %v8034_v33 = vld [vmem:[#allocation57_spill] sm:$0xff] }
 0x13a   : > { %v4484_v59 = vcombine.low %v2001_v13, %v2005_v58  ;;  %v2013_v22 = vrot.slane %v399_v39, %v6100_v5  ;;  %v2017_v1 = vrot.slane %v399_v39, %v6102_v6  ;;  %5842 = vst [vmem:[%s6186_s23 + $0x2d0] sm:$0xff] %v5692_v3  ;;  %v2021_v19 = vrot.slane %v399_v39, %v6104_v7  ;;  %v8035_v3 = vld [vmem:[#allocation58_spill] sm:$0xff] }
 0x13b   : > { %v5693_v29 = vadd.f32 %v4465_v49, %v8031_v54  ;;  %v4491_v63 = vrot.slane %v4483_v45, %v6141_v40  ;;  %v2025_v34 = vrot.slane %v399_v39, %v6107_v9  ;;  %v4482_v62 = vcombine.low %v4474_v16, %v4481_v31 }
 0x13c   : > { %v4498_v42 = vrot.slane %v4484_v59, %v6141_v40  ;;  %v4500_v50 = vcombine.low %v2009_v17, %v2013_v22  ;;  %v2029_v55 = vrot.slane %v399_v39, %v6109_v10  ;;  %v4501_v0 = vcombine.low %v2017_v1, %v2021_v19 }
 0x13d   : > { %5843 = vst [vmem:[%s6186_s23 + $0x2d8] sm:$0xff] %v5693_v29  ;;  %v2033_v60 = vrot.slane %v399_v39, %v6111_v11  ;;  %v2037_v15 = vrot.slane %v399_v39, %v6113_v12  ;;  %v2041_v46 = vrot.slane %v400_v37, %v6098_v4  ;;  %v5694_v38 = vadd.f32 %v4482_v62, %v8032_v32  ;;  %v403_v32 = vld [vmem:[%s6096_s16 + $0x198] sm:$0xff] }
 0x13e   : > { %v4499_v26 = vcombine.low %v4491_v63, %v4498_v42  ;;  %v4508_v25 = vrot.slane %v4500_v50, %v6141_v40  ;;  %v4517_v51 = vcombine.low %v2025_v34, %v2029_v55  ;;  %v4515_v61 = vrot.slane %v4501_v0, %v6141_v40  ;;  %v8036_v34 = vld [vmem:[#allocation59_spill] sm:$0xff] }
 0x13f   : > { %v4518_v35 = vcombine.low %v2033_v60, %v2037_v15  ;;  %v2045_v43 = vrot.slane %v400_v37, %v6100_v5  ;;  %v2049_v47 = vrot.slane %v400_v37, %v6102_v6  ;;  %5844 = vst [vmem:[%s6186_s23 + $0x2e0] sm:$0xff] %v5694_v38  ;;  %v2053_v20 = vrot.slane %v400_v37, %v6104_v7  ;;  %v8037_v38 = vld [vmem:[#allocation60_spill] sm:$0xff] }
 0x140   : > { %v5695_v27 = vadd.f32 %v4499_v26, %v8033_v14  ;;  %v4525_v30 = vrot.slane %v4517_v51, %v6141_v40  ;;  %v2057_v21 = vrot.slane %v400_v37, %v6107_v9  ;;  %v4516_v8 = vcombine.low %v4508_v25, %v4515_v61 }
 0x141   : > { %v4532_v2 = vrot.slane %v4518_v35, %v6141_v40  ;;  %v4534_v57 = vcombine.low %v2041_v46, %v2045_v43  ;;  %v2061_v39 = vrot.slane %v400_v37, %v6109_v10  ;;  %v4535_v52 = vcombine.low %v2049_v47, %v2053_v20 }
 0x142   : > { %5845 = vst [vmem:[%s6186_s23 + $0x2e8] sm:$0xff] %v5695_v27  ;;  %v2065_v36 = vrot.slane %v400_v37, %v6111_v11  ;;  %v2069_v28 = vrot.slane %v400_v37, %v6113_v12  ;;  %v2073_v23 = vrot.slane %v401_v56, %v6098_v4  ;;  %v5696_v48 = vadd.f32 %v4516_v8, %v8034_v33  ;;  %v404_v33 = vld [vmem:[%s6096_s16 + $0x1a0] sm:$0xff] }
 0x143   : > { %v4533_v44 = vcombine.low %v4525_v30, %v4532_v2  ;;  %v4542_v24 = vrot.slane %v4534_v57, %v6141_v40  ;;  %v4551_v53 = vcombine.low %v2057_v21, %v2061_v39  ;;  %v4549_v18 = vrot.slane %v4535_v52, %v6141_v40  ;;  %v8038_v21 = vld [vmem:[#allocation61_spill] sm:$0xff] }
 0x144   : > { %v4552_v13 = vcombine.low %v2065_v36, %v2069_v28  ;;  %v2077_v58 = vrot.slane %v401_v56, %v6100_v5  ;;  %v2081_v17 = vrot.slane %v401_v56, %v6102_v6  ;;  %5846 = vst [vmem:[%s6186_s23 + $0x2f0] sm:$0xff] %v5696_v48  ;;  %v2085_v45 = vrot.slane %v401_v56, %v6104_v7  ;;  %v8039_v48 = vld [vmem:[#allocation62_spill] sm:$0xff] }
 0x145   : > { %v5697_v49 = vadd.f32 %v4533_v44, %v8035_v3  ;;  %v4559_v16 = vrot.slane %v4551_v53, %v6141_v40  ;;  %v2089_v31 = vrot.slane %v401_v56, %v6107_v9  ;;  %v4550_v59 = vcombine.low %v4542_v24, %v4549_v18 }
 0x146   : > { %v4566_v22 = vrot.slane %v4552_v13, %v6141_v40  ;;  %v4568_v1 = vcombine.low %v2073_v23, %v2077_v58  ;;  %v2093_v37 = vrot.slane %v401_v56, %v6109_v10  ;;  %v4569_v54 = vcombine.low %v2081_v17, %v2085_v45 }
 0x147   : > { %5847 = vst [vmem:[%s6186_s23 + $0x2f8] sm:$0xff] %v5697_v49  ;;  %v2097_v29 = vrot.slane %v401_v56, %v6111_v11  ;;  %v2101_v63 = vrot.slane %v401_v56, %v6113_v12  ;;  %v2105_v19 = vrot.slane %v402_v41, %v6098_v4  ;;  %v5698_v62 = vadd.f32 %v4550_v59, %v8036_v34  ;;  %v405_v34 = vld [vmem:[%s6096_s16 + $0x1a8] sm:$0xff] }
 0x148   : > { %v4567_v42 = vcombine.low %v4559_v16, %v4566_v22  ;;  %v4576_v50 = vrot.slane %v4568_v1, %v6141_v40  ;;  %v4585_v55 = vcombine.low %v2089_v31, %v2093_v37  ;;  %v4583_v0 = vrot.slane %v4569_v54, %v6141_v40  ;;  %v8040_v31 = vld [vmem:[#allocation63_spill] sm:$0xff] }
 0x149   : > { %v4586_v60 = vcombine.low %v2097_v29, %v2101_v63  ;;  %v2109_v15 = vrot.slane %v402_v41, %v6100_v5  ;;  %v2113_v46 = vrot.slane %v402_v41, %v6102_v6  ;;  %5848 = vst [vmem:[%s6186_s23 + $0x300] sm:$0xff] %v5698_v62  ;;  %v2117_v51 = vrot.slane %v402_v41, %v6104_v7  ;;  %v8041_v62 = vld [vmem:[#allocation64_spill] sm:$0xff] }
 0x14a   : > { %v5699_v26 = vadd.f32 %v4567_v42, %v8037_v38  ;;  %v4593_v25 = vrot.slane %v4585_v55, %v6141_v40  ;;  %v2121_v61 = vrot.slane %v402_v41, %v6107_v9  ;;  %v4584_v35 = vcombine.low %v4576_v50, %v4583_v0 }
 0x14b   : > { %v4600_v43 = vrot.slane %v4586_v60, %v6141_v40  ;;  %v4602_v47 = vcombine.low %v2105_v19, %v2109_v15  ;;  %v2125_v56 = vrot.slane %v402_v41, %v6109_v10  ;;  %v4603_v14 = vcombine.low %v2113_v46, %v2117_v51 }
 0x14c   : > { %5849 = vst [vmem:[%s6186_s23 + $0x308] sm:$0xff] %v5699_v26  ;;  %v2129_v27 = vrot.slane %v402_v41, %v6111_v11  ;;  %v2133_v30 = vrot.slane %v402_v41, %v6113_v12  ;;  %v2137_v20 = vrot.slane %v403_v32, %v6098_v4  ;;  %v5700_v8 = vadd.f32 %v4584_v35, %v8038_v21  ;;  %v406_v21 = vld [vmem:[%s6096_s16 + $0x1b0] sm:$0xff] }
 0x14d   : > { %v4601_v2 = vcombine.low %v4593_v25, %v4600_v43  ;;  %v4610_v57 = vrot.slane %v4602_v47, %v6141_v40  ;;  %v4619_v39 = vcombine.low %v2121_v61, %v2125_v56  ;;  %v4617_v52 = vrot.slane %v4603_v14, %v6141_v40  ;;  %v8042_v61 = vld [vmem:[#allocation65_spill] sm:$0xff] }
 0x14e   : > { %v4620_v36 = vcombine.low %v2129_v27, %v2133_v30  ;;  %v2141_v28 = vrot.slane %v403_v32, %v6100_v5  ;;  %v2145_v23 = vrot.slane %v403_v32, %v6102_v6  ;;  %5850 = vst [vmem:[%s6186_s23 + $0x310] sm:$0xff] %v5700_v8  ;;  %v2149_v53 = vrot.slane %v403_v32, %v6104_v7  ;;  %v8043_v8 = vld [vmem:[#allocation66_spill] sm:$0xff] }
 0x14f   : > { %v5701_v44 = vadd.f32 %v4601_v2, %v8039_v48  ;;  %v4627_v24 = vrot.slane %v4619_v39, %v6141_v40  ;;  %v2153_v18 = vrot.slane %v403_v32, %v6107_v9  ;;  %v4618_v13 = vcombine.low %v4610_v57, %v4617_v52 }
 0x150   : > { %v4634_v58 = vrot.slane %v4620_v36, %v6141_v40  ;;  %v4636_v17 = vcombine.low %v2137_v20, %v2141_v28  ;;  %v2157_v41 = vrot.slane %v403_v32, %v6109_v10  ;;  %v4637_v3 = vcombine.low %v2145_v23, %v2149_v53 }
 0x151   : > { %5851 = vst [vmem:[%s6186_s23 + $0x318] sm:$0xff] %v5701_v44  ;;  %v2161_v49 = vrot.slane %v403_v32, %v6111_v11  ;;  %v2165_v16 = vrot.slane %v403_v32, %v6113_v12  ;;  %v2169_v45 = vrot.slane %v404_v33, %v6098_v4  ;;  %v5702_v59 = vadd.f32 %v4618_v13, %v8040_v31  ;;  %v407_v31 = vld [vmem:[%s6096_s16 + $0x1b8] sm:$0xff] }
 0x152   : > { %v4635_v22 = vcombine.low %v4627_v24, %v4634_v58  ;;  %v4644_v1 = vrot.slane %v4636_v17, %v6141_v40  ;;  %v4653_v37 = vcombine.low %v2153_v18, %v2157_v41  ;;  %v4651_v54 = vrot.slane %v4637_v3, %v6141_v40  ;;  %v8044_v18 = vld [vmem:[#allocation67_spill] sm:$0xff] }
 0x153   : > { %v4654_v29 = vcombine.low %v2161_v49, %v2165_v16  ;;  %v2173_v63 = vrot.slane %v404_v33, %v6100_v5  ;;  %v2177_v19 = vrot.slane %v404_v33, %v6102_v6  ;;  %5852 = vst [vmem:[%s6186_s23 + $0x320] sm:$0xff] %v5702_v59  ;;  %v2181_v55 = vrot.slane %v404_v33, %v6104_v7  ;;  %v8045_v59 = vld [vmem:[#allocation68_spill] sm:$0xff] }
 0x154   : > { %v5703_v42 = vadd.f32 %v4635_v22, %v8041_v62  ;;  %v4661_v50 = vrot.slane %v4653_v37, %v6141_v40  ;;  %v2185_v0 = vrot.slane %v404_v33, %v6107_v9  ;;  %v4652_v60 = vcombine.low %v4644_v1, %v4651_v54 }
 0x155   : > { %v4668_v15 = vrot.slane %v4654_v29, %v6141_v40  ;;  %v4670_v46 = vcombine.low %v2169_v45, %v2173_v63  ;;  %v2189_v32 = vrot.slane %v404_v33, %v6109_v10  ;;  %v4671_v38 = vcombine.low %v2177_v19, %v2181_v55 }
 0x156   : > { %5853 = vst [vmem:[%s6186_s23 + $0x328] sm:$0xff] %v5703_v42  ;;  %v2193_v26 = vrot.slane %v404_v33, %v6111_v11  ;;  %v2197_v25 = vrot.slane %v404_v33, %v6113_v12  ;;  %v2201_v51 = vrot.slane %v405_v34, %v6098_v4  ;;  %v5704_v35 = vadd.f32 %v4652_v60, %v8042_v61  ;;  %v408_v61 = vld [vmem:[%s6096_s16 + $0x1c0] sm:$0xff] }
 0x157   : > { %v4669_v43 = vcombine.low %v4661_v50, %v4668_v15  ;;  %v4678_v47 = vrot.slane %v4670_v46, %v6141_v40  ;;  %v4687_v56 = vcombine.low %v2185_v0, %v2189_v32  ;;  %v4685_v14 = vrot.slane %v4671_v38, %v6141_v40  ;;  %v8046_v0 = vld [vmem:[#allocation69_spill] sm:$0xff] }
 0x158   : > { %v4688_v27 = vcombine.low %v2193_v26, %v2197_v25  ;;  %v2205_v30 = vrot.slane %v405_v34, %v6100_v5  ;;  %v2209_v20 = vrot.slane %v405_v34, %v6102_v6  ;;  %5854 = vst [vmem:[%s6186_s23 + $0x330] sm:$0xff] %v5704_v35  ;;  %v2213_v39 = vrot.slane %v405_v34, %v6104_v7  ;;  %v8047_v35 = vld [vmem:[#allocation70_spill] sm:$0xff] }
 0x159   : > { %v5705_v2 = vadd.f32 %v4669_v43, %v8043_v8  ;;  %v4695_v57 = vrot.slane %v4687_v56, %v6141_v40  ;;  %v2217_v52 = vrot.slane %v405_v34, %v6107_v9  ;;  %v4686_v36 = vcombine.low %v4678_v47, %v4685_v14 }
 0x15a   : > { %v4702_v28 = vrot.slane %v4688_v27, %v6141_v40  ;;  %v4704_v23 = vcombine.low %v2201_v51, %v2205_v30  ;;  %v2221_v33 = vrot.slane %v405_v34, %v6109_v10  ;;  %v4705_v48 = vcombine.low %v2209_v20, %v2213_v39 }
 0x15b   : > { %5855 = vst [vmem:[%s6186_s23 + $0x338] sm:$0xff] %v5705_v2  ;;  %v2225_v44 = vrot.slane %v405_v34, %v6111_v11  ;;  %v2229_v24 = vrot.slane %v405_v34, %v6113_v12  ;;  %v2233_v53 = vrot.slane %v406_v21, %v6098_v4  ;;  %v5706_v13 = vadd.f32 %v4686_v36, %v8044_v18  ;;  %v409_v18 = vld [vmem:[%s6096_s16 + $0x1c8] sm:$0xff] }
 0x15c   : > { %v4703_v58 = vcombine.low %v4695_v57, %v4702_v28  ;;  %v4712_v17 = vrot.slane %v4704_v23, %v6141_v40  ;;  %v4721_v41 = vcombine.low %v2217_v52, %v2221_v33  ;;  %v4719_v3 = vrot.slane %v4705_v48, %v6141_v40  ;;  %v8048_v52 = vld [vmem:[#allocation71_spill] sm:$0xff] }
 0x15d   : > { %v4722_v49 = vcombine.low %v2225_v44, %v2229_v24  ;;  %v2237_v16 = vrot.slane %v406_v21, %v6100_v5  ;;  %v2241_v45 = vrot.slane %v406_v21, %v6102_v6  ;;  %5856 = vst [vmem:[%s6186_s23 + $0x340] sm:$0xff] %v5706_v13  ;;  %v2245_v37 = vrot.slane %v406_v21, %v6104_v7  ;;  %v8049_v13 = vld [vmem:[#allocation72_spill] sm:$0xff] }
 0x15e   : > { %v5707_v22 = vadd.f32 %v4703_v58, %v8045_v59  ;;  %v4729_v1 = vrot.slane %v4721_v41, %v6141_v40  ;;  %v2249_v54 = vrot.slane %v406_v21, %v6107_v9  ;;  %v4720_v29 = vcombine.low %v4712_v17, %v4719_v3 }
 0x15f   : > { %v4736_v63 = vrot.slane %v4722_v49, %v6141_v40  ;;  %v4738_v19 = vcombine.low %v2233_v53, %v2237_v16  ;;  %v2253_v34 = vrot.slane %v406_v21, %v6109_v10  ;;  %v4739_v62 = vcombine.low %v2241_v45, %v2245_v37 }
 0x160   : > { %5857 = vst [vmem:[%s6186_s23 + $0x348] sm:$0xff] %v5707_v22  ;;  %v2257_v42 = vrot.slane %v406_v21, %v6111_v11  ;;  %v2261_v50 = vrot.slane %v406_v21, %v6113_v12  ;;  %v2265_v55 = vrot.slane %v407_v31, %v6098_v4  ;;  %v5708_v60 = vadd.f32 %v4720_v29, %v8046_v0  ;;  %v410_v0 = vld [vmem:[%s6096_s16 + $0x1d0] sm:$0xff] }
 0x161   : > { %v4737_v15 = vcombine.low %v4729_v1, %v4736_v63  ;;  %v4746_v46 = vrot.slane %v4738_v19, %v6141_v40  ;;  %v4755_v32 = vcombine.low %v2249_v54, %v2253_v34  ;;  %v4753_v38 = vrot.slane %v4739_v62, %v6141_v40  ;;  %v8050_v54 = vld [vmem:[#allocation73_spill] sm:$0xff] }
 0x162   : > { %v4756_v26 = vcombine.low %v2257_v42, %v2261_v50  ;;  %v2269_v25 = vrot.slane %v407_v31, %v6100_v5  ;;  %v2273_v51 = vrot.slane %v407_v31, %v6102_v6  ;;  %5858 = vst [vmem:[%s6186_s23 + $0x350] sm:$0xff] %v5708_v60  ;;  %v2277_v56 = vrot.slane %v407_v31, %v6104_v7  ;;  %v8051_v60 = vld [vmem:[#allocation74_spill] sm:$0xff] }
 0x163   : > { %v5709_v43 = vadd.f32 %v4737_v15, %v8047_v35  ;;  %v4763_v47 = vrot.slane %v4755_v32, %v6141_v40  ;;  %v2281_v14 = vrot.slane %v407_v31, %v6107_v9  ;;  %v4754_v27 = vcombine.low %v4746_v46, %v4753_v38 }
 0x164   : > { %v4770_v30 = vrot.slane %v4756_v26, %v6141_v40  ;;  %v4772_v20 = vcombine.low %v2265_v55, %v2269_v25  ;;  %v2285_v21 = vrot.slane %v407_v31, %v6109_v10  ;;  %v4773_v8 = vcombine.low %v2273_v51, %v2277_v56 }
 0x165   : > { %5859 = vst [vmem:[%s6186_s23 + $0x358] sm:$0xff] %v5709_v43  ;;  %v2289_v2 = vrot.slane %v407_v31, %v6111_v11  ;;  %v2293_v57 = vrot.slane %v407_v31, %v6113_v12  ;;  %v2297_v39 = vrot.slane %v408_v61, %v6098_v4  ;;  %v5710_v36 = vadd.f32 %v4754_v27, %v8048_v52  ;;  %v411_v52 = vld [vmem:[%s6096_s16 + $0x1d8] sm:$0xff] }
 0x166   : > { %v4771_v28 = vcombine.low %v4763_v47, %v4770_v30  ;;  %v4780_v23 = vrot.slane %v4772_v20, %v6141_v40  ;;  %v4789_v33 = vcombine.low %v2281_v14, %v2285_v21  ;;  %v4787_v48 = vrot.slane %v4773_v8, %v6141_v40  ;;  %v8052_v14 = vld [vmem:[#allocation75_spill] sm:$0xff] }
 0x167   : > { %v4790_v44 = vcombine.low %v2289_v2, %v2293_v57  ;;  %v2301_v24 = vrot.slane %v408_v61, %v6100_v5  ;;  %v2305_v53 = vrot.slane %v408_v61, %v6102_v6  ;;  %5860 = vst [vmem:[%s6186_s23 + $0x360] sm:$0xff] %v5710_v36  ;;  %v2309_v41 = vrot.slane %v408_v61, %v6104_v7  ;;  %v8053_v36 = vld [vmem:[#allocation76_spill] sm:$0xff] }
 0x168   : > { %v5711_v58 = vadd.f32 %v4771_v28, %v8049_v13  ;;  %v4797_v17 = vrot.slane %v4789_v33, %v6141_v40  ;;  %v2313_v3 = vrot.slane %v408_v61, %v6107_v9  ;;  %v4788_v49 = vcombine.low %v4780_v23, %v4787_v48 }
 0x169   : > { %v4804_v16 = vrot.slane %v4790_v44, %v6141_v40  ;;  %v4806_v45 = vcombine.low %v2297_v39, %v2301_v24  ;;  %v2317_v31 = vrot.slane %v408_v61, %v6109_v10  ;;  %v4807_v59 = vcombine.low %v2305_v53, %v2309_v41 }
 0x16a   : > { %5861 = vst [vmem:[%s6186_s23 + $0x368] sm:$0xff] %v5711_v58  ;;  %v2321_v22 = vrot.slane %v408_v61, %v6111_v11  ;;  %v2325_v1 = vrot.slane %v408_v61, %v6113_v12  ;;  %v2329_v37 = vrot.slane %v409_v18, %v6098_v4  ;;  %v5712_v29 = vadd.f32 %v4788_v49, %v8050_v54  ;;  %v412_v54 = vld [vmem:[%s6096_s16 + $0x1e0] sm:$0xff] }
 0x16b   : > { %v4805_v63 = vcombine.low %v4797_v17, %v4804_v16  ;;  %v4814_v19 = vrot.slane %v4806_v45, %v6141_v40  ;;  %v4823_v34 = vcombine.low %v2313_v3, %v2317_v31  ;;  %v4821_v62 = vrot.slane %v4807_v59, %v6141_v40  ;;  %v8054_v3 = vld [vmem:[#allocation77_spill] sm:$0xff] }
 0x16c   : > { %v4824_v42 = vcombine.low %v2321_v22, %v2325_v1  ;;  %v2333_v50 = vrot.slane %v409_v18, %v6100_v5  ;;  %v2337_v55 = vrot.slane %v409_v18, %v6102_v6  ;;  %5862 = vst [vmem:[%s6186_s23 + $0x370] sm:$0xff] %v5712_v29  ;;  %v2341_v32 = vrot.slane %v409_v18, %v6104_v7  ;;  %v8055_v29 = vld [vmem:[#allocation78_spill] sm:$0xff] }
 0x16d   : > { %v5713_v15 = vadd.f32 %v4805_v63, %v8051_v60  ;;  %v4831_v46 = vrot.slane %v4823_v34, %v6141_v40  ;;  %v2345_v38 = vrot.slane %v409_v18, %v6107_v9  ;;  %v4822_v26 = vcombine.low %v4814_v19, %v4821_v62 }
 0x16e   : > { %v4838_v25 = vrot.slane %v4824_v42, %v6141_v40  ;;  %v4840_v51 = vcombine.low %v2329_v37, %v2333_v50  ;;  %v2349_v61 = vrot.slane %v409_v18, %v6109_v10  ;;  %v4841_v35 = vcombine.low %v2337_v55, %v2341_v32 }
 0x16f   : > { %5863 = vst [vmem:[%s6186_s23 + $0x378] sm:$0xff] %v5713_v15  ;;  %v2353_v43 = vrot.slane %v409_v18, %v6111_v11  ;;  %v2357_v47 = vrot.slane %v409_v18, %v6113_v12  ;;  %v2361_v56 = vrot.slane %v410_v0, %v6098_v4  ;;  %v5714_v27 = vadd.f32 %v4822_v26, %v8052_v14  ;;  %v413_v14 = vld [vmem:[%s6096_s16 + $0x1e8] sm:$0xff] }
 0x170   : > { %v4839_v30 = vcombine.low %v4831_v46, %v4838_v25  ;;  %v4848_v20 = vrot.slane %v4840_v51, %v6141_v40  ;;  %v4857_v21 = vcombine.low %v2345_v38, %v2349_v61  ;;  %v4855_v8 = vrot.slane %v4841_v35, %v6141_v40  ;;  %v8056_v38 = vld [vmem:[#allocation79_spill] sm:$0xff] }
 0x171   : > { %v4858_v2 = vcombine.low %v2353_v43, %v2357_v47  ;;  %v2365_v57 = vrot.slane %v410_v0, %v6100_v5  ;;  %v2369_v39 = vrot.slane %v410_v0, %v6102_v6  ;;  %5864 = vst [vmem:[%s6186_s23 + $0x380] sm:$0xff] %v5714_v27  ;;  %v2373_v33 = vrot.slane %v410_v0, %v6104_v7  ;;  %v8057_v27 = vld [vmem:[#allocation80_spill] sm:$0xff] }
 0x172   : > { %v5715_v28 = vadd.f32 %v4839_v30, %v8053_v36  ;;  %v4865_v23 = vrot.slane %v4857_v21, %v6141_v40  ;;  %v2377_v48 = vrot.slane %v410_v0, %v6107_v9  ;;  %v4856_v44 = vcombine.low %v4848_v20, %v4855_v8 }
 0x173   : > { %v4872_v24 = vrot.slane %v4858_v2, %v6141_v40  ;;  %v4874_v53 = vcombine.low %v2361_v56, %v2365_v57  ;;  %v2381_v18 = vrot.slane %v410_v0, %v6109_v10  ;;  %v4875_v13 = vcombine.low %v2369_v39, %v2373_v33 }
 0x174   : > { %5865 = vst [vmem:[%s6186_s23 + $0x388] sm:$0xff] %v5715_v28  ;;  %v2385_v58 = vrot.slane %v410_v0, %v6111_v11  ;;  %v2389_v17 = vrot.slane %v410_v0, %v6113_v12  ;;  %v2393_v41 = vrot.slane %v411_v52, %v6098_v4  ;;  %v5716_v49 = vadd.f32 %v4856_v44, %v8054_v3  ;;  %v414_v3 = vld [vmem:[%s6096_s16 + $0x1f0] sm:$0xff] }
 0x175   : > { %v4873_v16 = vcombine.low %v4865_v23, %v4872_v24  ;;  %v4882_v45 = vrot.slane %v4874_v53, %v6141_v40  ;;  %v4891_v31 = vcombine.low %v2377_v48, %v2381_v18  ;;  %v4889_v59 = vrot.slane %v4875_v13, %v6141_v40  ;;  %v8058_v48 = vld [vmem:[#allocation81_spill] sm:$0xff] }
 0x176   : > { %v4892_v22 = vcombine.low %v2385_v58, %v2389_v17  ;;  %v2397_v1 = vrot.slane %v411_v52, %v6100_v5  ;;  %v2401_v37 = vrot.slane %v411_v52, %v6102_v6  ;;  %5866 = vst [vmem:[%s6186_s23 + $0x390] sm:$0xff] %v5716_v49  ;;  %v2405_v34 = vrot.slane %v411_v52, %v6104_v7  ;;  %v8059_v49 = vld [vmem:[#allocation82_spill] sm:$0xff] }
 0x177   : > { %v5717_v63 = vadd.f32 %v4873_v16, %v8055_v29  ;;  %v4899_v19 = vrot.slane %v4891_v31, %v6141_v40  ;;  %v2409_v62 = vrot.slane %v411_v52, %v6107_v9  ;;  %v4890_v42 = vcombine.low %v4882_v45, %v4889_v59 }
 0x178   : > { %v4906_v50 = vrot.slane %v4892_v22, %v6141_v40  ;;  %v4908_v55 = vcombine.low %v2393_v41, %v2397_v1  ;;  %v2413_v0 = vrot.slane %v411_v52, %v6109_v10  ;;  %v4909_v60 = vcombine.low %v2401_v37, %v2405_v34 }
 0x179   : > { %5867 = vst [vmem:[%s6186_s23 + $0x398] sm:$0xff] %v5717_v63  ;;  %v2417_v15 = vrot.slane %v411_v52, %v6111_v11  ;;  %v2421_v46 = vrot.slane %v411_v52, %v6113_v12  ;;  %v2425_v32 = vrot.slane %v412_v54, %v6098_v4  ;;  %v5718_v26 = vadd.f32 %v4890_v42, %v8056_v38  ;;  %v415_v38 = vld [vmem:[%s6096_s16 + $0x1f8] sm:$0xff] }
 0x17a   : > { %v4907_v25 = vcombine.low %v4899_v19, %v4906_v50  ;;  %v4916_v51 = vrot.slane %v4908_v55, %v6141_v40  ;;  %v4925_v61 = vcombine.low %v2409_v62, %v2413_v0  ;;  %v4923_v35 = vrot.slane %v4909_v60, %v6141_v40  ;;  %v8060_v62 = vld [vmem:[#allocation83_spill] sm:$0xff] }
 0x17b   : > { %v4926_v43 = vcombine.low %v2417_v15, %v2421_v46  ;;  %v2429_v47 = vrot.slane %v412_v54, %v6100_v5  ;;  %v2433_v56 = vrot.slane %v412_v54, %v6102_v6  ;;  %5868 = vst [vmem:[%s6186_s23 + $0x3a0] sm:$0xff] %v5718_v26  ;;  %v2437_v21 = vrot.slane %v412_v54, %v6104_v7  ;;  %v8061_v26 = vld [vmem:[#allocation84_spill] sm:$0xff] }
 0x17c   : > { %v5719_v30 = vadd.f32 %v4907_v25, %v8057_v27  ;;  %v4933_v20 = vrot.slane %v4925_v61, %v6141_v40  ;;  %v2441_v8 = vrot.slane %v412_v54, %v6107_v9  ;;  %v4924_v2 = vcombine.low %v4916_v51, %v4923_v35 }
 0x17d   : > { %v4940_v57 = vrot.slane %v4926_v43, %v6141_v40  ;;  %v4942_v39 = vcombine.low %v2425_v32, %v2429_v47  ;;  %v2445_v52 = vrot.slane %v412_v54, %v6109_v10  ;;  %v4943_v36 = vcombine.low %v2433_v56, %v2437_v21 }
 0x17e   : > { %5869 = vst [vmem:[%s6186_s23 + $0x3a8] sm:$0xff] %v5719_v30  ;;  %v2449_v28 = vrot.slane %v412_v54, %v6111_v11  ;;  %v2453_v23 = vrot.slane %v412_v54, %v6113_v12  ;;  %v2457_v33 = vrot.slane %v413_v14, %v6098_v4  ;;  %v5720_v44 = vadd.f32 %v4924_v2, %v8058_v48  ;;  %v416_v48 = vld [vmem:[%s6096_s16 + $0x200] sm:$0xff] }
 0x17f   : > { %v4941_v24 = vcombine.low %v4933_v20, %v4940_v57  ;;  %v4950_v53 = vrot.slane %v4942_v39, %v6141_v40  ;;  %v4959_v18 = vcombine.low %v2441_v8, %v2445_v52  ;;  %v4957_v13 = vrot.slane %v4943_v36, %v6141_v40  ;;  %v8062_v8 = vld [vmem:[#allocation85_spill] sm:$0xff] }
 0x180   : > { %v4960_v58 = vcombine.low %v2449_v28, %v2453_v23  ;;  %v2461_v17 = vrot.slane %v413_v14, %v6100_v5  ;;  %v2465_v41 = vrot.slane %v413_v14, %v6102_v6  ;;  %5870 = vst [vmem:[%s6186_s23 + $0x3b0] sm:$0xff] %v5720_v44  ;;  %v2469_v31 = vrot.slane %v413_v14, %v6104_v7  ;;  %v8063_v44 = vld [vmem:[#allocation86_spill] sm:$0xff] }
 0x181   : > { %v5721_v16 = vadd.f32 %v4941_v24, %v8059_v49  ;;  %v4967_v45 = vrot.slane %v4959_v18, %v6141_v40  ;;  %v2473_v59 = vrot.slane %v413_v14, %v6107_v9  ;;  %v4958_v22 = vcombine.low %v4950_v53, %v4957_v13 }
 0x182   : > { %v4974_v1 = vrot.slane %v4960_v58, %v6141_v40  ;;  %v4976_v37 = vcombine.low %v2457_v33, %v2461_v17  ;;  %v2477_v54 = vrot.slane %v413_v14, %v6109_v10  ;;  %v4977_v29 = vcombine.low %v2465_v41, %v2469_v31 }
 0x183   : > { %5871 = vst [vmem:[%s6186_s23 + $0x3b8] sm:$0xff] %v5721_v16  ;;  %v2481_v63 = vrot.slane %v413_v14, %v6111_v11  ;;  %v2485_v19 = vrot.slane %v413_v14, %v6113_v12  ;;  %v2489_v34 = vrot.slane %v414_v3, %v6098_v4  ;;  %v5722_v42 = vadd.f32 %v4958_v22, %v8060_v62  ;;  %v417_v62 = vld [vmem:[%s6096_s16 + $0x208] sm:$0xff] }
 0x184   : > { %v4975_v50 = vcombine.low %v4967_v45, %v4974_v1  ;;  %v4984_v55 = vrot.slane %v4976_v37, %v6141_v40  ;;  %v4993_v0 = vcombine.low %v2473_v59, %v2477_v54  ;;  %v4991_v60 = vrot.slane %v4977_v29, %v6141_v40  ;;  %v8064_v59 = vld [vmem:[#allocation87_spill] sm:$0xff] }
 0x185   : > { %v4994_v15 = vcombine.low %v2481_v63, %v2485_v19  ;;  %v2493_v46 = vrot.slane %v414_v3, %v6100_v5  ;;  %v2497_v32 = vrot.slane %v414_v3, %v6102_v6  ;;  %5872 = vst [vmem:[%s6186_s23 + $0x3c0] sm:$0xff] %v5722_v42  ;;  %v2501_v61 = vrot.slane %v414_v3, %v6104_v7  ;;  %v8065_v42 = vld [vmem:[#allocation88_spill] sm:$0xff] }
 0x186   : > { %v5723_v25 = vadd.f32 %v4975_v50, %v8061_v26  ;;  %v5001_v51 = vrot.slane %v4993_v0, %v6141_v40  ;;  %v2505_v35 = vrot.slane %v414_v3, %v6107_v9  ;;  %v4992_v43 = vcombine.low %v4984_v55, %v4991_v60 }
 0x187   : > { %v5008_v47 = vrot.slane %v4994_v15, %v6141_v40  ;;  %v5010_v56 = vcombine.low %v2489_v34, %v2493_v46  ;;  %v2509_v14 = vrot.slane %v414_v3, %v6109_v10  ;;  %v5011_v27 = vcombine.low %v2497_v32, %v2501_v61 }
 0x188   : > { %5873 = vst [vmem:[%s6186_s23 + $0x3c8] sm:$0xff] %v5723_v25  ;;  %v2513_v30 = vrot.slane %v414_v3, %v6111_v11  ;;  %v2517_v20 = vrot.slane %v414_v3, %v6113_v12  ;;  %v2521_v21 = vrot.slane %v415_v38, %v6098_v4  ;;  %v5724_v2 = vadd.f32 %v4992_v43, %v8062_v8  ;;  %v418_v8 = vld [vmem:[%s6096_s16 + $0x210] sm:$0xff] }
 0x189   : > { %v5009_v57 = vcombine.low %v5001_v51, %v5008_v47  ;;  %v5018_v39 = vrot.slane %v5010_v56, %v6141_v40  ;;  %v5027_v52 = vcombine.low %v2505_v35, %v2509_v14  ;;  %v5025_v36 = vrot.slane %v5011_v27, %v6141_v40  ;;  %v8066_v35 = vld [vmem:[#allocation89_spill] sm:$0xff] }
 0x18a   : > { %v5028_v28 = vcombine.low %v2513_v30, %v2517_v20  ;;  %v2525_v23 = vrot.slane %v415_v38, %v6100_v5  ;;  %v2529_v33 = vrot.slane %v415_v38, %v6102_v6  ;;  %5874 = vst [vmem:[%s6186_s23 + $0x3d0] sm:$0xff] %v5724_v2  ;;  %v2533_v18 = vrot.slane %v415_v38, %v6104_v7  ;;  %v8067_v2 = vld [vmem:[#allocation90_spill] sm:$0xff] }
 0x18b   : > { %v5725_v24 = vadd.f32 %v5009_v57, %v8063_v44  ;;  %v5035_v53 = vrot.slane %v5027_v52, %v6141_v40  ;;  %v2537_v13 = vrot.slane %v415_v38, %v6107_v9  ;;  %v5026_v58 = vcombine.low %v5018_v39, %v5025_v36 }
 0x18c   : > { %v5042_v17 = vrot.slane %v5028_v28, %v6141_v40  ;;  %v5044_v41 = vcombine.low %v2521_v21, %v2525_v23  ;;  %v2541_v3 = vrot.slane %v415_v38, %v6109_v10  ;;  %v5045_v49 = vcombine.low %v2529_v33, %v2533_v18 }
 0x18d   : > { %5875 = vst [vmem:[%s6186_s23 + $0x3d8] sm:$0xff] %v5725_v24  ;;  %v2545_v16 = vrot.slane %v415_v38, %v6111_v11  ;;  %v2549_v45 = vrot.slane %v415_v38, %v6113_v12  ;;  %v2553_v31 = vrot.slane %v416_v48, %v6098_v4  ;;  %v5726_v22 = vadd.f32 %v5026_v58, %v8064_v59  ;;  %v419_v59 = vld [vmem:[%s6096_s16 + $0x218] sm:$0xff] }
 0x18e   : > { %v5043_v1 = vcombine.low %v5035_v53, %v5042_v17  ;;  %v5052_v37 = vrot.slane %v5044_v41, %v6141_v40  ;;  %v5061_v54 = vcombine.low %v2537_v13, %v2541_v3  ;;  %v5059_v29 = vrot.slane %v5045_v49, %v6141_v40  ;;  %v8068_v13 = vld [vmem:[#allocation91_spill] sm:$0xff] }
 0x18f   : > { %v5062_v63 = vcombine.low %v2545_v16, %v2549_v45  ;;  %v2557_v19 = vrot.slane %v416_v48, %v6100_v5  ;;  %v2561_v34 = vrot.slane %v416_v48, %v6102_v6  ;;  %5876 = vst [vmem:[%s6186_s23 + $0x3e0] sm:$0xff] %v5726_v22  ;;  %v2565_v0 = vrot.slane %v416_v48, %v6104_v7  ;;  %v8069_v22 = vld [vmem:[#allocation92_spill] sm:$0xff] }
 0x190   : > { %v5727_v50 = vadd.f32 %v5043_v1, %v8065_v42  ;;  %v5069_v55 = vrot.slane %v5061_v54, %v6141_v40  ;;  %v2569_v60 = vrot.slane %v416_v48, %v6107_v9  ;;  %v5060_v15 = vcombine.low %v5052_v37, %v5059_v29 }
 0x191   : > { %v5076_v46 = vrot.slane %v5062_v63, %v6141_v40  ;;  %v5078_v32 = vcombine.low %v2553_v31, %v2557_v19  ;;  %v2573_v38 = vrot.slane %v416_v48, %v6109_v10  ;;  %v5079_v26 = vcombine.low %v2561_v34, %v2565_v0 }
 0x192   : > { %5877 = vst [vmem:[%s6186_s23 + $0x3e8] sm:$0xff] %v5727_v50  ;;  %v2577_v25 = vrot.slane %v416_v48, %v6111_v11  ;;  %v2581_v51 = vrot.slane %v416_v48, %v6113_v12  ;;  %v2585_v61 = vrot.slane %v417_v62, %v6098_v4  ;;  %v5728_v43 = vadd.f32 %v5060_v15, %v8066_v35  ;;  %v420_v35 = vld [vmem:[%s6096_s16 + $0x220] sm:$0xff] }
 0x193   : > { %v5077_v47 = vcombine.low %v5069_v55, %v5076_v46  ;;  %v5086_v56 = vrot.slane %v5078_v32, %v6141_v40  ;;  %v5095_v14 = vcombine.low %v2569_v60, %v2573_v38  ;;  %v5093_v27 = vrot.slane %v5079_v26, %v6141_v40  ;;  %v8070_v60 = vld [vmem:[#allocation93_spill] sm:$0xff] }
 0x194   : > { %v5096_v30 = vcombine.low %v2577_v25, %v2581_v51  ;;  %v2589_v20 = vrot.slane %v417_v62, %v6100_v5  ;;  %v2593_v21 = vrot.slane %v417_v62, %v6102_v6  ;;  %5878 = vst [vmem:[%s6186_s23 + $0x3f0] sm:$0xff] %v5728_v43  ;;  %v2597_v52 = vrot.slane %v417_v62, %v6104_v7  ;;  %v8071_v43 = vld [vmem:[#allocation94_spill] sm:$0xff] }
 0x195   : > { %v5729_v57 = vadd.f32 %v5077_v47, %v8067_v2  ;;  %v5103_v39 = vrot.slane %v5095_v14, %v6141_v40  ;;  %v2601_v36 = vrot.slane %v417_v62, %v6107_v9  ;;  %v5094_v28 = vcombine.low %v5086_v56, %v5093_v27 }
 0x196   : > { %v5110_v23 = vrot.slane %v5096_v30, %v6141_v40  ;;  %v5112_v33 = vcombine.low %v2585_v61, %v2589_v20  ;;  %v2605_v48 = vrot.slane %v417_v62, %v6109_v10  ;;  %v5113_v44 = vcombine.low %v2593_v21, %v2597_v52 }
 0x197   : > { %5879 = vst [vmem:[%s6186_s23 + $0x3f8] sm:$0xff] %v5729_v57  ;;  %v2609_v24 = vrot.slane %v417_v62, %v6111_v11  ;;  %v2613_v53 = vrot.slane %v417_v62, %v6113_v12  ;;  %v2617_v18 = vrot.slane %v418_v8, %v6098_v4  ;;  %v5730_v58 = vadd.f32 %v5094_v28, %v8068_v13  ;;  %v421_v13 = vld [vmem:[%s6096_s16 + $0x228] sm:$0xff] }
 0x198   : > { %v5111_v17 = vcombine.low %v5103_v39, %v5110_v23  ;;  %v5120_v41 = vrot.slane %v5112_v33, %v6141_v40  ;;  %v5129_v3 = vcombine.low %v2601_v36, %v2605_v48  ;;  %v5127_v49 = vrot.slane %v5113_v44, %v6141_v40  ;;  %v8072_v36 = vld [vmem:[#allocation95_spill] sm:$0xff] }
 0x199   : > { %v5130_v16 = vcombine.low %v2609_v24, %v2613_v53  ;;  %v2621_v45 = vrot.slane %v418_v8, %v6100_v5  ;;  %v2625_v31 = vrot.slane %v418_v8, %v6102_v6  ;;  %5880 = vst [vmem:[%s6186_s23 + $0x400] sm:$0xff] %v5730_v58  ;;  %v2629_v54 = vrot.slane %v418_v8, %v6104_v7  ;;  %v8073_v58 = vld [vmem:[#allocation96_spill] sm:$0xff] }
 0x19a   : > { %v5731_v1 = vadd.f32 %v5111_v17, %v8069_v22  ;;  %v5137_v37 = vrot.slane %v5129_v3, %v6141_v40  ;;  %v2633_v29 = vrot.slane %v418_v8, %v6107_v9  ;;  %v5128_v63 = vcombine.low %v5120_v41, %v5127_v49 }
 0x19b   : > { %v5144_v19 = vrot.slane %v5130_v16, %v6141_v40  ;;  %v5146_v34 = vcombine.low %v2617_v18, %v2621_v45  ;;  %v2637_v62 = vrot.slane %v418_v8, %v6109_v10  ;;  %v5147_v42 = vcombine.low %v2625_v31, %v2629_v54 }
 0x19c   : > { %5881 = vst [vmem:[%s6186_s23 + $0x408] sm:$0xff] %v5731_v1  ;;  %v2641_v50 = vrot.slane %v418_v8, %v6111_v11  ;;  %v2645_v55 = vrot.slane %v418_v8, %v6113_v12  ;;  %v2649_v0 = vrot.slane %v419_v59, %v6098_v4  ;;  %v5732_v15 = vadd.f32 %v5128_v63, %v8070_v60  ;;  %v422_v60 = vld [vmem:[%s6096_s16 + $0x230] sm:$0xff] }
 0x19d   : > { %v5145_v46 = vcombine.low %v5137_v37, %v5144_v19  ;;  %v5154_v32 = vrot.slane %v5146_v34, %v6141_v40  ;;  %v5163_v38 = vcombine.low %v2633_v29, %v2637_v62  ;;  %v5161_v26 = vrot.slane %v5147_v42, %v6141_v40  ;;  %v8074_v29 = vld [vmem:[#allocation97_spill] sm:$0xff] }
 0x19e   : > { %v5164_v25 = vcombine.low %v2641_v50, %v2645_v55  ;;  %v2653_v51 = vrot.slane %v419_v59, %v6100_v5  ;;  %v2657_v61 = vrot.slane %v419_v59, %v6102_v6  ;;  %5882 = vst [vmem:[%s6186_s23 + $0x410] sm:$0xff] %v5732_v15  ;;  %v2661_v14 = vrot.slane %v419_v59, %v6104_v7  ;;  %v8075_v15 = vld [vmem:[#allocation98_spill] sm:$0xff] }
 0x19f   : > { %v5733_v47 = vadd.f32 %v5145_v46, %v8071_v43  ;;  %v5171_v56 = vrot.slane %v5163_v38, %v6141_v40  ;;  %v2665_v27 = vrot.slane %v419_v59, %v6107_v9  ;;  %v5162_v30 = vcombine.low %v5154_v32, %v5161_v26 }
 0x1a0   : > { %v5178_v20 = vrot.slane %v5164_v25, %v6141_v40  ;;  %v5180_v21 = vcombine.low %v2649_v0, %v2653_v51  ;;  %v2669_v8 = vrot.slane %v419_v59, %v6109_v10  ;;  %v5181_v2 = vcombine.low %v2657_v61, %v2661_v14 }
 0x1a1   : > { %5883 = vst [vmem:[%s6186_s23 + $0x418] sm:$0xff] %v5733_v47  ;;  %v2673_v57 = vrot.slane %v419_v59, %v6111_v11  ;;  %v2677_v39 = vrot.slane %v419_v59, %v6113_v12  ;;  %v2681_v52 = vrot.slane %v420_v35, %v6098_v4  ;;  %v5734_v28 = vadd.f32 %v5162_v30, %v8072_v36  ;;  %v423_v36 = vld [vmem:[%s6096_s16 + $0x238] sm:$0xff] }
 0x1a2   : > { %v5179_v23 = vcombine.low %v5171_v56, %v5178_v20  ;;  %v5188_v33 = vrot.slane %v5180_v21, %v6141_v40  ;;  %v5197_v48 = vcombine.low %v2665_v27, %v2669_v8  ;;  %v5195_v44 = vrot.slane %v5181_v2, %v6141_v40  ;;  %v8076_v27 = vld [vmem:[#allocation99_spill] sm:$0xff] }
 0x1a3   : > { %v5198_v24 = vcombine.low %v2673_v57, %v2677_v39  ;;  %v2685_v53 = vrot.slane %v420_v35, %v6100_v5  ;;  %v2689_v18 = vrot.slane %v420_v35, %v6102_v6  ;;  %5884 = vst [vmem:[%s6186_s23 + $0x420] sm:$0xff] %v5734_v28  ;;  %v2693_v3 = vrot.slane %v420_v35, %v6104_v7  ;;  %v8077_v28 = vld [vmem:[#allocation100_spill] sm:$0xff] }
 0x1a4   : > { %v5735_v17 = vadd.f32 %v5179_v23, %v8073_v58  ;;  %v5205_v41 = vrot.slane %v5197_v48, %v6141_v40  ;;  %v2697_v49 = vrot.slane %v420_v35, %v6107_v9  ;;  %v5196_v16 = vcombine.low %v5188_v33, %v5195_v44 }
 0x1a5   : > { %v5212_v45 = vrot.slane %v5198_v24, %v6141_v40  ;;  %v5214_v31 = vcombine.low %v2681_v52, %v2685_v53  ;;  %v2701_v59 = vrot.slane %v420_v35, %v6109_v10  ;;  %v5215_v22 = vcombine.low %v2689_v18, %v2693_v3 }
 0x1a6   : > { %5885 = vst [vmem:[%s6186_s23 + $0x428] sm:$0xff] %v5735_v17  ;;  %v2705_v1 = vrot.slane %v420_v35, %v6111_v11  ;;  %v2709_v37 = vrot.slane %v420_v35, %v6113_v12  ;;  %v2713_v54 = vrot.slane %v421_v13, %v6098_v4  ;;  %v5736_v63 = vadd.f32 %v5196_v16, %v8074_v29  ;;  %v424_v29 = vld [vmem:[%s6096_s16 + $0x240] sm:$0xff] }
 0x1a7   : > { %v5213_v19 = vcombine.low %v5205_v41, %v5212_v45  ;;  %v5222_v34 = vrot.slane %v5214_v31, %v6141_v40  ;;  %v5231_v62 = vcombine.low %v2697_v49, %v2701_v59  ;;  %v5229_v42 = vrot.slane %v5215_v22, %v6141_v40  ;;  %v8078_v49 = vld [vmem:[#allocation101_spill] sm:$0xff] }
 0x1a8   : > { %v5232_v50 = vcombine.low %v2705_v1, %v2709_v37  ;;  %v2717_v55 = vrot.slane %v421_v13, %v6100_v5  ;;  %v2721_v0 = vrot.slane %v421_v13, %v6102_v6  ;;  %5886 = vst [vmem:[%s6186_s23 + $0x430] sm:$0xff] %v5736_v63  ;;  %v2725_v38 = vrot.slane %v421_v13, %v6104_v7  ;;  %v8079_v63 = vld [vmem:[#allocation102_spill] sm:$0xff] }
 0x1a9   : > { %v5737_v46 = vadd.f32 %v5213_v19, %v8075_v15  ;;  %v5239_v32 = vrot.slane %v5231_v62, %v6141_v40  ;;  %v2729_v26 = vrot.slane %v421_v13, %v6107_v9  ;;  %v5230_v25 = vcombine.low %v5222_v34, %v5229_v42 }
 0x1aa   : > { %v5246_v51 = vrot.slane %v5232_v50, %v6141_v40  ;;  %v5248_v61 = vcombine.low %v2713_v54, %v2717_v55  ;;  %v2733_v35 = vrot.slane %v421_v13, %v6109_v10  ;;  %v5249_v43 = vcombine.low %v2721_v0, %v2725_v38 }
 0x1ab   : > { %5887 = vst [vmem:[%s6186_s23 + $0x438] sm:$0xff] %v5737_v46  ;;  %v2737_v47 = vrot.slane %v421_v13, %v6111_v11  ;;  %v2741_v56 = vrot.slane %v421_v13, %v6113_v12  ;;  %v2745_v14 = vrot.slane %v422_v60, %v6098_v4  ;;  %v5738_v30 = vadd.f32 %v5230_v25, %v8076_v27  ;;  %v425_v27 = vld [vmem:[%s6096_s16 + $0x248] sm:$0xff] }
 0x1ac   : > { %v5247_v20 = vcombine.low %v5239_v32, %v5246_v51  ;;  %v5256_v21 = vrot.slane %v5248_v61, %v6141_v40  ;;  %v5265_v8 = vcombine.low %v2729_v26, %v2733_v35  ;;  %v5263_v2 = vrot.slane %v5249_v43, %v6141_v40  ;;  %v8080_v26 = vld [vmem:[#allocation103_spill] sm:$0xff] }
 0x1ad   : > { %v5266_v57 = vcombine.low %v2737_v47, %v2741_v56  ;;  %v2749_v39 = vrot.slane %v422_v60, %v6100_v5  ;;  %v2753_v52 = vrot.slane %v422_v60, %v6102_v6  ;;  %5888 = vst [vmem:[%s6186_s23 + $0x440] sm:$0xff] %v5738_v30  ;;  %v2757_v48 = vrot.slane %v422_v60, %v6104_v7  ;;  %v8081_v30 = vld [vmem:[#allocation104_spill] sm:$0xff] }
 0x1ae   : > { %v5739_v23 = vadd.f32 %v5247_v20, %v8077_v28  ;;  %v5273_v33 = vrot.slane %v5265_v8, %v6141_v40  ;;  %v2761_v44 = vrot.slane %v422_v60, %v6107_v9  ;;  %v5264_v24 = vcombine.low %v5256_v21, %v5263_v2 }
 0x1af   : > { %v5280_v53 = vrot.slane %v5266_v57, %v6141_v40  ;;  %v5282_v18 = vcombine.low %v2745_v14, %v2749_v39  ;;  %v2765_v13 = vrot.slane %v422_v60, %v6109_v10  ;;  %v5283_v58 = vcombine.low %v2753_v52, %v2757_v48 }
 0x1b0   : > { %5889 = vst [vmem:[%s6186_s23 + $0x448] sm:$0xff] %v5739_v23  ;;  %v2769_v17 = vrot.slane %v422_v60, %v6111_v11  ;;  %v2773_v41 = vrot.slane %v422_v60, %v6113_v12  ;;  %v2777_v3 = vrot.slane %v423_v36, %v6098_v4  ;;  %v5740_v16 = vadd.f32 %v5264_v24, %v8078_v49  ;;  %v426_v49 = vld [vmem:[%s6096_s16 + $0x250] sm:$0xff] }
 0x1b1   : > { %v5281_v45 = vcombine.low %v5273_v33, %v5280_v53  ;;  %v5290_v31 = vrot.slane %v5282_v18, %v6141_v40  ;;  %v5299_v59 = vcombine.low %v2761_v44, %v2765_v13  ;;  %v5297_v22 = vrot.slane %v5283_v58, %v6141_v40  ;;  %v8082_v44 = vld [vmem:[#allocation105_spill] sm:$0xff] }
 0x1b2   : > { %v5300_v1 = vcombine.low %v2769_v17, %v2773_v41  ;;  %v2781_v37 = vrot.slane %v423_v36, %v6100_v5  ;;  %v2785_v54 = vrot.slane %v423_v36, %v6102_v6  ;;  %5890 = vst [vmem:[%s6186_s23 + $0x450] sm:$0xff] %v5740_v16  ;;  %v2789_v62 = vrot.slane %v423_v36, %v6104_v7  ;;  %v8083_v16 = vld [vmem:[#allocation106_spill] sm:$0xff] }
 0x1b3   : > { %v5741_v19 = vadd.f32 %v5281_v45, %v8079_v63  ;;  %v5307_v34 = vrot.slane %v5299_v59, %v6141_v40  ;;  %v2793_v42 = vrot.slane %v423_v36, %v6107_v9  ;;  %v5298_v50 = vcombine.low %v5290_v31, %v5297_v22 }
 0x1b4   : > { %v5314_v55 = vrot.slane %v5300_v1, %v6141_v40  ;;  %v5316_v0 = vcombine.low %v2777_v3, %v2781_v37  ;;  %v2797_v60 = vrot.slane %v423_v36, %v6109_v10  ;;  %v5317_v15 = vcombine.low %v2785_v54, %v2789_v62 }
 0x1b5   : > { %5891 = vst [vmem:[%s6186_s23 + $0x458] sm:$0xff] %v5741_v19  ;;  %v2801_v46 = vrot.slane %v423_v36, %v6111_v11  ;;  %v2805_v32 = vrot.slane %v423_v36, %v6113_v12  ;;  %v2809_v38 = vrot.slane %v424_v29, %v6098_v4  ;;  %v5742_v25 = vadd.f32 %v5298_v50, %v8080_v26  ;;  %v8085_v26 = vld [vmem:[#allocation108_spill] sm:$0xff] }
 0x1b6   : > { %v5315_v51 = vcombine.low %v5307_v34, %v5314_v55  ;;  %v5324_v61 = vrot.slane %v5316_v0, %v6141_v40  ;;  %v5333_v35 = vcombine.low %v2793_v42, %v2797_v60  ;;  %v5331_v43 = vrot.slane %v5317_v15, %v6141_v40  ;;  %v8084_v42 = vld [vmem:[#allocation107_spill] sm:$0xff] }
 0x1b7   : > { %v5334_v47 = vcombine.low %v2801_v46, %v2805_v32  ;;  %v2813_v56 = vrot.slane %v424_v29, %v6100_v5  ;;  %v2817_v14 = vrot.slane %v424_v29, %v6102_v6  ;;  %5892 = vst [vmem:[%s6186_s23 + $0x460] sm:$0xff] %v5742_v25  ;;  %v2821_v8 = vrot.slane %v424_v29, %v6104_v7 }
 0x1b8   : > { %v5743_v20 = vadd.f32 %v5315_v51, %v8081_v30  ;;  %v5341_v21 = vrot.slane %v5333_v35, %v6141_v40  ;;  %v2825_v2 = vrot.slane %v424_v29, %v6107_v9  ;;  %v5332_v57 = vcombine.low %v5324_v61, %v5331_v43 }
 0x1b9   : > { %v5348_v39 = vrot.slane %v5334_v47, %v6141_v40  ;;  %v5350_v52 = vcombine.low %v2809_v38, %v2813_v56  ;;  %v2829_v36 = vrot.slane %v424_v29, %v6109_v10  ;;  %v5351_v28 = vcombine.low %v2817_v14, %v2821_v8 }
 0x1ba   : > { %5893 = vst [vmem:[%s6186_s23 + $0x468] sm:$0xff] %v5743_v20  ;;  %v2833_v23 = vrot.slane %v424_v29, %v6111_v11  ;;  %v2837_v33 = vrot.slane %v424_v29, %v6113_v12  ;;  %v2841_v48 = vrot.slane %v425_v27, %v6098_v4  ;;  %v5744_v24 = vadd.f32 %v5332_v57, %v8082_v44 }
 0x1bb   : > { %v5349_v53 = vcombine.low %v5341_v21, %v5348_v39  ;;  %v5358_v18 = vrot.slane %v5350_v52, %v6141_v40  ;;  %v5367_v13 = vcombine.low %v2825_v2, %v2829_v36  ;;  %v5365_v58 = vrot.slane %v5351_v28, %v6141_v40  ;;  %v8089_v28 = vld [vmem:[#allocation112_spill] sm:$0xff] }
 0x1bc   : > { %v5368_v17 = vcombine.low %v2833_v23, %v2837_v33  ;;  %v2845_v41 = vrot.slane %v425_v27, %v6100_v5  ;;  %v2849_v3 = vrot.slane %v425_v27, %v6102_v6  ;;  %5894 = vst [vmem:[%s6186_s23 + $0x470] sm:$0xff] %v5744_v24  ;;  %v2853_v59 = vrot.slane %v425_v27, %v6104_v7 }
 0x1bd   : > { %v5745_v45 = vadd.f32 %v5349_v53, %v8083_v16  ;;  %v5375_v31 = vrot.slane %v5367_v13, %v6141_v40  ;;  %v2857_v22 = vrot.slane %v425_v27, %v6107_v9  ;;  %v5366_v1 = vcombine.low %v5358_v18, %v5365_v58 }
 0x1be   : > { %v5382_v37 = vrot.slane %v5368_v17, %v6141_v40  ;;  %v5384_v54 = vcombine.low %v2841_v48, %v2845_v41  ;;  %v2861_v29 = vrot.slane %v425_v27, %v6109_v10  ;;  %v5385_v63 = vcombine.low %v2849_v3, %v2853_v59 }
 0x1bf   : > { %5895 = vst [vmem:[%s6186_s23 + $0x478] sm:$0xff] %v5745_v45  ;;  %v2865_v19 = vrot.slane %v425_v27, %v6111_v11  ;;  %v2869_v34 = vrot.slane %v425_v27, %v6113_v12  ;;  %v2873_v62 = vrot.slane %v426_v49, %v6098_v4  ;;  %v5746_v50 = vadd.f32 %v5366_v1, %v8084_v42  ;;  %v8086_v27 = vld [vmem:[#allocation109_spill] sm:$0xff] }
 0x1c0   : > { %v5383_v55 = vcombine.low %v5375_v31, %v5382_v37  ;;  %v5392_v0 = vrot.slane %v5384_v54, %v6141_v40  ;;  %v5401_v60 = vcombine.low %v2857_v22, %v2861_v29  ;;  %v5399_v15 = vrot.slane %v5385_v63, %v6141_v40 }
 0x1c1   : > { %v5402_v46 = vcombine.low %v2865_v19, %v2869_v34  ;;  %v2877_v32 = vrot.slane %v426_v49, %v6100_v5  ;;  %v2881_v38 = vrot.slane %v426_v49, %v6102_v6  ;;  %5896 = vst [vmem:[%s6186_s23 + $0x480] sm:$0xff] %v5746_v50  ;;  %v2885_v4 = vrot.slane %v426_v49, %v6104_v7 }
 0x1c2   : > { %v5747_v25 = vadd.f32 %v5383_v55, %v8085_v26  ;;  %v5409_v51 = vrot.slane %v5401_v60, %v6141_v40  ;;  %v2889_v61 = vrot.slane %v426_v49, %v6107_v9  ;;  %v5400_v35 = vcombine.low %v5392_v0, %v5399_v15 }
 0x1c3   : > { %v5416_v43 = vrot.slane %v5402_v46, %v6141_v40  ;;  %v5418_v47 = vcombine.low %v2873_v62, %v2877_v32  ;;  %v2893_v56 = vrot.slane %v426_v49, %v6109_v10  ;;  %v5419_v5 = vcombine.low %v2881_v38, %v2885_v4  ;;  %v8087_v10 = vld [vmem:[#allocation110_spill] sm:$0xff] }
 0x1c4   : > { %5897 = vst [vmem:[%s6186_s23 + $0x488] sm:$0xff] %v5747_v25  ;;  %v2897_v6 = vrot.slane %v426_v49, %v6111_v11  ;;  %v2901_v14 = vrot.slane %v426_v49, %v6113_v12  ;;  %v5748_v30 = vadd.f32 %v5400_v35, %v8086_v27  ;;  %v8088_v12 = vld [vmem:[#allocation111_spill] sm:$0xff] }
 0x1c5   : > { %v5417_v7 = vcombine.low %v5409_v51, %v5416_v43  ;;  %v5426_v9 = vrot.slane %v5418_v47, %v6141_v40  ;;  %v5435_v20 = vcombine.low %v2889_v61, %v2893_v56  ;;  %v5433_v21 = vrot.slane %v5419_v5, %v6141_v40 }
 0x1c6   : > { %v5436_v8 = vcombine.low %v2897_v6, %v2901_v14  ;;  %5898 = vst [vmem:[%s6186_s23 + $0x490] sm:$0xff] %v5748_v30 }
 0x1c7   : > { %v5749_v2 = vadd.f32 %v5417_v7, %v8087_v10  ;;  %v5443_v57 = vrot.slane %v5435_v20, %v6141_v40  ;;  %v5434_v39 = vcombine.low %v5426_v9, %v5433_v21 }
 0x1c8   : > { %v5450_v11 = vrot.slane %v5436_v8, %v6141_v40 }
 0x1c9   : > { %5899 = vst [vmem:[%s6186_s23 + $0x498] sm:$0xff] %v5749_v2  ;;  %v5750_v52 = vadd.f32 %v5434_v39, %v8088_v12 }
 0x1ca   : > { %v5451_v36 = vcombine.low %v5443_v57, %v5450_v11 }
 0x1cb   : > { %5900 = vst [vmem:[%s6186_s23 + $0x4a0] sm:$0xff] %v5750_v52 }
 0x1cc   : > { %v5751_v23 = vadd.f32 %v5451_v36, %v8089_v28 }
 0x1ce   : > { %5901 = vst [vmem:[%s6186_s23 + $0x4a8] sm:$0xff] %v5751_v23 }
 0x1cf PF: > { %s12_s11 = sadd.s32 1, %s6054_s11   ;;  %s8090_s9 = smov %s6050_s10 }
 0x1d0   : > { %p9_p5 = scmp.ge.s32.totalorder %s12_s11, 4   ;;  %s8091_s10 = smov %s8093_s12 }
 0x1d2   :  { %11 = sbr.rel (!%p9_p5) target bundleno = 2 (0x2), region = 61 }

</bundles_post_ra>
